<compile_context>
chip_gen: v5e
topology: v5e:2x2
jax: 0.10.0
libtpu: 0.0.40
codegen_flags: <defaults>
</compile_context>

<pallas_src>
import functools

import jax
import jax.numpy as jnp
import numpy as np
from jax.experimental import pallas as pl
from jax.experimental.pallas import tpu as pltpu

EPS = 1e-5
_SQRT_HALF = 0.7071067811865476


# ----------------------------- epilogue helpers --------------------------------


def _epilogue_dtype():
    # bf16 VPU/EUP paths exist on v6e/v7x; v5e and older must keep the epilogue in f32.
    try:
        kind = jax.devices()[0].device_kind.lower()
    except Exception:
        return jnp.float32
    if any(v in kind for v in ("v2", "v3", "v4", "v5")):
        return jnp.float32
    return jnp.bfloat16


def _gelu_erf(x, compute_dtype):
    """Exact (erf-based) GELU matching nn.GELU().

    erf via Abramowitz & Stegun 7.1.26 (|err| < 1.5e-7 in f32).  The rational polynomial
    runs in `compute_dtype` (bf16 on v6e/v7x, f32 on v5e); the divide is an approximate
    EUP reciprocal; the final 0.5*x*(1+erf) stays in f32 for the store.
    """
    z = (x * _SQRT_HALF).astype(compute_dtype)
    az = jnp.abs(z)
    t = pl.reciprocal((1.0 + 0.3275911 * az).astype(jnp.float32),
                      approx=True).astype(compute_dtype)
    poly = t * (0.254829592 + t * (-0.284496736 + t * (1.421413741
               + t * (-1.453152027 + t * 1.061405429))))
    erf_abs = 1.0 - poly * jnp.exp(-az * az)
    erf_z = jnp.where(z < 0.0, -erf_abs, erf_abs).astype(jnp.float32)
    return 0.5 * x * (1.0 + erf_z)


# ----------------------------- kernel ------------------------------------------


def _upconv_kernel(x_ref, u_ref, b_ref, o_ref, *, compute_dtype):
    # x_ref: (1, (H+2)*W, 3*Cin) bf16  column-stacked, zero-padded image rows
    # u_ref: (3, 3*Cin, N4)      bf16  sub-pixel weight, BN scale folded (N4 = 4*Cout padded)
    # b_ref: (1, N4)             f32   fused conv-bias + BN bias
    # o_ref: (1, H*W, N4)        f32   sub-pixel output rows (lane-dense)
    hw = o_ref.shape[1]
    w_out = (x_ref.shape[1] - hw) // 2      # = W: row stride between the 3 row taps

    # 3 MXU matmuls with K = 3*Cin.  Each LHS is a contiguous sublane slice of the
    # flattened input (tile-aligned when W % 8 == 0) -> no relayout copies, and the f32
    # accumulator only makes 3 passes.
    acc = jnp.dot(x_ref[0, 0:hw, :], u_ref[0],
                  preferred_element_type=jnp.float32)
    acc = acc + jnp.dot(x_ref[0, w_out:w_out + hw, :], u_ref[1],
                        preferred_element_type=jnp.float32)
    acc = acc + jnp.dot(x_ref[0, 2 * w_out:2 * w_out + hw, :], u_ref[2],
                        preferred_element_type=jnp.float32)

    o_ref[0] = _gelu_erf(acc + b_ref[...], compute_dtype)


# ----------------------------- weight prep -------------------------------------


def _build_subpixel_weight(w, bn_scale):
    """PyTorch ConvTranspose2d weight (Cin, Cout, 4, 4) -> (3, 3, Cin, 4*Cout).

    out[n, 2m+py, 2j+px, co] = sum_{f,e,ci} x_pad[n, m+f, j+e, ci] * U[f, e, ci, (py*2+px)*Cout+co]
    with x_pad zero-padded by 1; tap (f, e) maps to ConvT taps ky = 3+py-2f, kx = 3+px-2e
    (valid when 0 <= f-py <= 1 and 0 <= e-px <= 1).
    """
    cin, cout = w.shape[0], w.shape[1]
    wf = w * bn_scale[None, :, None, None]          # fold BN scale into the weight
    zero = jnp.zeros((cin, cout), wf.dtype)
    rows = []
    for f in range(3):
        cols = []
        for e in range(3):
            parts = []
            for py in range(2):
                for px in range(2):
                    if 0 <= f - py <= 1 and 0 <= e - px <= 1:
                        parts.append(wf[:, :, 3 + py - 2 * f, 3 + px - 2 * e])
                    else:
                        parts.append(zero)
            cols.append(jnp.concatenate(parts, axis=1))     # (Cin, 4*Cout)
        rows.append(jnp.stack(cols, axis=0))                # (3, Cin, 4*Cout)
    return jnp.stack(rows, axis=0)                          # (3, 3, Cin, 4*Cout)


# ----------------------------- forward ------------------------------------------


def upconv_forward(params, x_nchw):
    w, b, bn = params["w"], params["b"], params["bn"]
    cin, cout = w.shape[0], w.shape[1]
    n4 = 4 * cout
    n4_pad = ((n4 + 127) // 128) * 128      # keep the output store unmasked lane-dense

    # Fold BN (eval mode) and group the 3 column taps into the contraction dim:
    # (3, 3*Cin, N4) so the kernel issues 3 matmuls with K = 3*Cin.
    scale = bn["gamma"] / jnp.sqrt(bn["var"] + EPS)                    # (Cout,)
    u = _build_subpixel_weight(w, scale).reshape(3, 3 * cin, n4)
    bias4 = jnp.tile(bn["beta"] + (b - bn["mean"]) * scale, 4)         # (4*Cout,)
    if n4_pad != n4:
        u = jnp.pad(u, ((0, 0), (0, 0), (0, n4_pad - n4)))
        bias4 = jnp.pad(bias4, (0, n4_pad - n4))
    u = u.astype(jnp.bfloat16)
    bias4 = bias4.reshape(1, n4_pad).astype(jnp.float32)

    # Cast to bf16 BEFORE the layout passes; stack the 3 column taps along channels
    # (column-only im2col) so every in-kernel row tap is a contiguous row slice.
    x = jnp.transpose(x_nchw.astype(jnp.bfloat16), (0, 2, 3, 1))       # NCHW -> NHWC
    n, h, wd, _ = x.shape
    xp = jnp.pad(x, ((0, 0), (1, 1), (1, 1), (0, 0)))                  # (n, h+2, w+2, cin)
    x3 = jnp.concatenate([xp[:, :, e:e + wd, :] for e in range(3)], axis=-1)
    x3 = x3.reshape(n, (h + 2) * wd, 3 * cin)                          # (n, (h+2)*w, 3*cin)

    cost = pl.CostEstimate(
        flops=2 * n * h * wd * 9 * cin * cout * 4,
        transcendentals=n * h * wd * n4_pad,
        bytes_accessed=(x3.size * 2 + u.size * 2 + bias4.size * 4
                        + n * h * wd * n4_pad * 4),
    )

    y = pl.pallas_call(
        functools.partial(_upconv_kernel, compute_dtype=_epilogue_dtype()),
        out_shape=jax.ShapeDtypeStruct((n, h * wd, n4_pad), jnp.float32),
        grid_spec=pltpu.PrefetchScalarGridSpec(
            num_scalar_prefetch=0,
            grid=(n,),
            in_specs=[
                pl.BlockSpec((1, (h + 2) * wd, 3 * cin), lambda i: (i, 0, 0)),
                pl.BlockSpec((3, 3 * cin, n4_pad), lambda i: (0, 0, 0)),
                pl.BlockSpec((1, n4_pad), lambda i: (0, 0)),
            ],
            out_specs=pl.BlockSpec((1, h * wd, n4_pad), lambda i: (i, 0, 0)),
        ),
        compiler_params=pltpu.CompilerParams(
            dimension_semantics=("parallel",)),
        cost_estimate=cost,
    )(x3, u, bias4)

    # (n, m*W+j, (py*2+px)*Cout+co) -> pixel-shuffle + NHWC->NCHW in one transpose.
    # TODO(synk): if downstream can consume NHWC, skip this final transpose to save an
    #             HBM round trip of the (largest) upsampled output tensor.
    if n4_pad != n4:
        y = y[:, :, :n4]
    y = y.reshape(n, h, wd, 2, 2, cout)
    y = jnp.transpose(y, (0, 5, 1, 3, 2, 4))       # (n, co, m, py, j, px)
    return y.reshape(n, cout, 2 * h, 2 * wd)


# ----------------------------- pure-JAX reference --------------------------------


def upconv_reference(params, x_nchw):
    w, b, bn = params["w"], params["b"], params["bn"]
    # ConvTranspose2d(k=4, s=2, p=1) == conv of the 2x-dilated, 2-padded input with the
    # spatially-flipped, (in,out)-swapped weight.
    w_flip = jnp.transpose(w, (1, 0, 2, 3))[:, :, ::-1, ::-1]
    z = jax.lax.conv_general_dilated(
        x_nchw, w_flip, window_strides=(1, 1), padding=((2, 2), (2, 2)),
        lhs_dilation=(2, 2), rhs_dilation=(1, 1),
        dimension_numbers=("NCHW", "OIHW", "NCHW"))
    z = z + b[None, :, None, None]
    scale = (bn["gamma"] / jnp.sqrt(bn["var"] + EPS))[None, :, None, None]
    z = (z - bn["mean"][None, :, None, None]) * scale + bn["beta"][None, :, None, None]
    return jax.nn.gelu(z, approximate=False)


# ----------------------------- main -----------------------------------------------


if __name__ == "__main__":
    key = jax.random.PRNGKey(0)
    N, CIN, COUT, H, W = 2, 64, 32, 16, 16
    ks = jax.random.split(key, 7)
    params = {
        "w": 0.1 * jax.random.normal(ks[0], (CIN, COUT, 4, 4), jnp.float32),
        "b": 0.05 * jax.random.normal(ks[1], (COUT,), jnp.float32),
        "bn": {
            "gamma": 1.0 + 0.1 * jax.random.normal(ks[2], (COUT,), jnp.float32),
            "beta": 0.1 * jax.random.normal(ks[3], (COUT,), jnp.float32),
            "mean": 0.1 * jax.random.normal(ks[4], (COUT,), jnp.float32),
            "var": 1.0 + 0.1 * jax.random.uniform(ks[5], (COUT,), jnp.float32),
        },
    }
    x = jax.random.normal(ks[6], (N, CIN, H, W), jnp.float32)

    y = jax.block_until_ready(jax.jit(upconv_forward)(params, x))
    assert y.shape == (N, COUT, 2 * H, 2 * W) and y.dtype == jnp.float32

    # correctness check against pure-JAX reference (loose tolerance: bf16 weights/acts)
    ref = jax.block_until_ready(upconv_reference(params, x))
    np.testing.assert_allclose(np.asarray(y), np.asarray(ref), rtol=5e-2, atol=2e-1)

    print("KERNEL_OK")
</pallas_src>

<mosaic_0001>
module attributes {stable_mosaic.version = 11 : i64} {
  func.func @_upconv_kernel(%arg0: i32, %arg1: memref<1x288x192xbf16, #tpu.memory_space<vmem>>, %arg2: memref<3x192x128xbf16, #tpu.memory_space<vmem>>, %arg3: memref<1x128xf32, #tpu.memory_space<vmem>>, %arg4: memref<1x256x128xf32, #tpu.memory_space<vmem>>) attributes {dimension_semantics = [#tpu.dimension_semantics<parallel>], iteration_bounds = array<i64: 2>, scalar_prefetch = 0 : i64, scratch_operands = 0 : i64, tpu.core_type = #tpu.core_type<tc>, window_params = [{transform_indices = @transform_0, window_bounds = array<i64: 1, 288, 192>}, {pipeline_mode = #tpu.pipeline_mode<synchronous>, transform_indices = @transform_1, window_bounds = array<i64: 3, 192, 128>}, {pipeline_mode = #tpu.pipeline_mode<synchronous>, transform_indices = @transform_2, window_bounds = array<i64: 1, 128>}, {transform_indices = @transform_3, window_bounds = array<i64: 1, 256, 128>}]} {
    %c0 = arith.constant 0 : index
    %c0_0 = arith.constant 0 : index
    %c0_1 = arith.constant 0 : index
    %0 = vector.load %arg1[%c0, %c0_0, %c0_1] : memref<1x288x192xbf16, #tpu.memory_space<vmem>>, vector<1x256x192xbf16>
    %1 = vector.shape_cast %0 : vector<1x256x192xbf16> to vector<256x192xbf16>
    %c0_2 = arith.constant 0 : index
    %c0_3 = arith.constant 0 : index
    %c0_4 = arith.constant 0 : index
    %2 = vector.load %arg2[%c0_2, %c0_3, %c0_4] : memref<3x192x128xbf16, #tpu.memory_space<vmem>>, vector<1x192x128xbf16>
    %3 = vector.shape_cast %2 : vector<1x192x128xbf16> to vector<192x128xbf16>
    %cst = arith.constant dense<0.000000e+00> : vector<256x128xf32>
    %4 = tpu.matmul %1, %3, %cst {dimension_numbers = #tpu.dot_dimension_numbers<[1], [0], [0], [1], [0, 0, 1, 1], [], []>} : vector<256x192xbf16>, vector<192x128xbf16>, vector<256x128xf32> -> vector<256x128xf32>
    %c0_5 = arith.constant 0 : index
    %c16 = arith.constant 16 : index
    %c0_6 = arith.constant 0 : index
    %5 = vector.load %arg1[%c0_5, %c16, %c0_6] : memref<1x288x192xbf16, #tpu.memory_space<vmem>>, vector<1x256x192xbf16>
    %6 = vector.shape_cast %5 : vector<1x256x192xbf16> to vector<256x192xbf16>
    %c1 = arith.constant 1 : index
    %c0_7 = arith.constant 0 : index
    %c0_8 = arith.constant 0 : index
    %7 = vector.load %arg2[%c1, %c0_7, %c0_8] : memref<3x192x128xbf16, #tpu.memory_space<vmem>>, vector<1x192x128xbf16>
    %8 = vector.shape_cast %7 : vector<1x192x128xbf16> to vector<192x128xbf16>
    %cst_9 = arith.constant dense<0.000000e+00> : vector<256x128xf32>
    %9 = tpu.matmul %6, %8, %cst_9 {dimension_numbers = #tpu.dot_dimension_numbers<[1], [0], [0], [1], [0, 0, 1, 1], [], []>} : vector<256x192xbf16>, vector<192x128xbf16>, vector<256x128xf32> -> vector<256x128xf32>
    %10 = arith.addf %4, %9 : vector<256x128xf32>
    %c0_10 = arith.constant 0 : index
    %c32 = arith.constant 32 : index
    %c0_11 = arith.constant 0 : index
    %11 = vector.load %arg1[%c0_10, %c32, %c0_11] : memref<1x288x192xbf16, #tpu.memory_space<vmem>>, vector<1x256x192xbf16>
    %12 = vector.shape_cast %11 : vector<1x256x192xbf16> to vector<256x192xbf16>
    %c2 = arith.constant 2 : index
    %c0_12 = arith.constant 0 : index
    %c0_13 = arith.constant 0 : index
    %13 = vector.load %arg2[%c2, %c0_12, %c0_13] : memref<3x192x128xbf16, #tpu.memory_space<vmem>>, vector<1x192x128xbf16>
    %14 = vector.shape_cast %13 : vector<1x192x128xbf16> to vector<192x128xbf16>
    %cst_14 = arith.constant dense<0.000000e+00> : vector<256x128xf32>
    %15 = tpu.matmul %12, %14, %cst_14 {dimension_numbers = #tpu.dot_dimension_numbers<[1], [0], [0], [1], [0, 0, 1, 1], [], []>} : vector<256x192xbf16>, vector<192x128xbf16>, vector<256x128xf32> -> vector<256x128xf32>
    %16 = arith.addf %10, %15 : vector<256x128xf32>
    %c0_15 = arith.constant 0 : index
    %c0_16 = arith.constant 0 : index
    %17 = vector.load %arg3[%c0_15, %c0_16] : memref<1x128xf32, #tpu.memory_space<vmem>>, vector<1x128xf32>
    %18 = vector.broadcast %17 : vector<1x128xf32> to vector<256x128xf32>
    %19 = arith.addf %16, %18 : vector<256x128xf32>
    %cst_17 = arith.constant 0.707106769 : f32
    %20 = vector.broadcast %cst_17 : f32 to vector<256x128xf32>
    %21 = arith.mulf %19, %20 : vector<256x128xf32>
    %22 = arith.truncf %21 : vector<256x128xf32> to vector<256x128xbf16>
    %23 = math.absf %22 : vector<256x128xbf16>
    %cst_18 = arith.constant 3.281250e-01 : bf16
    %24 = vector.broadcast %cst_18 : bf16 to vector<256x128xbf16>
    %25 = arith.mulf %24, %23 : vector<256x128xbf16>
    %cst_19 = arith.constant 1.000000e+00 : bf16
    %26 = vector.broadcast %cst_19 : bf16 to vector<256x128xbf16>
    %27 = arith.addf %26, %25 : vector<256x128xbf16>
    %28 = arith.extf %27 : vector<256x128xbf16> to vector<256x128xf32>
    %29 = tpu.reciprocal %28 {approx = true} : vector<256x128xf32> -> vector<256x128xf32>
    %30 = arith.truncf %29 : vector<256x128xf32> to vector<256x128xbf16>
    %cst_20 = arith.constant 1.062500e+00 : bf16
    %31 = vector.broadcast %cst_20 : bf16 to vector<256x128xbf16>
    %32 = arith.mulf %30, %31 : vector<256x128xbf16>
    %cst_21 = arith.constant -1.453130e+00 : bf16
    %33 = vector.broadcast %cst_21 : bf16 to vector<256x128xbf16>
    %34 = arith.addf %33, %32 : vector<256x128xbf16>
    %35 = arith.mulf %30, %34 : vector<256x128xbf16>
    %cst_22 = arith.constant 1.421880e+00 : bf16
    %36 = vector.broadcast %cst_22 : bf16 to vector<256x128xbf16>
    %37 = arith.addf %36, %35 : vector<256x128xbf16>
    %38 = arith.mulf %30, %37 : vector<256x128xbf16>
    %cst_23 = arith.constant -2.851560e-01 : bf16
    %39 = vector.broadcast %cst_23 : bf16 to vector<256x128xbf16>
    %40 = arith.addf %39, %38 : vector<256x128xbf16>
    %41 = arith.mulf %30, %40 : vector<256x128xbf16>
    %cst_24 = arith.constant 2.539060e-01 : bf16
    %42 = vector.broadcast %cst_24 : bf16 to vector<256x128xbf16>
    %43 = arith.addf %42, %41 : vector<256x128xbf16>
    %44 = arith.mulf %30, %43 : vector<256x128xbf16>
    %cst_25 = arith.constant 0.000000e+00 : bf16
    %45 = vector.broadcast %cst_25 : bf16 to vector<256x128xbf16>
    %46 = arith.subf %45, %23 : vector<256x128xbf16>
    %47 = arith.mulf %46, %23 : vector<256x128xbf16>
    %48 = math.exp %47 : vector<256x128xbf16>
    %49 = arith.mulf %44, %48 : vector<256x128xbf16>
    %cst_26 = arith.constant 1.000000e+00 : bf16
    %50 = vector.broadcast %cst_26 : bf16 to vector<256x128xbf16>
    %51 = arith.subf %50, %49 : vector<256x128xbf16>
    %cst_27 = arith.constant 0.000000e+00 : bf16
    %52 = vector.broadcast %cst_27 : bf16 to vector<256x128xbf16>
    %53 = arith.cmpf olt, %22, %52 : vector<256x128xbf16>
    %cst_28 = arith.constant 0.000000e+00 : bf16
    %54 = vector.broadcast %cst_28 : bf16 to vector<256x128xbf16>
    %55 = arith.subf %54, %51 : vector<256x128xbf16>
    %56 = arith.select %53, %55, %51 : vector<256x128xi1>, vector<256x128xbf16>
    %57 = arith.extf %56 : vector<256x128xbf16> to vector<256x128xf32>
    %cst_29 = arith.constant 5.000000e-01 : f32
    %58 = vector.broadcast %cst_29 : f32 to vector<256x128xf32>
    %59 = arith.mulf %58, %19 : vector<256x128xf32>
    %cst_30 = arith.constant 1.000000e+00 : f32
    %60 = vector.broadcast %cst_30 : f32 to vector<256x128xf32>
    %61 = arith.addf %60, %57 : vector<256x128xf32>
    %62 = arith.mulf %59, %61 : vector<256x128xf32>
    %c0_31 = arith.constant 0 : index
    %c0_32 = arith.constant 0 : index
    %c0_33 = arith.constant 0 : index
    %63 = vector.load %arg4[%c0_31, %c0_32, %c0_33] : memref<1x256x128xf32, #tpu.memory_space<vmem>>, vector<1x256x128xf32>
    %64 = vector.shape_cast %63 : vector<1x256x128xf32> to vector<256x128xf32>
    %65 = vector.shape_cast %62 : vector<256x128xf32> to vector<1x256x128xf32>
    tpu.vector_store %arg4[%c0_31, %c0_32, %c0_33], %65 {strides = array<i32>} : memref<1x256x128xf32, #tpu.memory_space<vmem>>, vector<1x256x128xf32>,
    return
  }
  func.func @transform_0(%arg0: i32) -> (i32, i32, i32) {
    %c0_i32 = arith.constant 0 : i32
    %c0_i32_0 = arith.constant 0 : i32
    %c0_i32_1 = arith.constant 0 : i32
    return %arg0, %c0_i32, %c0_i32_0 : i32, i32, i32
  }
  func.func @transform_1(%arg0: i32) -> (i32, i32, i32) {
    %c0_i32 = arith.constant 0 : i32
    %c0_i32_0 = arith.constant 0 : i32
    %c0_i32_1 = arith.constant 0 : i32
    %c0_i32_2 = arith.constant 0 : i32
    return %c0_i32, %c0_i32_0, %c0_i32_1 : i32, i32, i32
  }
  func.func @transform_2(%arg0: i32) -> (i32, i32) {
    %c0_i32 = arith.constant 0 : i32
    %c0_i32_0 = arith.constant 0 : i32
    %c0_i32_1 = arith.constant 0 : i32
    return %c0_i32, %c0_i32_0 : i32, i32
  }
  func.func @transform_3(%arg0: i32) -> (i32, i32, i32) {
    %c0_i32 = arith.constant 0 : i32
    %c0_i32_0 = arith.constant 0 : i32
    %c0_i32_1 = arith.constant 0 : i32
    return %arg0, %c0_i32, %c0_i32_0 : i32, i32, i32
  }
}

</mosaic_0001>

<bundles_post_ra>
// kernel: tile.8
= control target key start
LH: loop header
LB: loop body
LE: loop exit
PB: predicated region body
PF: predicated region fallthrough
CT: control target
= control target key end

     0   :  { %s22_s0 = inlined_call_operand.vmem [shape: f32[32], index: 0, kind: input, shape index: {}]   ;;  %s23_s1 = inlined_call_operand.vmem [shape: f32[4,32], index: 1, kind: output, shape index: {}]  }
   0x1   :  { %v4_v0 = vld [vmem:[%s22_s0] ss:$0 sm:$0xff] }
   0x2   :  { %5 = vst [vmem:[%s23_s1] sm:$0xf] %v4_v0 }

// kernel: tile.9
= control target key start
LH: loop header
LB: loop body
LE: loop exit
PB: predicated region body
PF: predicated region fallthrough
CT: control target
= control target key end

     0   :  { %s37_s8 = smov 32   ;;  %s38_s9 = smov 64   ;;  %vm7_vm0 = vcmask 261120   ;;  %vm13_vm1 = vcmask 1048320   ;;  %vm19_vm2 = vcmask 785920   ;;  %vm25_vm3 = vcmask 523520   ;;  %s55_s0 = inlined_call_operand.vmem [shape: f32[4,32], index: 0, kind: input, shape index: {}]   ;;  %s56_s1 = inlined_call_operand.vmem [shape: f32[1,128], index: 1, kind: output, shape index: {}]  }
   0x1   :  { %v4_v0 = vld [vmem:[%s55_s0] sm:$0xf]  ;;  %s36_s0 = smov 96  }
   0x2   :  { %5 = vst [vmem:[#allocation1] sm:$0xf] %v4_v0 }
   0x9   :  { %v10_v1 = vld [vmem:[#allocation1 + $0x3] sm:$0x1]   ;;  %v22_v2 = vld [vmem:[#allocation1 + $0x1] sm:$0x1]   ;;  %v16_v3 = vld [vmem:[#allocation1 + $0x2] sm:$0x1]  }
   0xa   :  { %11 = vrot.lane.b32.xlu0 %v10_v1, %s36_s0  ;;  %23 = vrot.lane.b32.xlu1 %v22_v2, %s37_s8  ;;  %v6_v4 = vld [vmem:[#allocation1] sm:$0x1]  }
   0xb   :  { %8 = vst.msk [vmem:[#allocation0] sm:$0x1] %vm7_vm0, %v6_v4  }
  0x12   :  { %17 = vrot.lane.b32.xlu0 %v16_v3, %s38_s9 }
  0x7c   :  { %v12_v5 = vpop.permute.xlu0 %11   ;;  %v24_v6 = vpop.permute.xlu1 %23  }
  0x7d   :  { %14 = vst.msk [vmem:[#allocation0] sm:$0x1] %vm13_vm1, %v12_v5  }
  0x84   :  { %v18_v7 = vpop.permute.xlu0 %17  }
  0x85   :  { %20 = vst.msk [vmem:[#allocation0] sm:$0x1] %vm19_vm2, %v18_v7  }
  0x86   :  { %26 = vst.msk [vmem:[#allocation0] sm:$0x1] %vm25_vm3, %v24_v6  }
  0x8d   :  { %v29_v8 = vld [vmem:[#allocation0] sm:$0x1] }
  0x8e   :  { %32 = vst [vmem:[%s56_s1] sm:$0x1] %v29_v8 }

// kernel: upconv_forward.1
= control target key start
LH: loop header
LB: loop body
LE: loop exit
PB: predicated region body
PF: predicated region fallthrough
CT: control target
= control target key end

     0   :  { %s4521_s12 = smov 0   ;;  %s6232_s0 = inlined_call_operand.vmem [shape: bf16[2,288,192], index: 0, kind: input, shape index: {}]   ;;  %s6233_s1 = inlined_call_operand.vmem [shape: bf16[3,192,128], index: 1, kind: input, shape index: {}]   ;;  %s6234_s2 = inlined_call_operand.vmem [shape: f32[1,128], index: 2, kind: input, shape index: {}]   ;;  %s6235_s3 = inlined_call_operand.vmem [shape: f32[2,256,128], index: 3, kind: output, shape index: {}]  }
   0x1 LB: > { %s3726_s13 = sadd.s32 4294967295, %s4499_s12   ;;  %p3730_p0 = scmp.ge.s32.totalorder %s4499_s12, 1  ;;  %s4499_s12 = sphi %s4521_s12, %s13_s12  }
   0x2   : > { %p137_p1 = scmp.lt.s32.totalorder %s4499_s12, 3 }
   0x4   : > { %p138_p2 = pnand %p3730_p0, %p137_p1 }
   0x6   : > { %141 = sbr.rel (%p138_p2) target bundleno = 1038 (0x40e), region = 32 }
   0xb   : > { %v4294_v0 = vld [vmem:[%s6233_s1 + $0x98] sm:$0xff]  ;;  %p161_p3 = scmp.lt.s32.totalorder %s3726_s13, 1  ;;  %v4293_v4 = vld [vmem:[%s6233_s1 + $0x90] sm:$0xff]  ;;  %v4292_v8 = vld [vmem:[%s6233_s1 + $0x88] sm:$0xff]  ;;  %vm471_vm0 = vcmask 523264  }
   0xc   : > { %v4535_v1 = vld [vmem:[%s6233_s1 + $0xb8] sm:$0xff]  ;;  %520 = vmatpush.bf16.msra.mxu0 %v4294_v0  ;;  %v4552_v5 = vld [vmem:[%s6233_s1 + $0xb0] sm:$0xff]  ;;  %v4573_v9 = vld [vmem:[%s6233_s1 + $0xa8] sm:$0xff] }
   0xd   : > { %v4280_v2 = vld [vmem:[%s6233_s1 + $0x38] sm:$0xff]  ;;  %4343 = vmatpush.bf16.msra.mxu1 %v4535_v1  ;;  %s6394_s13 = smov (!%p161_p3, %s3726_s13), 1  ;;  %v4279_v6 = vld [vmem:[%s6233_s1 + $0x30] sm:$0xff]  ;;  %v4278_v10 = vld [vmem:[%s6233_s1 + $0x28] sm:$0xff] }
   0xe   : > { %v4543_v3 = vld [vmem:[%s6233_s1 + $0x58] sm:$0xff]  ;;  %782 = vmatpush.bf16.msra.mxu2 %v4280_v2  ;;  %v4563_v7 = vld [vmem:[%s6233_s1 + $0x50] sm:$0xff]  ;;  %s4351_s30 = smul.u32 288, %s6394_s13  ;;  %v4582_v11 = vld [vmem:[%s6233_s1 + $0x48] sm:$0xff]  ;;  %s4240_s18 = sshll.u32 %s6394_s13, 8 }
   0xf   : > { %4347 = vmatpush.bf16.msra.mxu3 %v4543_v3  ;;  %v4291_v12 = vld [vmem:[%s6233_s1 + $0x80] sm:$0xff]  ;;  %v4342_v20 = vld [vmem:[%s6233_s1 + $0x118] sm:$0xff]  ;;  %v4337_v26 = vld [vmem:[%s6233_s1 + $0xf0] sm:$0xff]  ;;  %s5280_s21 = scalar_lea.vmem %s6235_s3, %s4240_s18 }
  0x10   : > { %521 = vmatpush.bf16.msra.mxu0 %v4293_v4  ;;  %s4587_s16 = scalar_lea.vmem %s6232_s0, %s4351_s30  ;;  %v4595_v13 = vld [vmem:[%s6233_s1 + $0xa0] sm:$0xff]  ;;  %v4338_v21 = vld [vmem:[%s6233_s1 + $0xf8] sm:$0xff]  ;;  %v4289_v27 = vld [vmem:[%s6233_s1 + $0x70] sm:$0xff] }
  0x11   : > { %4344 = vmatpush.bf16.msra.mxu1 %v4552_v5  ;;  %v4277_v14 = vld [vmem:[%s6233_s1 + $0x20] sm:$0xff]  ;;  %v3818_v16 = vld [vmem:[%s4587_s16 + $0x88] sm:$0xf0]  ;;  %v4255_v18 = vld [vmem:[%s4587_s16 + $0x74] sm:$0xf] }
  0x12   : > { %783 = vmatpush.bf16.msra.mxu2 %v4279_v6  ;;  %v4257_v15 = vld [vmem:[%s4587_s16 + $0x84] sm:$0xf]  ;;  %v3810_v19 = vld [vmem:[%s4587_s16 + $0x78] sm:$0xf0]  ;;  %v4341_v28 = vld [vmem:[%s6233_s1 + $0x110] sm:$0xff] }
  0x13   : > { %4348 = vmatpush.bf16.msra.mxu3 %v4563_v7  ;;  %v4607_v17 = vld [vmem:[%s6233_s1 + $0x40] sm:$0xff]  ;;  %v3821_v22 = vor.u32 %v4257_v15, %v3818_v16  ;;  %v4618_v23 = vor.u32 %v4255_v18, %v3810_v19  ;;  %v4290_v24 = vld [vmem:[%s6233_s1 + $0x78] sm:$0xff]  ;;  %v4275_v29 = vld [vmem:[%s6233_s1 + $0x10] sm:$0xff] }
  0x14   : > { %522 = vmatpush.bf16.msra.mxu0 %v4292_v8  ;;  %v4276_v25 = vld [vmem:[%s6233_s1 + $0x18] sm:$0xff]  ;;  %v4336_v30 = vld [vmem:[%s6233_s1 + $0xe8] sm:$0xff]  ;;  %v4287_v33 = vld [vmem:[%s6233_s1 + $0x60] sm:$0xff] }
  0x15   : > { %4345 = vmatpush.bf16.msra.mxu1 %v4573_v9  ;;  %v4288_v31 = vld [vmem:[%s6233_s1 + $0x68] sm:$0xff]  ;;  %v3760_v34 = vld [vmem:[%s4587_s16 + $0x10] sm:$0xf]  ;;  %v4244_v35 = vld [vmem:[%s4587_s16 + $0x14] sm:$0xf0] }
  0x16   : > { %784 = vmatpush.bf16.msra.mxu2 %v4278_v10  ;;  %v4274_v32 = vld [vmem:[%s6233_s1 + $0x8] sm:$0xff]  ;;  %v4259_v36 = vld [vmem:[%s4587_s16 + $0x94] sm:$0xf]  ;;  %v3826_v37 = vld [vmem:[%s4587_s16 + $0x98] sm:$0xf0]  ;;  %v3761_v41 = vor.u32 %v4244_v35, %v3760_v34 }
  0x17   : > { %4349 = vmatpush.bf16.msra.mxu3 %v4582_v11  ;;  %v4273_v38 = vld [vmem:[%s6233_s1] sm:$0xff]  ;;  %v4242_v40 = vld [vmem:[%s4587_s16 + $0x4] sm:$0xf0]  ;;  %v3829_v42 = vor.u32 %v4259_v36, %v3826_v37  ;;  %v3834_v48 = vld [vmem:[%s4587_s16 + $0xa8] sm:$0xf0] }
  0x18   : > { %523 = vmatpush.bf16.msra.mxu0 %v4291_v12  ;;  %v3952_v39 = vld [vmem:[%s4587_s16] sm:$0xf]  ;;  %v4246_v46 = vld [vmem:[%s4587_s16 + $0x24] sm:$0xf0]  ;;  %v4261_v47 = vld [vmem:[%s4587_s16 + $0xa4] sm:$0xf] }
  0x19   : > { %4346 = vmatpush.bf16.msra.mxu1 %v4595_v13  ;;  %v3953_v43 = vor.u32 %v4242_v40, %v3952_v39  ;;  %v4335_v44 = vld [vmem:[%s6233_s1 + $0xe0] sm:$0xff]  ;;  %v3837_v50 = vor.u32 %v4261_v47, %v3834_v48  ;;  %v4340_v51 = vld [vmem:[%s6233_s1 + $0x108] sm:$0xff]  ;;  %v4334_v52 = vld [vmem:[%s6233_s1 + $0xd8] sm:$0xff] }
  0x1a   : > { %785 = vmatpush.bf16.msra.mxu2 %v4277_v14  ;;  %v3768_v45 = vld [vmem:[%s4587_s16 + $0x20] sm:$0xf]  ;;  %v3776_v53 = vld [vmem:[%s4587_s16 + $0x30] sm:$0xf]  ;;  %v4248_v54 = vld [vmem:[%s4587_s16 + $0x34] sm:$0xf0] }
  0x1b   : > { %4350 = vmatpush.bf16.msra.mxu3 %v4607_v17  ;;  %v3769_v49 = vor.u32 %v4246_v46, %v3768_v45  ;;  %v4263_v55 = vld [vmem:[%s4587_s16 + $0xb4] sm:$0xf]  ;;  %v3842_v56 = vld [vmem:[%s4587_s16 + $0xb8] sm:$0xf0]  ;;  %v3777_v57 = vor.u32 %v4248_v54, %v3776_v53  ;;  %v3784_v59 = vld [vmem:[%s4587_s16 + $0x40] sm:$0xf] }
  0x1c   : > { %3941 = vmatmul.msk.bf16.vlgmr.msra.gmra.mxu1 %vm471_vm0, %v3821_v22  ;;  %524 = vmatpush.bf16.msra.mxu0 %v4290_v24  ;;  %v3845_v58 = vor.u32 %v4263_v55, %v3842_v56  ;;  %v4250_v60 = vld [vmem:[%s4587_s16 + $0x44] sm:$0xf0]  ;;  %v4265_v61 = vld [vmem:[%s4587_s16 + $0xc4] sm:$0xf]  ;;  %v3850_v62 = vld [vmem:[%s4587_s16 + $0xc8] sm:$0xf0] }
  0x1d   : > { %1281 = vmatpush.bf16.msrb.mxu1 %v4338_v21  ;;  %v3785_v63 = vor.u32 %v4250_v60, %v3784_v59  ;;  %v3853_v0 = vor.u32 %v4265_v61, %v3850_v62  ;;  %v4339_v2 = vld [vmem:[%s6233_s1 + $0x100] sm:$0xff]  ;;  %v4252_v4 = vld [vmem:[%s4587_s16 + $0x54] sm:$0xf0]  ;;  %v3858_v6 = vld [vmem:[%s4587_s16 + $0xd8] sm:$0xf0] }
  0x1e   : > { %4013 = vmatmul.msk.bf16.vlgmr.msra.gmra.mxu3 %vm471_vm0, %v4618_v23  ;;  %786 = vmatpush.bf16.msra.mxu2 %v4276_v25  ;;  %v3800_v10 = vld [vmem:[%s4587_s16 + $0x60] sm:$0xf]  ;;  %v4269_v12 = vld [vmem:[%s4587_s16 + $0xe4] sm:$0xf]  ;;  %v4256_v18 = vld [vmem:[%s4587_s16 + $0x74] sm:$0xf0] }
  0x1f   : > { %1374 = vmatpush.bf16.msrb.mxu3 %v4342_v20  ;;  %v4331_v16 = vld [vmem:[%s6233_s1 + $0xc0] sm:$0xff]  ;;  %v4271_v19 = vld [vmem:[%s4587_s16 + $0xf4] sm:$0xf]  ;;  %v3874_v20 = vld [vmem:[%s4587_s16 + $0xf8] sm:$0xf0] }
  0x20   : > { %525 = vmatpush.bf16.msra.mxu0 %v4289_v27  ;;  %v3816_v24 = vld [vmem:[%s4587_s16 + $0x80] sm:$0xf]  ;;  %v4258_v25 = vld [vmem:[%s4587_s16 + $0x84] sm:$0xf0]  ;;  %v3882_v27 = vld [vmem:[%s4587_s16 + $0x108] sm:$0xf0] }
  0x21   : > { %1282 = vmatpush.bf16.msrb.mxu1 %v4337_v26  ;;  %v4285_v26 = vld [vmem:[%s4587_s16 + $0x104] sm:$0xf]  ;;  %v4260_v34 = vld [vmem:[%s4587_s16 + $0x94] sm:$0xf0]  ;;  %v4048_v35 = vld [vmem:[%s4587_s16 + $0x20] sm:$0xf] }
  0x22   : > { %787 = vmatpush.bf16.msra.mxu2 %v4275_v29  ;;  %v3885_v29 = vor.u32 %v4285_v26, %v3882_v27  ;;  %v4300_v36 = vld [vmem:[%s4587_s16 + $0x24] sm:$0xf0]  ;;  %v4299_v37 = vld [vmem:[%s4587_s16 + $0x24] sm:$0xf]  ;;  %v4301_v53 = vld [vmem:[%s4587_s16 + $0x34] sm:$0xf] }
  0x23   : > { %1375 = vmatpush.bf16.msrb.mxu3 %v4341_v28  ;;  %v3817_v28 = vor.u32 %v4258_v25, %v3816_v24  ;;  %v4058_v54 = vld [vmem:[%s4587_s16 + $0x38] sm:$0xf0]  ;;  %v4305_v24 = vld [vmem:[%s4587_s16 + $0x54] sm:$0xf] }
  0x24   : > { %526 = vmatpush.bf16.msra.mxu0 %v4288_v31  ;;  %v4061_v61 = vor.u32 %v4301_v53, %v4058_v54  ;;  %v4074_v25 = vld [vmem:[%s4587_s16 + $0x58] sm:$0xf0] }
  0x25   : > { %1283 = vmatpush.bf16.msrb.mxu1 %v4336_v30 }
  0x26   : > { %788 = vmatpush.bf16.msra.mxu2 %v4274_v32 }
  0x27   : > { %1376 = vmatpush.bf16.msrb.mxu3 %v4340_v51  ;;  %v4056_v51 = vld [vmem:[%s4587_s16 + $0x30] sm:$0xf] }
  0x28   : > { %527 = vmatpush.bf16.msra.mxu0 %v4287_v33  ;;  %v3824_v33 = vld [vmem:[%s4587_s16 + $0x90] sm:$0xf] }
  0x29   : > { %1284 = vmatpush.bf16.msrb.mxu1 %v4335_v44  ;;  %v3825_v40 = vor.u32 %v4260_v34, %v3824_v33 }
  0x2a   : > { %789 = vmatpush.bf16.msra.mxu2 %v4273_v38  ;;  %v4050_v38 = vld [vmem:[%s4587_s16 + $0x28] sm:$0xf0] }
  0x2b   : > { %528 = vmatmul.bf16.vlgmr.msra.gmra.mxu0 %v3761_v41  ;;  %1377 = vmatpush.bf16.msrb.mxu3 %v4339_v2  ;;  %v4053_v44 = vor.u32 %v4299_v37, %v4050_v38  ;;  %v3840_v2 = vld [vmem:[%s4587_s16 + $0xb0] sm:$0xf] }
  0x2c   : > { %613 = vmatpush.bf16.msrb.mxu0 %v4535_v1  ;;  %3942 = vmatmul.msk.bf16.gmra.mxu1 %vm471_vm0, %v3829_v42  ;;  %v4333_v1 = vld [vmem:[%s6233_s1 + $0xd0] sm:$0xff] }
  0x2d   : > { %790 = vmatmul.bf16.vlgmr.msra.gmra.mxu2 %v3953_v43  ;;  %1285 = vmatpush.bf16.msrb.mxu1 %v4334_v52  ;;  %v4302_v52 = vld [vmem:[%s4587_s16 + $0x34] sm:$0xf0] }
  0x2e   : > { %875 = vmatpush.bf16.msrb.mxu2 %v4543_v3  ;;  %4014 = vmatmul.msk.bf16.gmra.mxu3 %vm471_vm0, %v3821_v22  ;;  %v3792_v3 = vld [vmem:[%s4587_s16 + $0x50] sm:$0xf]  ;;  %v3877_v22 = vor.u32 %v4271_v19, %v3874_v20  ;;  %v3848_v19 = vld [vmem:[%s4587_s16 + $0xc0] sm:$0xf]  ;;  %v4266_v20 = vld [vmem:[%s4587_s16 + $0xc4] sm:$0xf0] }
  0x30   : > { %614 = vmatpush.bf16.msrb.mxu0 %v4552_v5  ;;  %v4267_v5 = vld [vmem:[%s4587_s16 + $0xd4] sm:$0xf] }
  0x31   : > { %1286 = vmatpush.bf16.msrb.mxu1 %v4333_v1  ;;  %v3861_v8 = vor.u32 %v4267_v5, %v3858_v6  ;;  %v4304_v5 = vld [vmem:[%s4587_s16 + $0x44] sm:$0xf0]  ;;  %v4303_v6 = vld [vmem:[%s4587_s16 + $0x44] sm:$0xf] }
  0x32   : > { %876 = vmatpush.bf16.msrb.mxu2 %v4563_v7  ;;  %v3793_v7 = vor.u32 %v4252_v4, %v3792_v3  ;;  %v4264_v3 = vld [vmem:[%s4587_s16 + $0xb4] sm:$0xf0]  ;;  %v4064_v4 = vld [vmem:[%s4587_s16 + $0x40] sm:$0xf] }
  0x34   : > { %615 = vmatpush.bf16.msrb.mxu0 %v4573_v9  ;;  %v4332_v9 = vld [vmem:[%s6233_s1 + $0xc8] sm:$0xff] }
  0x35   : > { %1287 = vmatpush.bf16.msrb.mxu1 %v4332_v9 }
  0x36   : > { %877 = vmatpush.bf16.msrb.mxu2 %v4582_v11  ;;  %v4254_v11 = vld [vmem:[%s4587_s16 + $0x64] sm:$0xf0] }
  0x37   : > { %v3801_v14 = vor.u32 %v4254_v11, %v3800_v10  ;;  %v3841_v10 = vor.u32 %v4264_v3, %v3840_v2  ;;  %v4065_v11 = vor.u32 %v4304_v5, %v4064_v4 }
  0x38   : > { %616 = vmatpush.bf16.msrb.mxu0 %v4595_v13  ;;  %v3866_v13 = vld [vmem:[%s4587_s16 + $0xe8] sm:$0xf0] }
  0x39   : > { %v3869_v15 = vor.u32 %v4269_v12, %v3866_v13  ;;  %1288 = vmatpush.bf16.msrb.mxu1 %v4331_v16 }
  0x3a   : > { %878 = vmatpush.bf16.msrb.mxu2 %v4607_v17  ;;  %v3808_v17 = vld [vmem:[%s4587_s16 + $0x70] sm:$0xf] }
  0x3b   : > { %533 = vmatmul.bf16.gmra.mxu0 %v3769_v49  ;;  %v3809_v21 = vor.u32 %v4256_v18, %v3808_v17 }
  0x3c   : > { %3943 = vmatmul.msk.bf16.gmra.mxu1 %vm471_vm0, %v3837_v50 }
  0x3d   : > { %795 = vmatmul.bf16.gmra.mxu2 %v3761_v41  ;;  %v4049_v41 = vor.u32 %v4300_v36, %v4048_v35  ;;  %v4077_v35 = vor.u32 %v4305_v24, %v4074_v25 }
  0x3e   : > { %4015 = vmatmul.msk.bf16.gmra.mxu3 %vm471_vm0, %v3829_v42 }
  0x4b   : > { %538 = vmatmul.bf16.gmra.mxu0 %v3777_v57 }
  0x4c   : > { %3944 = vmatmul.msk.bf16.gmra.mxu1 %vm471_vm0, %v3845_v58 }
  0x4d   : > { %800 = vmatmul.bf16.gmra.mxu2 %v3769_v49  ;;  %v3832_v49 = vld [vmem:[%s4587_s16 + $0xa0] sm:$0xf] }
  0x4e   : > { %4016 = vmatmul.msk.bf16.gmra.mxu3 %vm471_vm0, %v3837_v50  ;;  %v4262_v50 = vld [vmem:[%s4587_s16 + $0xa4] sm:$0xf0] }
  0x5b   : > { %543 = vmatmul.bf16.gmra.mxu0 %v3785_v63 }
  0x5c   : > { %3945 = vmatmul.msk.bf16.gmra.mxu1 %vm471_vm0, %v3853_v0 }
  0x5d   : > { %805 = vmatmul.bf16.gmra.mxu2 %v3777_v57  ;;  %v3833_v57 = vor.u32 %v4262_v50, %v3832_v49  ;;  %v4080_v49 = vld [vmem:[%s4587_s16 + $0x60] sm:$0xf]  ;;  %v4308_v50 = vld [vmem:[%s4587_s16 + $0x64] sm:$0xf0] }
  0x5e   : > { %4017 = vmatmul.msk.bf16.gmra.mxu3 %vm471_vm0, %v3845_v58  ;;  %v4057_v58 = vor.u32 %v4302_v52, %v4056_v51  ;;  %v4307_v51 = vld [vmem:[%s4587_s16 + $0x64] sm:$0xf]  ;;  %v4082_v52 = vld [vmem:[%s4587_s16 + $0x68] sm:$0xf0] }
  0x5f   : > { %v4085_v3 = vor.u32 %v4307_v51, %v4082_v52  ;;  %v3872_v52 = vld [vmem:[%s4587_s16 + $0xf0] sm:$0xf] }
  0x6b   : > { %548 = vmatmul.bf16.gmra.mxu0 %v3793_v7 }
  0x6c   : > { %3946 = vmatmul.msk.bf16.gmra.mxu1 %vm471_vm0, %v3861_v8 }
  0x6d   : > { %810 = vmatmul.bf16.gmra.mxu2 %v3785_v63 }
  0x6e   : > { %4018 = vmatmul.msk.bf16.gmra.mxu3 %vm471_vm0, %v3853_v0 }
  0x7b   : > { %553 = vmatmul.bf16.gmra.mxu0 %v3801_v14 }
  0x7c   : > { %3947 = vmatmul.msk.bf16.gmra.mxu1 %vm471_vm0, %v3869_v15 }
  0x7d   : > { %815 = vmatmul.bf16.gmra.mxu2 %v3793_v7  ;;  %v4066_v7 = vld [vmem:[%s4587_s16 + $0x48] sm:$0xf0] }
  0x7e   : > { %4019 = vmatmul.msk.bf16.gmra.mxu3 %vm471_vm0, %v3861_v8 }
  0x8b   : > { %558 = vmatmul.bf16.gmra.mxu0 %v3809_v21 }
  0x8c   : > { %3948 = vmatmul.msk.bf16.gmra.mxu1 %vm471_vm0, %v3877_v22 }
  0x8d   : > { %820 = vmatmul.bf16.gmra.mxu2 %v3801_v14  ;;  %v4069_v14 = vor.u32 %v4303_v6, %v4066_v7 }
  0x8e   : > { %4020 = vmatmul.msk.bf16.gmra.mxu3 %vm471_vm0, %v3869_v15 }
  0x99   : > { %v4734_v30 = vpop.f32.mrf.mxu1 }
  0x9b   : > { %563 = vmatmul.bf16.gmra.mxu0 %v3817_v28 }
  0x9c   : > { %3949 = vmatmul.msk.bf16.gmra.mxu1 %vm471_vm0, %v3885_v29 }
  0x9d   : > { %825 = vmatmul.bf16.gmra.mxu2 %v3809_v21  ;;  %v4072_v21 = vld [vmem:[%s4587_s16 + $0x50] sm:$0xf] }
  0x9e   : > { %4021 = vmatmul.msk.bf16.gmra.mxu3 %vm471_vm0, %v3877_v22  ;;  %v4306_v22 = vld [vmem:[%s4587_s16 + $0x54] sm:$0xf0] }
  0x9f   : > { %v4073_v29 = vor.u32 %v4306_v22, %v4072_v21  ;;  %v4090_v21 = vld [vmem:[%s4587_s16 + $0x78] sm:$0xf0] }
  0xa1   : > { %v4738_v31 = vpop.f32.mrf.mxu3  ;;  %v4740_v32 = vpop.f32.mrf.mxu1 }
  0xa8   : > { %v4750_v42 = vpop.f32.mrf.mxu0 }
  0xa9   : > { %v4748_v39 = vpop.f32.mrf.mxu3  ;;  %v4752_v43 = vpop.f32.mrf.mxu1 }
  0xab   : > { %568 = vmatmul.bf16.gmra.mxu0 %v3825_v40 }
  0xac   : > { %1289 = vmatmul.bf16.vlgmr.msrb.gmra.mxu1 %v4049_v41  ;;  %v3856_v41 = vld [vmem:[%s4587_s16 + $0xd0] sm:$0xf] }
  0xad   : > { %830 = vmatmul.bf16.gmra.mxu2 %v3817_v28  ;;  %v3849_v28 = vor.u32 %v4266_v20, %v3848_v19  ;;  %v4310_v19 = vld [vmem:[%s4587_s16 + $0x74] sm:$0xf0]  ;;  %v4309_v20 = vld [vmem:[%s4587_s16 + $0x74] sm:$0xf] }
  0xae   : > { %4222 = vmatmul.msk.bf16.vlgmr.msrb.gmra.mxu3 %vm471_vm0, %v4053_v44  ;;  %v4268_v44 = vld [vmem:[%s4587_s16 + $0xd4] sm:$0xf0] }
  0xb0   : > { %v4755_v45 = vpop.f32.mrf.mxu2  ;;  %v4759_v47 = vpop.f32.mrf.mxu0 }
  0xb1   : > { %v4757_v46 = vpop.f32.mrf.mxu3  ;;  %v4761_v48 = vpop.f32.mrf.mxu1 }
  0xb8   : > { %v4769_v55 = vpop.f32.mrf.mxu2  ;;  %v4773_v59 = vpop.f32.mrf.mxu0 }
  0xb9   : > { %v4771_v56 = vpop.f32.mrf.mxu3  ;;  %v4775_v60 = vpop.f32.mrf.mxu1 }
  0xbb   : > { %573 = vmatmul.bf16.gmra.mxu0 %v3833_v57 }
  0xbc   : > { %1294 = vmatmul.bf16.gmra.mxu1 %v4057_v58  ;;  %v4081_v58 = vor.u32 %v4308_v50, %v4080_v49 }
  0xbd   : > { %835 = vmatmul.bf16.gmra.mxu2 %v3825_v40 }
  0xbe   : > { %4223 = vmatmul.msk.bf16.gmra.mxu3 %vm471_vm0, %v4061_v61 }
  0xc0   : > { %v4778_v62 = vpop.f32.mrf.mxu2  ;;  %v4782_v0 = vpop.f32.mrf.mxu0 }
  0xc1   : > { %v4780_v63 = vpop.f32.mrf.mxu3  ;;  %v4784_v1 = vpop.f32.mrf.mxu1 }
  0xc8   : > { %v4792_v8 = vpop.f32.mrf.mxu2  ;;  %v4796_v12 = vpop.f32.mrf.mxu0 }
  0xc9   : > { %v4794_v9 = vpop.f32.mrf.mxu3  ;;  %v4798_v13 = vpop.f32.mrf.mxu1 }
  0xcb   : > { %578 = vmatmul.bf16.gmra.mxu0 %v3841_v10 }
  0xcc   : > { %1299 = vmatmul.bf16.gmra.mxu1 %v4065_v11  ;;  %v4270_v11 = vld [vmem:[%s4587_s16 + $0xe4] sm:$0xf0] }
  0xcd   : > { %840 = vmatmul.bf16.gmra.mxu2 %v3833_v57  ;;  %v3857_v57 = vor.u32 %v4268_v44, %v3856_v41  ;;  %v4093_v41 = vor.u32 %v4309_v20, %v4090_v21 }
  0xce   : > { %4224 = vmatmul.msk.bf16.gmra.mxu3 %vm471_vm0, %v4069_v14  ;;  %v4088_v14 = vld [vmem:[%s4587_s16 + $0x70] sm:$0xf] }
  0xd0   : > { %v4801_v15 = vpop.f32.mrf.mxu2  ;;  %v4805_v17 = vpop.f32.mrf.mxu0 }
  0xd1   : > { %v4803_v16 = vpop.f32.mrf.mxu3  ;;  %6237 = vst [vmem:[#allocation2_spill] sm:$0xff] %v4805_v17  ;;  %v4807_v18 = vpop.f32.mrf.mxu1 }
  0xd8   : > { %v4815_v26 = vpop.f32.mrf.mxu2  ;;  %v4819_v33 = vpop.f32.mrf.mxu0 }
  0xd9   : > { %6238 = vst [vmem:[#allocation3_spill] sm:$0xff] %v4815_v26  ;;  %v4817_v27 = vpop.f32.mrf.mxu3  ;;  %v4821_v34 = vpop.f32.mrf.mxu1 }
  0xda   : > { %6239 = vst [vmem:[#allocation4_spill] sm:$0xff] %v4819_v33 }
  0xdb   : > { %583 = vmatmul.bf16.gmra.mxu0 %v3849_v28 }
  0xdc   : > { %1304 = vmatmul.bf16.gmra.mxu1 %v4073_v29 }
  0xdd   : > { %845 = vmatmul.bf16.gmra.mxu2 %v3841_v10  ;;  %v3864_v10 = vld [vmem:[%s4587_s16 + $0xe0] sm:$0xf] }
  0xde   : > { %4225 = vmatmul.msk.bf16.gmra.mxu3 %vm471_vm0, %v4077_v35  ;;  %v3865_v25 = vor.u32 %v4270_v11, %v3864_v10  ;;  %v4312_v10 = vld [vmem:[%s4587_s16 + $0x84] sm:$0xf0]  ;;  %v4311_v11 = vld [vmem:[%s4587_s16 + $0x84] sm:$0xf] }
  0xe0   : > { %v4824_v36 = vpop.f32.mrf.mxu2  ;;  %v4828_v38 = vpop.f32.mrf.mxu0 }
  0xe1   : > { %6240 = vst [vmem:[#allocation5_spill] sm:$0xff] %v4824_v36  ;;  %v4826_v37 = vpop.f32.mrf.mxu3  ;;  %v4830_v40 = vpop.f32.mrf.mxu1 }
  0xe2   : > { %6241 = vst [vmem:[#allocation6_spill] sm:$0xff] %v4826_v37 }
  0xe3   : > { %6242 = vst [vmem:[#allocation7_spill] sm:$0xff] %v4828_v38 }
  0xe8   : > { %v4838_v53 = vpop.f32.mrf.mxu2  ;;  %v4842_v61 = vpop.f32.mrf.mxu0 }
  0xe9   : > { %6243 = vst [vmem:[#allocation8_spill] sm:$0xff] %v4838_v53  ;;  %v4840_v54 = vpop.f32.mrf.mxu3  ;;  %v4844_v2 = vpop.f32.mrf.mxu1 }
  0xea   : > { %6244 = vst [vmem:[#allocation9_spill] sm:$0xff] %v4840_v54 }
  0xeb   : > { %6245 = vst [vmem:[#allocation10_spill] sm:$0xff] %v4842_v61  ;;  %588 = vmatmul.bf16.gmra.mxu0 %v3857_v57 }
  0xec   : > { %1309 = vmatmul.bf16.gmra.mxu1 %v4081_v58  ;;  %v4272_v58 = vld [vmem:[%s4587_s16 + $0xf4] sm:$0xf0] }
  0xed   : > { %850 = vmatmul.bf16.gmra.mxu2 %v3849_v28  ;;  %v4089_v28 = vor.u32 %v4310_v19, %v4088_v14  ;;  %v4098_v14 = vld [vmem:[%s4587_s16 + $0x88] sm:$0xf0]  ;;  %v3873_v20 = vor.u32 %v4272_v58, %v3872_v52  ;;  %v3880_v58 = vld [vmem:[%s4587_s16 + $0x100] sm:$0xf] }
  0xee   : > { %4226 = vmatmul.msk.bf16.gmra.mxu3 %vm471_vm0, %v4085_v3  ;;  %v4096_v3 = vld [vmem:[%s4587_s16 + $0x80] sm:$0xf] }
  0xef   : > { %v4097_v21 = vor.u32 %v4312_v10, %v4096_v3  ;;  %v4286_v3 = vld [vmem:[%s4587_s16 + $0x104] sm:$0xf0]  ;;  %v4104_v10 = vld [vmem:[%s4587_s16 + $0x90] sm:$0xf] }
  0xf0   : > { %v4847_v4 = vpop.f32.mrf.mxu2  ;;  %v4851_v6 = vpop.f32.mrf.mxu0 }
  0xf1   : > { %6246 = vst [vmem:[#allocation11_spill] sm:$0xff] %v4847_v4  ;;  %v4849_v5 = vpop.f32.mrf.mxu3  ;;  %v4853_v7 = vpop.f32.mrf.mxu1  ;;  %v4315_v4 = vld [vmem:[%s4587_s16 + $0xa4] sm:$0xf] }
  0xf2   : > { %6247 = vst [vmem:[#allocation12_spill] sm:$0xff] %v4849_v5 }
  0xf3   : > { %6248 = vst [vmem:[#allocation13_spill] sm:$0xff] %v4851_v6  ;;  %v4316_v6 = vld [vmem:[%s4587_s16 + $0xa4] sm:$0xf0] }
  0xf8   : > { %v4861_v22 = vpop.f32.mrf.mxu2  ;;  %v4865_v29 = vpop.f32.mrf.mxu0 }
  0xf9   : > { %6249 = vst [vmem:[#allocation14_spill] sm:$0xff] %v4861_v22  ;;  %v4863_v24 = vpop.f32.mrf.mxu3  ;;  %v4867_v35 = vpop.f32.mrf.mxu1  ;;  %v4106_v22 = vld [vmem:[%s4587_s16 + $0x98] sm:$0xf0] }
  0xfa   : > { %6250 = vst [vmem:[#allocation15_spill] sm:$0xff] %v4863_v24 }
  0xfb   : > { %6251 = vst [vmem:[#allocation16_spill] sm:$0xff] %v4865_v29  ;;  %593 = vmatmul.bf16.gmra.mxu0 %v3865_v25  ;;  %v4313_v29 = vld [vmem:[%s4587_s16 + $0x94] sm:$0xf] }
  0xfc   : > { %1314 = vmatmul.bf16.gmra.mxu1 %v4089_v28 }
  0xfd   : > { %855 = vmatmul.bf16.gmra.mxu2 %v3857_v57 }
  0xfe   : > { %4227 = vmatmul.msk.bf16.gmra.mxu3 %vm471_vm0, %v4093_v41 }
 0x100   : > { %v4870_v44 = vpop.f32.mrf.mxu2  ;;  %v4874_v50 = vpop.f32.mrf.mxu0 }
 0x101   : > { %6252 = vst [vmem:[#allocation17_spill] sm:$0xff] %v4870_v44  ;;  %v4872_v49 = vpop.f32.mrf.mxu3  ;;  %v4876_v51 = vpop.f32.mrf.mxu1 }
 0x102   : > { %6253 = vst [vmem:[#allocation18_spill] sm:$0xff] %v4872_v49 }
 0x103   : > { %6254 = vst [vmem:[#allocation19_spill] sm:$0xff] %v4874_v50  ;;  %v4101_v50 = vor.u32 %v4311_v11, %v4098_v14 }
 0x108   : > { %v4884_v19 = vpop.f32.mrf.mxu2  ;;  %v4888_v28 = vpop.f32.mrf.mxu0 }
 0x109   : > { %6255 = vst [vmem:[#allocation20_spill] sm:$0xff] %v4884_v19  ;;  %v4886_v57 = vpop.f32.mrf.mxu3  ;;  %v4890_v41 = vpop.f32.mrf.mxu1 }
 0x10a   : > { %6256 = vst [vmem:[#allocation21_spill] sm:$0xff] %v4886_v57 }
 0x10b   : > { %6257 = vst [vmem:[#allocation22_spill] sm:$0xff] %v4888_v28  ;;  %598 = vmatmul.bf16.gmra.mxu0 %v3873_v20  ;;  %v4314_v28 = vld [vmem:[%s4587_s16 + $0x94] sm:$0xf0] }
 0x10c   : > { %1319 = vmatmul.bf16.gmra.mxu1 %v4097_v21 }
 0x10d   : > { %860 = vmatmul.bf16.gmra.mxu2 %v3865_v25  ;;  %v3881_v25 = vor.u32 %v4286_v3, %v3880_v58 }
 0x10e   : > { %4228 = vmatmul.msk.bf16.gmra.mxu3 %vm471_vm0, %v4101_v50  ;;  %v4105_v50 = vor.u32 %v4314_v28, %v4104_v10 }
 0x110   : > { %v4893_v19 = vpop.f32.mrf.mxu2  ;;  %v4897_v57 = vpop.f32.mrf.mxu0 }
 0x111   : > { %6258 = vst [vmem:[#allocation23_spill] sm:$0xff] %v4893_v19  ;;  %v4895_v44 = vpop.f32.mrf.mxu3  ;;  %v4899_v52 = vpop.f32.mrf.mxu1  ;;  %v4109_v19 = vor.u32 %v4313_v29, %v4106_v22  ;;  %v3762_v22 = vld [vmem:[%s4587_s16 + $0x18] sm:$0xf0]  ;;  %v4241_v29 = vld [vmem:[%s4587_s16 + $0x4] sm:$0xf] }
 0x112   : > { %6259 = vst [vmem:[#allocation24_spill] sm:$0xff] %v4895_v44  ;;  %v4243_v44 = vld [vmem:[%s4587_s16 + $0x14] sm:$0xf] }
 0x113   : > { %6260 = vst [vmem:[#allocation25_spill] sm:$0xff] %v4897_v57 }
 0x118   : > { %v4907_v11 = vpop.f32.mrf.mxu2  ;;  %v564_v21 = vpop.f32.mrf.mxu0 }
 0x119   : > { %6261 = vst [vmem:[#allocation26_spill] sm:$0xff] %v4907_v11  ;;  %v4909_v14 = vpop.f32.mrf.mxu3  ;;  %v4911_v57 = vpop.f32.mrf.mxu1  ;;  %v654_v11 = vadd.f32 %v4734_v30, %v564_v21  ;;  %v3765_v21 = vor.u32 %v4243_v44, %v3762_v22 }
 0x11a   : > { %6262 = vst [vmem:[#allocation27_spill] sm:$0xff] %v4909_v14 }
 0x11b   : > { %603 = vmatmul.bf16.gmra.mxu0 %v3881_v25  ;;  %v4112_v25 = vld [vmem:[%s4587_s16 + $0xa0] sm:$0xf] }
 0x11c   : > { %1324 = vmatmul.bf16.gmra.mxu1 %v4105_v50  ;;  %v3954_v50 = vld [vmem:[%s4587_s16 + $0x8] sm:$0xf0] }
 0x11d   : > { %865 = vmatmul.bf16.gmra.mxu2 %v3873_v20  ;;  %v4114_v20 = vld [vmem:[%s4587_s16 + $0xa8] sm:$0xf0]  ;;  %v3957_v24 = vor.u32 %v4241_v29, %v3954_v50  ;;  %v4120_v50 = vld [vmem:[%s4587_s16 + $0xb0] sm:$0xf] }
 0x11e   : > { %4229 = vmatmul.msk.bf16.gmra.mxu3 %vm471_vm0, %v4109_v19  ;;  %v4117_v5 = vor.u32 %v4315_v4, %v4114_v20  ;;  %v4245_v4 = vld [vmem:[%s4587_s16 + $0x24] sm:$0xf]  ;;  %v4318_v20 = vld [vmem:[%s4587_s16 + $0xb4] sm:$0xf0] }
 0x120   : > { %v826_v58 = vpop.f32.mrf.mxu2  ;;  %v566_v10 = vpop.f32.mrf.mxu0 }
 0x121   : > { %v4915_v3 = vpop.f32.mrf.mxu3  ;;  %v4917_v28 = vadd.f32 %v826_v58, %v654_v11  ;;  %v4919_v14 = vpop.f32.mrf.mxu1  ;;  %v656_v19 = vadd.f32 %v4740_v32, %v566_v10 }
 0x122   : > { %6263 = vst [vmem:[#allocation28_spill] sm:$0xff] %v4915_v3  ;;  %v4113_v3 = vor.u32 %v4316_v6, %v4112_v25  ;;  %v3770_v25 = vld [vmem:[%s4587_s16 + $0x28] sm:$0xf0] }
 0x123   : > { %v3773_v53 = vor.u32 %v4245_v4, %v3770_v25 }
 0x128   : > { %v828_v49 = vpop.f32.mrf.mxu2  ;;  %v569_v58 = vpop.f32.mrf.mxu0 }
 0x129   : > { %v4930_v30 = vpop.f32.mrf.mxu3  ;;  %v4932_v11 = vadd.f32 %v828_v49, %v656_v19  ;;  %v1290_v61 = vpop.f32.mrf.mxu1  ;;  %v659_v32 = vadd.f32 %v4752_v43, %v569_v58  ;;  %v4317_v19 = vld [vmem:[%s4587_s16 + $0xb4] sm:$0xf]  ;;  %v4121_v43 = vor.u32 %v4318_v20, %v4120_v50 }
 0x12a   : > { %6264 = vst [vmem:[#allocation29_spill] sm:$0xff] %v4930_v30  ;;  %v4247_v20 = vld [vmem:[%s4587_s16 + $0x34] sm:$0xf] }
 0x12b   : > { %3934 = vmatmul.msk.bf16.vlgmr.msrb.gmra.mxu0 %vm471_vm0, %v3765_v21 }
 0x12c   : > { %1329 = vmatmul.bf16.gmra.mxu1 %v4113_v3  ;;  %v4122_v3 = vld [vmem:[%s4587_s16 + $0xb8] sm:$0xf0] }
 0x12d   : > { %4006 = vmatmul.msk.bf16.vlgmr.msrb.gmra.mxu2 %vm471_vm0, %v3957_v24 }
 0x12e   : > { %4230 = vmatmul.msk.bf16.gmra.mxu3 %vm471_vm0, %v4117_v5 }
 0x130   : > { %v831_v6 = vpop.f32.mrf.mxu2  ;;  %v571_v22 = vpop.f32.mrf.mxu0 }
 0x131   : > { %v1379_v44 = vpop.f32.mrf.mxu3  ;;  %v4938_v49 = vadd.f32 %v831_v6, %v659_v32  ;;  %v1292_v29 = vpop.f32.mrf.mxu1  ;;  %v661_v24 = vadd.f32 %v4761_v48, %v571_v22 }
 0x132   : > { %v4940_v10 = vadd.f32 %v1379_v44, %v1290_v61  ;;  %v4125_v44 = vor.u32 %v4317_v19, %v4122_v3  ;;  %v3778_v19 = vld [vmem:[%s4587_s16 + $0x38] sm:$0xf0]  ;;  %v4128_v3 = vld [vmem:[%s4587_s16 + $0xc0] sm:$0xf] }
 0x133   : > { %v3781_v36 = vor.u32 %v4247_v20, %v3778_v19 }
 0x138   : > { %v833_v30 = vpop.f32.mrf.mxu2  ;;  %v574_v61 = vpop.f32.mrf.mxu0 }
 0x139   : > { %v1381_v5 = vpop.f32.mrf.mxu3  ;;  %v4949_v58 = vadd.f32 %v833_v30, %v661_v24  ;;  %v1295_v6 = vpop.f32.mrf.mxu1  ;;  %v664_v48 = vadd.f32 %v4775_v60, %v574_v61  ;;  %v4320_v24 = vld [vmem:[%s4587_s16 + $0xc4] sm:$0xf0] }
 0x13a   : > { %v4951_v32 = vadd.f32 %v1381_v5, %v1292_v29  ;;  %v4319_v5 = vld [vmem:[%s4587_s16 + $0xc4] sm:$0xf]  ;;  %v4129_v60 = vor.u32 %v4320_v24, %v4128_v3 }
 0x13b   : > { %3935 = vmatmul.msk.bf16.gmra.mxu0 %vm471_vm0, %v3773_v53  ;;  %v4249_v24 = vld [vmem:[%s4587_s16 + $0x44] sm:$0xf] }
 0x13c   : > { %1334 = vmatmul.bf16.gmra.mxu1 %v4121_v43  ;;  %v4130_v43 = vld [vmem:[%s4587_s16 + $0xc8] sm:$0xf0] }
 0x13d   : > { %4007 = vmatmul.msk.bf16.gmra.mxu2 %vm471_vm0, %v3765_v21 }
 0x13e   : > { %4231 = vmatmul.msk.bf16.gmra.mxu3 %vm471_vm0, %v4125_v44 }
 0x140   : > { %v836_v30 = vpop.f32.mrf.mxu2  ;;  %v576_v25 = vpop.f32.mrf.mxu0 }
 0x141   : > { %v1384_v22 = vpop.f32.mrf.mxu3  ;;  %v4957_v29 = vadd.f32 %v836_v30, %v664_v48  ;;  %v1297_v50 = vpop.f32.mrf.mxu1  ;;  %v666_v21 = vadd.f32 %v4784_v1, %v576_v25 }
 0x142   : > { %v4959_v4 = vadd.f32 %v1384_v22, %v1295_v6  ;;  %v4133_v22 = vor.u32 %v4319_v5, %v4130_v43  ;;  %v3786_v5 = vld [vmem:[%s4587_s16 + $0x48] sm:$0xf0]  ;;  %v4136_v43 = vld [vmem:[%s4587_s16 + $0xd0] sm:$0xf] }
 0x143   : > { %v3789_v26 = vor.u32 %v4249_v24, %v3786_v5 }
 0x148   : > { %v838_v38 = vpop.f32.mrf.mxu2  ;;  %v579_v6 = vpop.f32.mrf.mxu0 }
 0x149   : > { %v1386_v44 = vpop.f32.mrf.mxu3  ;;  %v4968_v61 = vadd.f32 %v838_v38, %v666_v21  ;;  %v1300_v30 = vpop.f32.mrf.mxu1  ;;  %v669_v1 = vadd.f32 %v4798_v13, %v579_v6  ;;  %v4322_v21 = vld [vmem:[%s4587_s16 + $0xd4] sm:$0xf0] }
 0x14a   : > { %v4970_v48 = vadd.f32 %v1386_v44, %v1297_v50  ;;  %v4321_v44 = vld [vmem:[%s4587_s16 + $0xd4] sm:$0xf]  ;;  %v4137_v13 = vor.u32 %v4322_v21, %v4136_v43 }
 0x14b   : > { %3936 = vmatmul.msk.bf16.gmra.mxu0 %vm471_vm0, %v3781_v36  ;;  %v4251_v21 = vld [vmem:[%s4587_s16 + $0x54] sm:$0xf] }
 0x14c   : > { %1339 = vmatmul.bf16.gmra.mxu1 %v4129_v60  ;;  %v4138_v60 = vld [vmem:[%s4587_s16 + $0xd8] sm:$0xf0] }
 0x14d   : > { %4008 = vmatmul.msk.bf16.gmra.mxu2 %vm471_vm0, %v3773_v53 }
 0x14e   : > { %4232 = vmatmul.msk.bf16.gmra.mxu3 %vm471_vm0, %v4133_v22 }
 0x150   : > { %v841_v38 = vpop.f32.mrf.mxu2  ;;  %v581_v19 = vpop.f32.mrf.mxu0 }
 0x151   : > { %v1389_v25 = vpop.f32.mrf.mxu3  ;;  %v4976_v50 = vadd.f32 %v841_v38, %v669_v1  ;;  %v1302_v3 = vpop.f32.mrf.mxu1  ;;  %v671_v53 = vadd.f32 %v4807_v18, %v581_v19 }
 0x152   : > { %v4978_v20 = vadd.f32 %v1389_v25, %v1300_v30  ;;  %v4141_v25 = vor.u32 %v4321_v44, %v4138_v60  ;;  %v3794_v44 = vld [vmem:[%s4587_s16 + $0x58] sm:$0xf0]  ;;  %v4144_v60 = vld [vmem:[%s4587_s16 + $0xe0] sm:$0xf] }
 0x153   : > { %v3797_v17 = vor.u32 %v4251_v21, %v3794_v44 }
 0x158   : > { %v843_v33 = vpop.f32.mrf.mxu2  ;;  %v584_v30 = vpop.f32.mrf.mxu0 }
 0x159   : > { %v1391_v22 = vpop.f32.mrf.mxu3  ;;  %v4987_v6 = vadd.f32 %v843_v33, %v671_v53  ;;  %v1305_v38 = vpop.f32.mrf.mxu1  ;;  %v674_v18 = vadd.f32 %v4821_v34, %v584_v30  ;;  %v4324_v53 = vld [vmem:[%s4587_s16 + $0xe4] sm:$0xf0] }
 0x15a   : > { %v4989_v1 = vadd.f32 %v1391_v22, %v1302_v3  ;;  %v4323_v22 = vld [vmem:[%s4587_s16 + $0xe4] sm:$0xf]  ;;  %v4145_v34 = vor.u32 %v4324_v53, %v4144_v60 }
 0x15b   : > { %3937 = vmatmul.msk.bf16.gmra.mxu0 %vm471_vm0, %v3789_v26  ;;  %v4253_v53 = vld [vmem:[%s4587_s16 + $0x64] sm:$0xf] }
 0x15c   : > { %6265 = vst [vmem:[#allocation30_spill] sm:$0xff] %v4989_v1  ;;  %1344 = vmatmul.bf16.gmra.mxu1 %v4137_v13  ;;  %v4146_v13 = vld [vmem:[%s4587_s16 + $0xe8] sm:$0xf0] }
 0x15d   : > { %4009 = vmatmul.msk.bf16.gmra.mxu2 %vm471_vm0, %v3781_v36 }
 0x15e   : > { %4233 = vmatmul.msk.bf16.gmra.mxu3 %vm471_vm0, %v4141_v25 }
 0x160   : > { %v846_v33 = vpop.f32.mrf.mxu2  ;;  %v586_v5 = vpop.f32.mrf.mxu0 }
 0x161   : > { %v1394_v19 = vpop.f32.mrf.mxu3  ;;  %v4995_v3 = vadd.f32 %v846_v33, %v674_v18  ;;  %v1307_v43 = vpop.f32.mrf.mxu1  ;;  %v676_v36 = vadd.f32 %v4830_v40, %v586_v5 }
 0x162   : > { %v4997_v24 = vadd.f32 %v1394_v19, %v1305_v38  ;;  %v4149_v19 = vor.u32 %v4323_v22, %v4146_v13  ;;  %v3802_v22 = vld [vmem:[%s4587_s16 + $0x68] sm:$0xf0]  ;;  %v4152_v13 = vld [vmem:[%s4587_s16 + $0xf0] sm:$0xf] }
 0x164   : > { %6266 = vst [vmem:[#allocation31_spill] sm:$0xff] %v4997_v24  ;;  %v3805_v24 = vor.u32 %v4253_v53, %v3802_v22 }
 0x168   : > { %v848_v1 = vpop.f32.mrf.mxu2  ;;  %v589_v38 = vpop.f32.mrf.mxu0 }
 0x169   : > { %v1396_v25 = vpop.f32.mrf.mxu3  ;;  %v5006_v30 = vadd.f32 %v848_v1, %v676_v36  ;;  %v1310_v33 = vpop.f32.mrf.mxu1  ;;  %v679_v40 = vadd.f32 %v4844_v2, %v589_v38  ;;  %v4326_v36 = vld [vmem:[%s4587_s16 + $0xf4] sm:$0xf0] }
 0x16a   : > { %v5008_v18 = vadd.f32 %v1396_v25, %v1307_v43  ;;  %v4325_v25 = vld [vmem:[%s4587_s16 + $0xf4] sm:$0xf]  ;;  %v4153_v2 = vor.u32 %v4326_v36, %v4152_v13  ;;  %v4160_v36 = vld [vmem:[%s4587_s16 + $0x100] sm:$0xf] }
 0x16b   : > { %6267 = vst [vmem:[#allocation32_spill] sm:$0xff] %v5006_v30  ;;  %3938 = vmatmul.msk.bf16.gmra.mxu0 %vm471_vm0, %v3797_v17 }
 0x16c   : > { %6268 = vst [vmem:[#allocation33_spill] sm:$0xff] %v5008_v18  ;;  %1349 = vmatmul.bf16.gmra.mxu1 %v4145_v34  ;;  %v4154_v34 = vld [vmem:[%s4587_s16 + $0xf8] sm:$0xf0] }
 0x16d   : > { %4010 = vmatmul.msk.bf16.gmra.mxu2 %vm471_vm0, %v3789_v26 }
 0x16e   : > { %4234 = vmatmul.msk.bf16.gmra.mxu3 %vm471_vm0, %v4149_v19 }
 0x170   : > { %v851_v1 = vpop.f32.mrf.mxu2  ;;  %v591_v44 = vpop.f32.mrf.mxu0 }
 0x171   : > { %v1399_v5 = vpop.f32.mrf.mxu3  ;;  %v5014_v43 = vadd.f32 %v851_v1, %v679_v40  ;;  %v1312_v60 = vpop.f32.mrf.mxu1  ;;  %v681_v26 = vadd.f32 %v4853_v7, %v591_v44 }
 0x172   : > { %v5016_v21 = vadd.f32 %v1399_v5, %v1310_v33  ;;  %v4157_v5 = vor.u32 %v4325_v25, %v4154_v34  ;;  %v4327_v25 = vld [vmem:[%s4587_s16 + $0x104] sm:$0xf]  ;;  %v4162_v34 = vld [vmem:[%s4587_s16 + $0x108] sm:$0xf0] }
 0x173   : > { %6269 = vst [vmem:[#allocation34_spill] sm:$0xff] %v5014_v43 }
 0x174   : > { %6270 = vst [vmem:[#allocation35_spill] sm:$0xff] %v5016_v21 }
 0x178   : > { %v853_v18 = vpop.f32.mrf.mxu2  ;;  %v594_v33 = vpop.f32.mrf.mxu0 }
 0x179   : > { %v1401_v19 = vpop.f32.mrf.mxu3  ;;  %v5025_v38 = vadd.f32 %v853_v18, %v681_v26  ;;  %v1315_v1 = vpop.f32.mrf.mxu1  ;;  %v684_v7 = vadd.f32 %v4867_v35, %v594_v33  ;;  %v4328_v26 = vld [vmem:[%s4587_s16 + $0x104] sm:$0xf0] }
 0x17a   : > { %v5027_v40 = vadd.f32 %v1401_v19, %v1312_v60 }
 0x17b   : > { %6271 = vst [vmem:[#allocation36_spill] sm:$0xff] %v5025_v38  ;;  %3939 = vmatmul.msk.bf16.gmra.mxu0 %vm471_vm0, %v3805_v24 }
 0x17c   : > { %6272 = vst [vmem:[#allocation37_spill] sm:$0xff] %v5027_v40  ;;  %1354 = vmatmul.bf16.gmra.mxu1 %v4153_v2  ;;  %v4161_v40 = vor.u32 %v4328_v26, %v4160_v36 }
 0x17d   : > { %4011 = vmatmul.msk.bf16.gmra.mxu2 %vm471_vm0, %v3797_v17 }
 0x17e   : > { %4235 = vmatmul.msk.bf16.gmra.mxu3 %vm471_vm0, %v4157_v5 }
 0x180   : > { %v856_v18 = vpop.f32.mrf.mxu2  ;;  %v596_v22 = vpop.f32.mrf.mxu0 }
 0x181   : > { %v1404_v44 = vpop.f32.mrf.mxu3  ;;  %v5033_v53 = vadd.f32 %v856_v18, %v684_v7  ;;  %v1317_v13 = vpop.f32.mrf.mxu1  ;;  %v686_v19 = vadd.f32 %v4876_v51, %v596_v22  ;;  %v4165_v7 = vor.u32 %v4327_v25, %v4162_v34  ;;  %v4330_v25 = vld [vmem:[%s4587_s16 + $0x114] sm:$0xf0]  ;;  %v4329_v34 = vld [vmem:[%s4587_s16 + $0x114] sm:$0xf] }
 0x182   : > { %v5035_v60 = vadd.f32 %v1404_v44, %v1315_v1 }
 0x183   : > { %6273 = vst [vmem:[#allocation38_spill] sm:$0xff] %v5033_v53 }
 0x184   : > { %6274 = vst [vmem:[#allocation39_spill] sm:$0xff] %v5035_v60 }
 0x188   : > { %v858_v2 = vpop.f32.mrf.mxu2  ;;  %v599_v33 = vpop.f32.mrf.mxu0 }
 0x189   : > { %v1406_v17 = vpop.f32.mrf.mxu3  ;;  %v5042_v5 = vadd.f32 %v858_v2, %v686_v19  ;;  %v1320_v1 = vpop.f32.mrf.mxu1  ;;  %v689_v51 = vadd.f32 %v4890_v41, %v599_v33  ;;  %v4168_v19 = vld [vmem:[%s4587_s16 + $0x110] sm:$0xf]  ;;  %v4170_v2 = vld [vmem:[%s4587_s16 + $0x118] sm:$0xf0] }
 0x18a   : > { %v5044_v35 = vadd.f32 %v1406_v17, %v1317_v13  ;;  %v4169_v17 = vor.u32 %v4330_v25, %v4168_v19 }
 0x18b   : > { %6275 = vst [vmem:[#allocation40_spill] sm:$0xff] %v5042_v5  ;;  %3940 = vmatmul.msk.bf16.gmra.mxu0 %vm471_vm0, %v4618_v23 }
 0x18c   : > { %6276 = vst [vmem:[#allocation41_spill] sm:$0xff] %v5044_v35  ;;  %1359 = vmatmul.bf16.gmra.mxu1 %v4161_v40 }
 0x18d   : > { %4012 = vmatmul.msk.bf16.gmra.mxu2 %vm471_vm0, %v3805_v24 }
 0x18e   : > { %4236 = vmatmul.msk.bf16.gmra.mxu3 %vm471_vm0, %v4165_v7 }
 0x190   : > { %v861_v18 = vpop.f32.mrf.mxu2  ;;  %v601_v36 = vpop.f32.mrf.mxu0 }
 0x191   : > { %v1409_v44 = vpop.f32.mrf.mxu3  ;;  %v5051_v22 = vadd.f32 %v861_v18, %v689_v51  ;;  %v1322_v26 = vpop.f32.mrf.mxu1  ;;  %v691_v23 = vadd.f32 %v4899_v52, %v601_v36  ;;  %v4173_v51 = vor.u32 %v4329_v34, %v4170_v2  ;;  %v916_v52 = vadd.f32 %v4738_v31, %v4917_v28 }
 0x192   : > { %v5053_v13 = vadd.f32 %v1409_v44, %v1320_v1  ;;  %v918_v28 = vadd.f32 %v4748_v39, %v4932_v11 }
 0x193   : > { %6277 = vst [vmem:[#allocation42_spill] sm:$0xff] %v5051_v22 }
 0x194   : > { %6278 = vst [vmem:[#allocation43_spill] sm:$0xff] %v5053_v13 }
 0x198   : > { %v863_v40 = vpop.f32.mrf.mxu2  ;;  %v604_v33 = vpop.f32.mrf.mxu0 }
 0x199   : > { %v1411_v24 = vpop.f32.mrf.mxu3  ;;  %v5060_v7 = vadd.f32 %v863_v40, %v691_v23  ;;  %v1325_v1 = vpop.f32.mrf.mxu1  ;;  %v694_v18 = vadd.f32 %v4911_v57, %v604_v33 }
 0x19a   : > { %v5062_v41 = vadd.f32 %v1411_v24, %v1322_v26  ;;  %v5073_v26 = vld [vmem:[%s6234_s2] ss:$0 sm:$0xff] }
 0x19b   : > { %6279 = vst [vmem:[#allocation44_spill] sm:$0xff] %v5060_v7 }
 0x19c   : > { %6280 = vst [vmem:[#allocation45_spill] sm:$0xff] %v5062_v41  ;;  %1364 = vmatmul.bf16.gmra.mxu1 %v4169_v17 }
 0x19e   : > { %4237 = vmatmul.msk.bf16.gmra.mxu3 %vm471_vm0, %v4173_v51 }
 0x1a0   : > { %v866_v44 = vpop.f32.mrf.mxu2  ;;  %v606_v25 = vpop.f32.mrf.mxu0 }
 0x1a1   : > { %v1414_v13 = vpop.f32.mrf.mxu3  ;;  %v5068_v36 = vadd.f32 %v866_v44, %v694_v18  ;;  %v696_v23 = vadd.f32 %v4919_v14, %v606_v25  ;;  %v1327_v40 = vpop.f32.mrf.mxu1 }
 0x1a2   : > { %v1415_v19 = vadd.f32 %v1414_v13, %v1325_v1 }
 0x1a3   : > { %6281 = vst [vmem:[#allocation46_spill] sm:$0xff] %v5068_v36 }
 0x1a4   : > { %v1473_v34 = vadd.f32 %v1415_v19, %v916_v52 }
 0x1a6   : > { %v5076_v2 = vadd.f32 %v5073_v26, %v1473_v34 }
 0x1a8   : > { %v1541_v57 = vmul.f32 0.70710677, %v5076_v2  ;;  %v868_v24 = vpop.f32.mrf.mxu2  ;;  %v618_v51 = vpop.f32.mrf.mxu0 }
 0x1a9   : > { %v1416_v31 = vpop.f32.mrf.mxu3  ;;  %v5084_v17 = vadd.f32 %v868_v24, %v696_v23  ;;  %v619_v44 = vadd.f32 %v618_v51, %v4750_v42  ;;  %v921_v42 = vadd.f32 %v4757_v46, %v4938_v49 }
 0x1aa   : > { %v5082_v13 = vpack.c.bf16 %v1541_v57, %v1541_v57  ;;  %v1417_v33 = vadd.f32 %v1416_v31, %v1327_v40  ;;  %v1330_v31 = vpop.f32.mrf.mxu1 }
 0x1ab   : > { %6282 = vst [vmem:[#allocation47_spill] sm:$0xff] %v5084_v17  ;;  %v792_v39 = vadd.f32 %v4755_v45, %v619_v44 }
 0x1ac   : > { %v1605_v1 = vand.u32 2147450879, %v5082_v13  ;;  %v1474_v18 = vadd.f32 %v1417_v33, %v918_v28 }
 0x1ae   : > { %v1637_v52 = vunpack.c.l.bf16 %v1605_v1  ;;  %v5089_v14 = vadd.f32 %v5073_v26, %v1474_v18 }
 0x1b0   : > { %v1669_v19 = vmul.f32 0.328125, %v1637_v52  ;;  %v2789_v25 = vsub.f32 0.0, %v1637_v52  ;;  %v1542_v34 = vmul.f32 0.70710677, %v5089_v14  ;;  %v880_v11 = vpop.f32.mrf.mxu2  ;;  %v620_v33 = vpop.f32.mrf.mxu0 }
 0x1b1   : > { %v1419_v57 = vpop.f32.mrf.mxu3  ;;  %v881_v28 = vadd.f32 %v880_v11, %v792_v39  ;;  %v621_v45 = vadd.f32 %v620_v33, %v4759_v47 }
 0x1b2   : > { %v1701_v23 = vpack.c.bf16 %v1669_v19, %v1669_v19  ;;  %v2821_v40 = vpack.c.bf16 %v2789_v25, %v2789_v25  ;;  %v5093_v24 = vpack.c.bf16 %v1542_v34, %v1542_v34  ;;  %v1420_v51 = vadd.f32 %v1419_v57, %v1330_v31 }
 0x1b3   : > { %v1459_v17 = vadd.f32 %v4940_v10, %v881_v28  ;;  %v794_v10 = vadd.f32 %v4769_v55, %v621_v45 }
 0x1b4   : > { %v1733_v1 = vunpack.c.l.bf16 %v1701_v23  ;;  %v1606_v18 = vand.u32 2147450879, %v5093_v24  ;;  %v1475_v36 = vadd.f32 %v1420_v51, %v921_v42  ;;  %v2853_v19 = vunpack.c.l.bf16 %v2821_v40 }
 0x1b5   : > { %v5101_v34 = vadd.f32 %v5073_v26, %v1459_v17 }
 0x1b6   : > { %v1765_v44 = vadd.f32 1.0, %v1733_v1  ;;  %v1638_v25 = vunpack.c.l.bf16 %v1606_v18  ;;  %v5104_v39 = vadd.f32 %v5073_v26, %v1475_v36  ;;  %v2885_v28 = vmul.f32 %v2853_v19, %v1637_v52 }
 0x1b7   : > { %v1527_v57 = vmul.f32 0.70710677, %v5101_v34 }
 0x1b8   : > { %v1797_v11 = vpack.c.bf16 %v1765_v44, %v1765_v44  ;;  %v1670_v46 = vmul.f32 0.328125, %v1638_v25  ;;  %v2790_v49 = vsub.f32 0.0, %v1638_v25  ;;  %v1543_v23 = vmul.f32 0.70710677, %v5104_v39  ;;  %v882_v31 = vpop.f32.mrf.mxu2 }
 0x1b9   : > { %v5109_v42 = vpack.c.bf16 %v1527_v57, %v1527_v57  ;;  %v883_v36 = vadd.f32 %v882_v31, %v794_v10  ;;  %v2917_v41 = vpack.c.bf16 %v2885_v28, %v2885_v28  ;;  %v1421_v31 = vpop.f32.mrf.mxu3 }
 0x1ba   : > { %v1829_v47 = vunpack.c.l.bf16 %v1797_v11  ;;  %v1702_v40 = vpack.c.bf16 %v1670_v46, %v1670_v46  ;;  %v2822_v33 = vpack.c.bf16 %v2790_v49, %v2790_v49  ;;  %v5111_v17 = vpack.c.bf16 %v1543_v23, %v1543_v23 }
 0x1bb   : > { %v1591_v18 = vand.u32 2147450879, %v5109_v42  ;;  %v1460_v55 = vadd.f32 %v4951_v32, %v883_v36 }
 0x1bc   : > { %4361 = vrcp.f32 %v1829_v47  ;;  %v1734_v51 = vunpack.c.l.bf16 %v1702_v40  ;;  %v2854_v1 = vunpack.c.l.bf16 %v2822_v33  ;;  %v1607_v44 = vand.u32 2147450879, %v5111_v17 }
 0x1bd   : > { %v1623_v45 = vunpack.c.l.bf16 %v1591_v18  ;;  %v5117_v46 = vadd.f32 %v5073_v26, %v1460_v55  ;;  %v2949_v40 = vunpack.c.l.bf16 %v2917_v41  ;;  %v1332_v18 = vpop.f32.mrf.mxu1  ;;  %v923_v41 = vadd.f32 %v4771_v56, %v4949_v58 }
 0x1be   : > { %v1766_v7 = vadd.f32 1.0, %v1734_v51  ;;  %v1639_v52 = vunpack.c.l.bf16 %v1607_v44  ;;  %v2886_v11 = vmul.f32 %v2854_v1, %v1638_v25  ;;  %v1422_v1 = vadd.f32 %v1421_v31, %v1332_v18 }
 0x1bf   : > { %v1655_v49 = vmul.f32 0.328125, %v1623_v45  ;;  %v2775_v57 = vsub.f32 0.0, %v1623_v45  ;;  %v1528_v28 = vmul.f32 0.70710677, %v5117_v46  ;;  %v5136_v56 = vadd.f32 %v4794_v9, %v4968_v61 }
 0x1c0   : > { %v1798_v19 = vpack.c.bf16 %v1766_v7, %v1766_v7  ;;  %v1671_v23 = vmul.f32 0.328125, %v1639_v52  ;;  %v2791_v10 = vsub.f32 0.0, %v1639_v52  ;;  %v2918_v55 = vpack.c.bf16 %v2886_v11, %v2886_v11 }
 0x1c1   : > { %v1687_v22 = vpack.c.bf16 %v1655_v49, %v1655_v49  ;;  %v2807_v32 = vpack.c.bf16 %v2775_v57, %v2775_v57  ;;  %v5120_v25 = vpack.c.bf16 %v1528_v28, %v1528_v28  ;;  %v5129_v49 = vadd.f32 %v4780_v63, %v4957_v29 }
 0x1c2   : > { %v4362_v47 = vpop.eup %4361  ;;  %v1830_v33 = vunpack.c.l.bf16 %v1798_v19  ;;  %v1703_v36 = vpack.c.bf16 %v1671_v23, %v1671_v23  ;;  %v2823_v7 = vpack.c.bf16 %v2791_v10, %v2791_v10  ;;  %v2995_v19 = vmul.f32 1.442695, %v2949_v40 }
 0x1c3   : > { %v1893_v51 = vpack.c.bf16 %v4362_v47, %v4362_v47  ;;  %v1719_v5 = vunpack.c.l.bf16 %v1687_v22  ;;  %v1592_v47 = vand.u32 2147450879, %v5120_v25  ;;  %v2839_v10 = vunpack.c.l.bf16 %v2807_v32 }
 0x1c4   : > { %4363 = vrcp.f32 %v1830_v33  ;;  %v1735_v35 = vunpack.c.l.bf16 %v1703_v36  ;;  %v2855_v33 = vunpack.c.l.bf16 %v2823_v7  ;;  %v1476_v22 = vadd.f32 %v1422_v1, %v923_v41 }
 0x1c5   : > { %v5122_v44 = vunpack.c.l.bf16 %v1893_v51  ;;  %v1751_v23 = vadd.f32 1.0, %v1719_v5  ;;  %v5132_v28 = vunpack.c.l.bf16 %v1592_v47  ;;  %v2950_v11 = vunpack.c.l.bf16 %v2918_v55 }
 0x1c6   : > { %v1767_v31 = vadd.f32 1.0, %v1735_v35  ;;  %4365 = vpow2.f32 %v2995_v19  ;;  %v5139_v63 = vmul.f32 0.5, %v5076_v2  ;;  %v2871_v18 = vmul.f32 %v2839_v10, %v1623_v45 }
 0x1c7   : > { %v1957_v57 = vmul.f32 1.0625, %v5122_v44  ;;  %v1783_v40 = vpack.c.bf16 %v1751_v23, %v1751_v23  ;;  %v1656_v5 = vmul.f32 0.328125, %v5132_v28  ;;  %v2887_v1 = vmul.f32 %v2855_v33, %v1639_v52  ;;  %v623_v52 = vpop.f32.mrf.mxu0 }
 0x1c8   : > { %v1799_v29 = vpack.c.bf16 %v1767_v31, %v1767_v31  ;;  %v5143_v9 = vadd.f32 %v5073_v26, %v1476_v22  ;;  %v2997_v19 = vmul.f32 1.442695, %v2950_v11  ;;  %v5149_v47 = vmul.f32 0.5, %v5089_v14 }
 0x1c9   : > { %v1989_v58 = vpack.c.bf16 %v1957_v57, %v1957_v57  ;;  %v1815_v36 = vunpack.c.l.bf16 %v1783_v40  ;;  %v1688_v41 = vpack.c.bf16 %v1656_v5, %v1656_v5  ;;  %v2903_v10 = vpack.c.bf16 %v2871_v18, %v2871_v18 }
 0x1ca   : > { %v4364_v51 = vpop.eup %4363  ;;  %v1831_v7 = vunpack.c.l.bf16 %v1799_v29  ;;  %v5154_v33 = vmul.f32 0.5, %v5101_v34  ;;  %v2919_v22 = vpack.c.bf16 %v2887_v1, %v2887_v1  ;;  %v1544_v11 = vmul.f32 0.70710677, %v5143_v9 }
 0x1cb   : > { %v2021_v35 = vunpack.c.l.bf16 %v1989_v58  ;;  %v1894_v32 = vpack.c.bf16 %v4364_v51, %v4364_v51  ;;  %4367 = vrcp.f32 %v1815_v36  ;;  %v1720_v57 = vunpack.c.l.bf16 %v1688_v41 }
 0x1cc   : > { %4369 = vrcp.f32 %v1831_v7  ;;  %v4366_v31 = vpop.eup %4365  ;;  %v5158_v14 = vmul.f32 0.5, %v5104_v39  ;;  %v2935_v7 = vunpack.c.l.bf16 %v2903_v10 }
 0x1cd   : > { %v2053_v61 = vadd.f32 -1.453125, %v2021_v35  ;;  %v5145_v55 = vunpack.c.l.bf16 %v1894_v32  ;;  %v1752_v58 = vadd.f32 1.0, %v1720_v57  ;;  %4371 = vpow2.f32 %v2997_v19 }
 0x1ce   : > { %v2776_v35 = vsub.f32 0.0, %v5132_v28  ;;  %v5162_v32 = vpack.c.bf16 %v1544_v11, %v1544_v11  ;;  %v2951_v19 = vunpack.c.l.bf16 %v2919_v22  ;;  %v2967_v60 = vmul.f32 1.442695, %v2935_v7 }
 0x1cf   : > { %v2085_v23 = vpack.c.bf16 %v2053_v61, %v2053_v61  ;;  %v1958_v45 = vmul.f32 1.0625, %v5145_v55  ;;  %v1784_v5 = vpack.c.bf16 %v1752_v58, %v1752_v58 }
 0x1d0   : > { %v1608_v39 = vand.u32 2147450879, %v5162_v32  ;;  %v2808_v2 = vpack.c.bf16 %v2776_v35, %v2776_v35 }
 0x1d1   : > { %v2117_v40 = vunpack.c.l.bf16 %v2085_v23  ;;  %v1990_v51 = vpack.c.bf16 %v1958_v45, %v1958_v45  ;;  %v4368_v36 = vpop.eup %4367  ;;  %v1816_v57 = vunpack.c.l.bf16 %v1784_v5  ;;  %v3045_v45 = vpack.c.bf16 %v4366_v31, %v4366_v31 }
 0x1d2   : > { %v4370_v41 = vpop.eup %4369  ;;  %v1879_v61 = vpack.c.bf16 %v4368_v36, %v4368_v36  ;;  %v2999_v5 = vmul.f32 1.442695, %v2951_v19  ;;  %v885_v19 = vpop.f32.mrf.mxu2 }
 0x1d3   : > { %v2149_v34 = vmul.f32 %v2117_v40, %v5122_v44  ;;  %v2022_v18 = vunpack.c.l.bf16 %v1990_v51  ;;  %v1895_v29 = vpack.c.bf16 %v4370_v41, %v4370_v41  ;;  %4373 = vrcp.f32 %v1816_v57  ;;  %v4372_v10 = vpop.eup %4371 }
 0x1d4   : > { %v5167_v11 = vunpack.c.l.bf16 %v1879_v61  ;;  %v5169_v40 = vunpack.c.l.bf16 %v1608_v39  ;;  %v5176_v41 = vunpack.c.l.bf16 %v3045_v45  ;;  %v3046_v57 = vpack.c.bf16 %v4372_v10, %v4372_v10 }
 0x1d5   : > { %v2181_v23 = vpack.c.bf16 %v2149_v34, %v2149_v34  ;;  %v2054_v58 = vadd.f32 -1.453125, %v2022_v18  ;;  %v5171_v36 = vunpack.c.l.bf16 %v1895_v29  ;;  %v624_v34 = vadd.f32 %v623_v52, %v4773_v59 }
 0x1d6   : > { %v1943_v22 = vmul.f32 1.0625, %v5167_v11  ;;  %v1672_v31 = vmul.f32 0.328125, %v5169_v40  ;;  %4375 = vpow2.f32 %v2967_v60 }
 0x1d7   : > { %v2213_v51 = vunpack.c.l.bf16 %v2181_v23  ;;  %v2086_v1 = vpack.c.bf16 %v2054_v58, %v2054_v58  ;;  %v1959_v35 = vmul.f32 1.0625, %v5171_v36  ;;  %v2840_v23 = vunpack.c.l.bf16 %v2808_v2 }
 0x1d8   : > { %v1975_v39 = vpack.c.bf16 %v1943_v22, %v1943_v22  ;;  %v1704_v58 = vpack.c.bf16 %v1672_v31, %v1672_v31  ;;  %4377 = vpow2.f32 %v2999_v5  ;;  %v797_v52 = vadd.f32 %v4778_v62, %v624_v34 }
 0x1d9   : > { %v2245_v18 = vadd.f32 1.421875, %v2213_v51  ;;  %v2118_v61 = vunpack.c.l.bf16 %v2086_v1  ;;  %v1991_v21 = vpack.c.bf16 %v1959_v35, %v1959_v35  ;;  %v4374_v53 = vpop.eup %4373  ;;  %v2872_v2 = vmul.f32 %v2840_v23, %v5132_v28  ;;  %v1424_v23 = vpop.f32.mrf.mxu3 }
 0x1da   : > { %v2007_v38 = vunpack.c.l.bf16 %v1975_v39  ;;  %v1736_v59 = vunpack.c.l.bf16 %v1704_v58  ;;  %v1880_v43 = vpack.c.bf16 %v4374_v53, %v4374_v53  ;;  %v886_v31 = vadd.f32 %v885_v19, %v797_v52 }
 0x1db   : > { %v2277_v7 = vpack.c.bf16 %v2245_v18, %v2245_v18  ;;  %v2150_v29 = vmul.f32 %v2118_v61, %v5145_v55  ;;  %v2023_v51 = vunpack.c.l.bf16 %v1991_v21  ;;  %v5185_v39 = vunpack.c.l.bf16 %v3046_v57 }
 0x1dc   : > { %v2039_v10 = vadd.f32 -1.453125, %v2007_v38  ;;  %v1768_v22 = vadd.f32 1.0, %v1736_v59  ;;  %v5183_v35 = vunpack.c.l.bf16 %v1880_v43  ;;  %v4376_v58 = vpop.eup %4375  ;;  %v2904_v19 = vpack.c.bf16 %v2872_v2, %v2872_v2 }
 0x1dd   : > { %v2309_v45 = vunpack.c.l.bf16 %v2277_v7  ;;  %v2182_v1 = vpack.c.bf16 %v2150_v29, %v2150_v29  ;;  %v2055_v61 = vadd.f32 -1.453125, %v2023_v51  ;;  %v1461_v43 = vadd.f32 %v4959_v4, %v886_v31  ;;  %v1335_v51 = vpop.f32.mrf.mxu1 }
 0x1de   : > { %v2071_v5 = vpack.c.bf16 %v2039_v10, %v2039_v10  ;;  %v1800_v34 = vpack.c.bf16 %v1768_v22, %v1768_v22  ;;  %v1944_v28 = vmul.f32 1.0625, %v5183_v35  ;;  %v5189_v7 = vpop.eup %4377  ;;  %v2792_v22 = vsub.f32 0.0, %v5169_v40 }
 0x1df   : > { %v2341_v18 = vmul.f32 %v2309_v45, %v5122_v44  ;;  %v2214_v60 = vunpack.c.l.bf16 %v2182_v1  ;;  %v2087_v38 = vpack.c.bf16 %v2055_v61, %v2055_v61  ;;  %v2936_v54 = vunpack.c.l.bf16 %v2904_v19 }
 0x1e0   : > { %v2103_v29 = vunpack.c.l.bf16 %v2071_v5  ;;  %v1832_v59 = vunpack.c.l.bf16 %v1800_v34  ;;  %v1976_v1 = vpack.c.bf16 %v1944_v28, %v1944_v28  ;;  %v3031_v34 = vpack.c.bf16 %v4376_v58, %v4376_v58 }
 0x1e1   : > { %v2373_v21 = vpack.c.bf16 %v2341_v18, %v2341_v18  ;;  %v2246_v53 = vadd.f32 1.421875, %v2214_v60  ;;  %v2119_v45 = vunpack.c.l.bf16 %v2087_v38  ;;  %v1425_v18 = vadd.f32 %v1424_v23, %v1335_v51 }
 0x1e2   : > { %v2135_v10 = vmul.f32 %v2103_v29, %v5167_v11  ;;  %4379 = vrcp.f32 %v1832_v59  ;;  %v2008_v5 = vunpack.c.l.bf16 %v1976_v1  ;;  %v5196_v4 = vadd.f32 %v5073_v26, %v1461_v43 }
 0x1e3   : > { %v2405_v57 = vunpack.c.l.bf16 %v2373_v21  ;;  %v2278_v52 = vpack.c.bf16 %v2246_v53, %v2246_v53  ;;  %v2151_v62 = vmul.f32 %v2119_v45, %v5171_v36  ;;  %v2824_v29 = vpack.c.bf16 %v2792_v22, %v2792_v22 }
 0x1e4   : > { %v2167_v2 = vpack.c.bf16 %v2135_v10, %v2135_v10  ;;  %6283 = vst [vmem:[#allocation48_spill] sm:$0xff] %v5196_v4  ;;  %v2040_v38 = vadd.f32 -1.453125, %v2008_v5  ;;  %v1529_v59 = vmul.f32 0.70710677, %v5196_v4  ;;  %v5202_v43 = vunpack.c.l.bf16 %v3031_v34 }
 0x1e5   : > { %v2437_v60 = vadd.f32 -0.28515625, %v2405_v57  ;;  %v2310_v61 = vunpack.c.l.bf16 %v2278_v52  ;;  %v2183_v53 = vpack.c.bf16 %v2151_v62, %v2151_v62  ;;  %v2969_v51 = vmul.f32 1.442695, %v2936_v54 }
 0x1e6   : > { %v2199_v28 = vunpack.c.l.bf16 %v2167_v2  ;;  %v2072_v58 = vpack.c.bf16 %v2040_v38, %v2040_v38  ;;  %v5204_v10 = vpack.c.bf16 %v1529_v59, %v1529_v59  ;;  %v2856_v23 = vunpack.c.l.bf16 %v2824_v29 }
 0x1e7   : > { %v2469_v31 = vpack.c.bf16 %v2437_v60, %v2437_v60  ;;  %v2342_v21 = vmul.f32 %v2310_v61, %v5145_v55  ;;  %v2215_v45 = vunpack.c.l.bf16 %v2183_v53  ;;  %4381 = vpow2.f32 %v2969_v51 }
 0x1e8   : > { %v4380_v19 = vpop.eup %4379  ;;  %v2231_v1 = vadd.f32 1.421875, %v2199_v28  ;;  %v2104_v5 = vunpack.c.l.bf16 %v2072_v58 }
 0x1e9   : > { %v2501_v57 = vunpack.c.l.bf16 %v2469_v31  ;;  %v2374_v52 = vpack.c.bf16 %v2342_v21, %v2342_v21  ;;  %v2247_v61 = vadd.f32 1.421875, %v2215_v45  ;;  %v1896_v22 = vpack.c.bf16 %v4380_v19, %v4380_v19 }
 0x1ea   : > { %v2263_v2 = vpack.c.bf16 %v2231_v1, %v2231_v1  ;;  %v1593_v31 = vand.u32 2147450879, %v5204_v10  ;;  %v2136_v28 = vmul.f32 %v2104_v5, %v5183_v35  ;;  %v2888_v1 = vmul.f32 %v2856_v23, %v5169_v40 }
 0x1eb   : > { %v2533_v62 = vmul.f32 %v2501_v57, %v5122_v44  ;;  %v2406_v60 = vunpack.c.l.bf16 %v2374_v52  ;;  %v2279_v38 = vpack.c.bf16 %v2247_v61, %v2247_v61  ;;  %v5209_v54 = vunpack.c.l.bf16 %v1896_v22 }
 0x1ec   : > { %v2295_v34 = vunpack.c.l.bf16 %v2263_v2  ;;  %v5211_v59 = vunpack.c.l.bf16 %v1593_v31  ;;  %v2168_v58 = vpack.c.bf16 %v2136_v28, %v2136_v28  ;;  %v2920_v30 = vpack.c.bf16 %v2888_v1, %v2888_v1 }
 0x1ed   : > { %v2565_v21 = vpack.c.bf16 %v2533_v62, %v2533_v62  ;;  %v2438_v53 = vadd.f32 -0.28515625, %v2406_v60  ;;  %v2311_v45 = vunpack.c.l.bf16 %v2279_v38  ;;  %v1960_v29 = vmul.f32 1.0625, %v5209_v54  ;;  %v5220_v4 = vpop.eup %4381 }
 0x1ee   : > { %v2327_v19 = vmul.f32 %v2295_v34, %v5167_v11  ;;  %v1657_v62 = vmul.f32 0.328125, %v5211_v59  ;;  %v2200_v5 = vunpack.c.l.bf16 %v2168_v58 }
 0x1ef   : > { %v2597_v57 = vunpack.c.l.bf16 %v2565_v21  ;;  %v2470_v52 = vpack.c.bf16 %v2438_v53, %v2438_v53  ;;  %v2343_v51 = vmul.f32 %v2311_v45, %v5171_v36  ;;  %v1992_v22 = vpack.c.bf16 %v1960_v29, %v1960_v29 }
 0x1f0   : > { %v2359_v2 = vpack.c.bf16 %v2327_v19, %v2327_v19  ;;  %v1689_v31 = vpack.c.bf16 %v1657_v62, %v1657_v62  ;;  %v1477_v21 = vadd.f32 %v1425_v18, %v5129_v49  ;;  %v2232_v34 = vadd.f32 1.421875, %v2200_v5 }
 0x1f1   : > { %v2629_v60 = vadd.f32 0.25390625, %v2597_v57  ;;  %v2502_v61 = vunpack.c.l.bf16 %v2470_v52  ;;  %v2375_v28 = vpack.c.bf16 %v2343_v51, %v2343_v51  ;;  %v2024_v23 = vunpack.c.l.bf16 %v1992_v22 }
 0x1f2   : > { %v2391_v40 = vunpack.c.l.bf16 %v2359_v2  ;;  %v1721_v57 = vunpack.c.l.bf16 %v1689_v31  ;;  %v2264_v58 = vpack.c.bf16 %v2232_v34, %v2232_v34  ;;  %v5223_v49 = vadd.f32 %v5073_v26, %v1477_v21 }
 0x1f3   : > { %v2661_v53 = vpack.c.bf16 %v2629_v60, %v2629_v60  ;;  %v2534_v38 = vmul.f32 %v2502_v61, %v5145_v55  ;;  %v2407_v45 = vunpack.c.l.bf16 %v2375_v28  ;;  %v2056_v29 = vadd.f32 -1.453125, %v2024_v23 }
 0x1f4   : > { %v2423_v19 = vadd.f32 -0.28515625, %v2391_v40  ;;  %v1753_v62 = vadd.f32 1.0, %v1721_v57  ;;  %v2296_v51 = vunpack.c.l.bf16 %v2264_v58  ;;  %v2952_v22 = vunpack.c.l.bf16 %v2920_v30 }
 0x1f5   : > { %v2693_v52 = vunpack.c.l.bf16 %v2661_v53  ;;  %v2566_v37 = vpack.c.bf16 %v2534_v38, %v2534_v38  ;;  %v2439_v61 = vadd.f32 -0.28515625, %v2407_v45  ;;  %v2088_v2 = vpack.c.bf16 %v2056_v29, %v2056_v29 }
 0x1f6   : > { %v2455_v5 = vpack.c.bf16 %v2423_v19, %v2423_v19  ;;  %v1785_v1 = vpack.c.bf16 %v1753_v62, %v1753_v62  ;;  %v2328_v28 = vmul.f32 %v2296_v51, %v5183_v35  ;;  %v1545_v26 = vmul.f32 0.70710677, %v5223_v49 }
 0x1f7   : > { %v2725_v18 = vmul.f32 %v2693_v52, %v5122_v44  ;;  %v2598_v60 = vunpack.c.l.bf16 %v2566_v37  ;;  %v2471_v38 = vpack.c.bf16 %v2439_v61, %v2439_v61  ;;  %v2120_v40 = vunpack.c.l.bf16 %v2088_v2 }
 0x1f8   : > { %v2487_v34 = vunpack.c.l.bf16 %v2455_v5  ;;  %v1817_v23 = vunpack.c.l.bf16 %v1785_v1  ;;  %v2360_v37 = vpack.c.bf16 %v2328_v28, %v2328_v28  ;;  %v6284_v30 = vpack.c.bf16 %v5189_v7, %v5189_v7 }
 0x1f9   : > { %v2757_v31 = vpack.c.bf16 %v2725_v18, %v2725_v18  ;;  %v2630_v53 = vadd.f32 0.25390625, %v2598_v60  ;;  %v2503_v44 = vunpack.c.l.bf16 %v2471_v38  ;;  %v2152_v58 = vmul.f32 %v2120_v40, %v5209_v54 }
 0x1fa   : > { %v2519_v52 = vmul.f32 %v2487_v34, %v5167_v11  ;;  %v5232_v45 = vunpack.c.l.bf16 %v6284_v30  ;;  %4383 = vrcp.f32 %v1817_v23  ;;  %v2392_v18 = vunpack.c.l.bf16 %v2360_v37 }
 0x1fb   : > { %v3077_v21 = vunpack.c.l.bf16 %v2757_v31  ;;  %v2662_v57 = vpack.c.bf16 %v2630_v53, %v2630_v53  ;;  %v2535_v62 = vmul.f32 %v2503_v44, %v5171_v36  ;;  %v2184_v61 = vpack.c.bf16 %v2152_v58, %v2152_v58 }
 0x1fc   : > { %v2551_v60 = vpack.c.bf16 %v2519_v52, %v2519_v52  ;;  %v3001_v51 = vmul.f32 1.442695, %v2952_v22  ;;  %v5237_v5 = vpack.c.bf16 %v1545_v26, %v1545_v26  ;;  %v2424_v31 = vadd.f32 -0.28515625, %v2392_v18 }
 0x1fd   : > { %v3141_v19 = vmul.f32 %v5176_v41, %v3077_v21  ;;  %v2694_v29 = vunpack.c.l.bf16 %v2662_v57  ;;  %v2567_v7 = vpack.c.bf16 %v2535_v62, %v2535_v62  ;;  %v3032_v38 = vpack.c.bf16 %v5220_v4, %v5220_v4 }
 0x1fe   : > { %v2583_v53 = vunpack.c.l.bf16 %v2551_v60  ;;  %v2216_v28 = vunpack.c.l.bf16 %v2184_v61  ;;  %v1609_v41 = vand.u32 2147450879, %v5237_v5  ;;  %v6285_v40 = vunpack.c.l.bf16 %v5082_v13 }
 0x1ff   : > { %v3173_v2 = vpack.c.bf16 %v3141_v19, %v3141_v19  ;;  %v2726_v1 = vmul.f32 %v2694_v29, %v5145_v55  ;;  %v2599_v26 = vunpack.c.l.bf16 %v2567_v7  ;;  %v2456_v21 = vpack.c.bf16 %v2424_v31, %v2424_v31 }
 0x200   : > { %vm5245_vm1 = vcmp.lt.f32.partialorder %v6285_v40, 0.0  ;;  %v4384_v55 = vpop.eup %4383  ;;  %v2615_v57 = vadd.f32 0.25390625, %v2583_v53  ;;  %v2248_v44 = vadd.f32 1.421875, %v2216_v28  ;;  %4385 = vpow2.f32 %v3001_v51 }
 0x201   : > { %v3205_v34 = vunpack.c.l.bf16 %v3173_v2  ;;  %v2758_v22 = vpack.c.bf16 %v2726_v1, %v2726_v1  ;;  %v5249_v37 = vunpack.c.l.bf16 %v1609_v41  ;;  %v2631_v58 = vadd.f32 0.25390625, %v2599_v26  ;;  %vm3461_vm3 = vmpackc.low %vm5245_vm1, %vm5245_vm1 }
 0x202   : > { %v2488_v19 = vunpack.c.l.bf16 %v2456_v21  ;;  %v2647_v29 = vpack.c.bf16 %v2615_v57, %v2615_v57  ;;  %v2280_v62 = vpack.c.bf16 %v2248_v44, %v2248_v44  ;;  %v1881_v13 = vpack.c.bf16 %v4384_v55, %v4384_v55 }
 0x203   : > { %v3237_v52 = vsub.f32 1.0, %v3205_v34  ;;  %v3078_v30 = vunpack.c.l.bf16 %v2758_v22  ;;  %v1673_v18 = vmul.f32 0.328125, %v5249_v37  ;;  %v2663_v2 = vpack.c.bf16 %v2631_v58, %v2631_v58 }
 0x204   : > { %v2520_v1 = vmul.f32 %v2488_v19, %v5183_v35  ;;  %v2679_v7 = vunpack.c.l.bf16 %v2647_v29  ;;  %v2312_v31 = vunpack.c.l.bf16 %v2280_v62  ;;  %v5254_v51 = vunpack.c.l.bf16 %v1881_v13 }
 0x205   : > { %v3269_v60 = vpack.c.bf16 %v3237_v52, %v3237_v52  ;;  %v3142_v61 = vmul.f32 %v5185_v39, %v3078_v30  ;;  %v1705_v53 = vpack.c.bf16 %v1673_v18, %v1673_v18  ;;  %v2695_v34 = vunpack.c.l.bf16 %v2663_v2 }
 0x206   : > { %v2552_v40 = vpack.c.bf16 %v2520_v1, %v2520_v1  ;;  %v5256_v22 = vpop.eup %4385  ;;  %v2711_v26 = vmul.f32 %v2679_v7, %v5167_v11  ;;  %v2344_v21 = vmul.f32 %v2312_v31, %v5209_v54  ;;  %v1945_v39 = vmul.f32 1.0625, %v5254_v51 }
 0x207   : > { %v3365_v28 = vunpack.c.l.bf16 %v3269_v60  ;;  %v3174_v41 = vpack.c.bf16 %v3142_v61, %v3142_v61  ;;  %v2777_v55 = vsub.f32 0.0, %v5211_v59  ;;  %v6288_v52 = vunpack.c.l.bf16 %v5093_v24 }
 0x208   : > { %v2727_v58 = vmul.f32 %v2695_v34, %v5171_v36  ;;  %v2584_v19 = vunpack.c.l.bf16 %v2552_v40  ;;  %v2743_v29 = vpack.c.bf16 %v2711_v26, %v2711_v26  ;;  %v2376_v62 = vpack.c.bf16 %v2344_v21, %v2344_v21 }
 0x209   : > { %v3397_v57 = vsub.f32 0.0, %v3365_v28  ;;  %v3206_v44 = vunpack.c.l.bf16 %v3174_v41  ;;  %vm5264_vm2 = vcmp.lt.f32.partialorder %v6288_v52, 0.0  ;;  %v1977_v11 = vpack.c.bf16 %v1945_v39, %v1945_v39 }
 0x20a   : > { %v1737_v13 = vunpack.c.l.bf16 %v1705_v53  ;;  %v2759_v2 = vpack.c.bf16 %v2727_v58, %v2727_v58  ;;  %v2616_v1 = vadd.f32 0.25390625, %v2584_v19  ;;  %v3063_v24 = vunpack.c.l.bf16 %v2743_v29  ;;  %vm3462_vm5 = vmpackc.low %vm5264_vm2, %vm5264_vm2 }
 0x20b   : > { %v3429_v18 = vpack.c.bf16 %v3397_v57, %v3397_v57  ;;  %v3238_v61 = vsub.f32 1.0, %v3206_v44  ;;  %v2408_v7 = vunpack.c.l.bf16 %v2376_v62  ;;  %v2009_v31 = vunpack.c.l.bf16 %v1977_v11 }
 0x20c   : > { %v5272_v28 = vpack.c.bf16 %v2777_v55, %v2777_v55  ;;  %v3079_v34 = vunpack.c.l.bf16 %v2759_v2  ;;  %v2648_v40 = vpack.c.bf16 %v2616_v1, %v2616_v1  ;;  %v3127_v53 = vmul.f32 %v5202_v43, %v3063_v24 }
 0x20d   : > { %v3493_v36 = vsel %vm3461_vm3, %v3429_v18, %v3269_v60  ;;  %v3270_v41 = vpack.c.bf16 %v3238_v61, %v3238_v61  ;;  %v2440_v21 = vadd.f32 -0.28515625, %v2408_v7  ;;  %v2041_v39 = vadd.f32 -1.453125, %v2009_v31 }
 0x20e   : > { %v3525_v26 = vunpack.c.l.bf16 %v3493_v36  ;;  %v3143_v23 = vmul.f32 %v5232_v45, %v3079_v34  ;;  %v2680_v44 = vunpack.c.l.bf16 %v2648_v40  ;;  %v1769_v52 = vadd.f32 1.0, %v1737_v13 }
 0x20f   : > { %v3366_v57 = vunpack.c.l.bf16 %v3270_v41  ;;  %v3159_v19 = vpack.c.bf16 %v3127_v53, %v3127_v53  ;;  %v2472_v29 = vpack.c.bf16 %v2440_v21, %v2440_v21  ;;  %v2073_v55 = vpack.c.bf16 %v2041_v39, %v2041_v39 }
 0x210   : > { %v3589_v58 = vadd.f32 1.0, %v3525_v26  ;;  %v3175_v62 = vpack.c.bf16 %v3143_v23, %v3143_v23  ;;  %v2712_v43 = vmul.f32 %v2680_v44, %v5183_v35  ;;  %v1801_v11 = vpack.c.bf16 %v1769_v52, %v1769_v52 }
 0x211   : > { %v3398_v60 = vsub.f32 0.0, %v3366_v57  ;;  %v3191_v45 = vunpack.c.l.bf16 %v3159_v19  ;;  %v6291_v13 = vunpack.c.l.bf16 %v5109_v42  ;;  %v2504_v2 = vunpack.c.l.bf16 %v2472_v29 }
 0x212   : > { %v3621_v18 = vmul.f32 %v3589_v58, %v5139_v63  ;;  %v2105_v1 = vunpack.c.l.bf16 %v2073_v55  ;;  %v3207_v7 = vunpack.c.l.bf16 %v3175_v62  ;;  %v2744_v31 = vpack.c.bf16 %v2712_v43, %v2712_v43 }
 0x213   : > { %vm5286_vm4 = vcmp.lt.f32.partialorder %v6291_v13, 0.0  ;;  %v3430_v24 = vpack.c.bf16 %v3398_v60, %v3398_v60  ;;  %v1833_v36 = vunpack.c.l.bf16 %v1801_v11  ;;  %v3223_v35 = vsub.f32 1.0, %v3191_v45 }
 0x214   : > { %3653 = vst [vmem:[%s5280_s21 + $0x70] sm:$0xff] %v3621_v18  ;;  %v3096_v42 = vunpack.c.l.bf16 %v3032_v38  ;;  %v2536_v63 = vmul.f32 %v2504_v2, %v5209_v54  ;;  %v2137_v34 = vmul.f32 %v2105_v1, %v5254_v51  ;;  %v3239_v26 = vsub.f32 1.0, %v3207_v7  ;;  %vm3447_vm8 = vmpackc.low %vm5286_vm4, %vm5286_vm4 }
 0x215   : > { %v3494_v40 = vsel %vm3462_vm5, %v3430_v24, %v3270_v41  ;;  %v3064_v53 = vunpack.c.l.bf16 %v2744_v31  ;;  %4387 = vrcp.f32 %v1833_v36  ;;  %v3255_v39 = vpack.c.bf16 %v3223_v35, %v3223_v35  ;;  %v625_v41 = vpop.f32.mrf.mxu0 }
 0x216   : > { %v3526_v21 = vunpack.c.l.bf16 %v3494_v40  ;;  %v2568_v57 = vpack.c.bf16 %v2536_v63, %v2536_v63  ;;  %v2169_v23 = vpack.c.bf16 %v2137_v34, %v2137_v34  ;;  %v3271_v30 = vpack.c.bf16 %v3239_v26, %v3239_v26 }
 0x217   : > { %v3128_v44 = vmul.f32 %v3096_v42, %v3064_v53  ;;  %v3048_v52 = vpack.c.bf16 %v5256_v22, %v5256_v22  ;;  %v2841_v4 = vunpack.c.l.bf16 %v5272_v28  ;;  %v3351_v58 = vunpack.c.l.bf16 %v3255_v39  ;;  %v887_v42 = vpop.f32.mrf.mxu2 }
 0x218   : > { %v3590_v38 = vadd.f32 1.0, %v3526_v21  ;;  %v2600_v19 = vunpack.c.l.bf16 %v2568_v57  ;;  %v2201_v29 = vunpack.c.l.bf16 %v2169_v23  ;;  %v6294_v55 = vunpack.c.l.bf16 %v5111_v17 }
 0x219   : > { %v3367_v62 = vunpack.c.l.bf16 %v3271_v30  ;;  %v3160_v43 = vpack.c.bf16 %v3128_v44, %v3128_v44  ;;  %v5309_v11 = vmul.f32 0.5, %v5117_v46  ;;  %v3383_v28 = vsub.f32 0.0, %v3351_v58 }
 0x21a   : > { %vm5304_vm6 = vcmp.lt.f32.partialorder %v6294_v55, 0.0  ;;  %v3622_v22 = vmul.f32 %v3590_v38, %v5149_v47  ;;  %v2632_v18 = vadd.f32 0.25390625, %v2600_v19  ;;  %v2233_v45 = vadd.f32 1.421875, %v2201_v29 }
 0x21b   : > { %v4388_v13 = vpop.eup %4387  ;;  %v3399_v2 = vsub.f32 0.0, %v3367_v62  ;;  %v3192_v1 = vunpack.c.l.bf16 %v3160_v43  ;;  %v6297_v24 = vunpack.c.l.bf16 %v5120_v25  ;;  %v3112_v7 = vunpack.c.l.bf16 %v3048_v52  ;;  %vm3463_vm9 = vmpackc.low %vm5304_vm6, %vm5304_vm6 }
 0x21c   : > { %v2873_v31 = vmul.f32 %v2841_v4, %v5211_v59  ;;  %3654 = vst [vmem:[%s5280_s21 + $0x78] sm:$0xff] %v3622_v22  ;;  %v3415_v46 = vpack.c.bf16 %v3383_v28, %v3383_v28  ;;  %v2664_v36 = vpack.c.bf16 %v2632_v18, %v2632_v18  ;;  %v2265_v35 = vpack.c.bf16 %v2233_v45, %v2233_v45 }
 0x21d   : > { %vm5314_vm7 = vcmp.lt.f32.partialorder %v6297_v24, 0.0  ;;  %v1897_v47 = vpack.c.bf16 %v4388_v13, %v4388_v13  ;;  %v3431_v63 = vpack.c.bf16 %v3399_v2, %v3399_v2  ;;  %v3224_v34 = vsub.f32 1.0, %v3192_v1  ;;  %v628_v43 = vpop.f32.mrf.mxu0  ;;  %v1337_v24 = vpop.f32.mrf.mxu1 }
 0x21e   : > { %v2793_v25 = vsub.f32 0.0, %v5249_v37  ;;  %v626_v40 = vadd.f32 %v625_v41, %v4782_v0  ;;  %v3479_v26 = vsel %vm3447_vm8, %v3415_v46, %v3255_v39  ;;  %v2696_v59 = vunpack.c.l.bf16 %v2664_v36  ;;  %vm3448_vm10 = vmpackc.low %vm5314_vm7, %vm5314_vm7 }
 0x21f   : > { %v2297_v53 = vunpack.c.l.bf16 %v2265_v35  ;;  %v5328_v21 = vunpack.c.l.bf16 %v1897_v47  ;;  %v3511_v57 = vunpack.c.l.bf16 %v3479_v26  ;;  %v3495_v23 = vsel %vm3463_vm9, %v3431_v63, %v3271_v30  ;;  %v1426_v30 = vpop.f32.mrf.mxu3 }
 0x220   : > { %v3256_v61 = vpack.c.bf16 %v3224_v34, %v3224_v34  ;;  %v2905_v44 = vpack.c.bf16 %v2873_v31, %v2873_v31  ;;  %v3527_v52 = vunpack.c.l.bf16 %v3495_v23  ;;  %v2728_v4 = vmul.f32 %v2696_v59, %v5209_v54  ;;  %v5346_v34 = vld [vmem:[%s6234_s2] ss:$0 sm:$0xff] }
 0x221   : > { %v2329_v38 = vmul.f32 %v2297_v53, %v5254_v51  ;;  %v1961_v0 = vmul.f32 1.0625, %v5328_v21  ;;  %v3575_v39 = vadd.f32 1.0, %v3511_v57  ;;  %v2825_v19 = vpack.c.bf16 %v2793_v25, %v2793_v25 }
 0x222   : > { %v3352_v58 = vunpack.c.l.bf16 %v3256_v61  ;;  %v799_v29 = vadd.f32 %v4792_v8, %v626_v40  ;;  %v3591_v41 = vadd.f32 1.0, %v3527_v52  ;;  %v2760_v55 = vpack.c.bf16 %v2728_v4, %v2728_v4 }
 0x223   : > { %v2361_v60 = vpack.c.bf16 %v2329_v38, %v2329_v38  ;;  %v1993_v62 = vpack.c.bf16 %v1961_v0, %v1961_v0  ;;  %v3607_v22 = vmul.f32 %v3575_v39, %v5154_v33  ;;  %v2937_v28 = vunpack.c.l.bf16 %v2905_v44 }
 0x224   : > { %v3384_v54 = vsub.f32 0.0, %v3352_v58  ;;  %v888_v18 = vadd.f32 %v887_v42, %v799_v29  ;;  %v3623_v45 = vmul.f32 %v3591_v41, %v5158_v14  ;;  %v3080_v13 = vunpack.c.l.bf16 %v2760_v55  ;;  %v890_v42 = vpop.f32.mrf.mxu2 }
 0x225   : > { %v2393_v2 = vunpack.c.l.bf16 %v2361_v60  ;;  %v2025_v1 = vunpack.c.l.bf16 %v1993_v62  ;;  %3639 = vst [vmem:[%s5280_s21] sm:$0xff] %v3607_v22  ;;  %v1427_v46 = vadd.f32 %v1426_v30, %v1337_v24  ;;  %v629_v36 = vadd.f32 %v628_v43, %v4796_v12 }
 0x226   : > { %v3416_v8 = vpack.c.bf16 %v3384_v54, %v3384_v54  ;;  %v1462_v31 = vadd.f32 %v4970_v48, %v888_v18  ;;  %3655 = vst [vmem:[%s5280_s21 + $0x80] sm:$0xff] %v3623_v45  ;;  %v3144_v33 = vmul.f32 %v3112_v7, %v3080_v13  ;;  %v2857_v14 = vunpack.c.l.bf16 %v2825_v19 }
 0x227   : > { %v2425_v35 = vadd.f32 -0.28515625, %v2393_v2  ;;  %v2057_v47 = vadd.f32 -1.453125, %v2025_v1  ;;  %v1478_v12 = vadd.f32 %v1427_v46, %v5136_v56  ;;  %v802_v17 = vadd.f32 %v4801_v15, %v629_v36 }
 0x228   : > { %v3480_v63 = vsel %vm3448_vm10, %v3416_v8, %v3256_v61  ;;  %v5349_v48 = vadd.f32 %v5346_v34, %v1462_v31  ;;  %v3176_v40 = vpack.c.bf16 %v3144_v33, %v3144_v33  ;;  %v2971_v59 = vmul.f32 1.442695, %v2937_v28 }
 0x229   : > { %v3512_v25 = vunpack.c.l.bf16 %v3480_v63  ;;  %v2457_v7 = vpack.c.bf16 %v2425_v35, %v2425_v35  ;;  %v2089_v26 = vpack.c.bf16 %v2057_v47, %v2057_v47  ;;  %v5355_v57 = vadd.f32 %v5346_v34, %v1478_v12 }
 0x22a   : > { %v1530_v53 = vmul.f32 0.70710677, %v5349_v48  ;;  %v891_v23 = vadd.f32 %v890_v42, %v802_v17  ;;  %v3208_v44 = vunpack.c.l.bf16 %v3176_v40  ;;  %v2889_v56 = vmul.f32 %v2857_v14, %v5249_v37 }
 0x22b   : > { %v3576_v61 = vadd.f32 1.0, %v3512_v25  ;;  %v2489_v52 = vunpack.c.l.bf16 %v2457_v7  ;;  %v2121_v4 = vunpack.c.l.bf16 %v2089_v26  ;;  %v1546_v15 = vmul.f32 0.70710677, %v5355_v57 }
 0x22c   : > { %v5358_v38 = vpack.c.bf16 %v1530_v53, %v1530_v53  ;;  %v3240_v39 = vsub.f32 1.0, %v3208_v44  ;;  %v3304_v29 = vunpack.c.l.bf16 %v5162_v32  ;;  %4389 = vpow2.f32 %v2971_v59 }
 0x22d   : > { %v3608_v0 = vmul.f32 %v3576_v61, %v5309_v11  ;;  %v2521_v58 = vmul.f32 %v2489_v52, %v5254_v51  ;;  %v2153_v19 = vmul.f32 %v2121_v4, %v5328_v21  ;;  %v5366_v55 = vpack.c.bf16 %v1546_v15, %v1546_v15 }
 0x22e   : > { %v1594_v41 = vand.u32 2147450879, %v5358_v38  ;;  %v3272_v37 = vpack.c.bf16 %v3240_v39, %v3240_v39  ;;  %v1463_v30 = vadd.f32 %v4978_v20, %v891_v23  ;;  %v2921_v43 = vpack.c.bf16 %v2889_v56, %v2889_v56 }
 0x22f   : > { %3640 = vst [vmem:[%s5280_s21 + $0x8] sm:$0xff] %v3608_v0  ;;  %v2553_v60 = vpack.c.bf16 %v2521_v58, %v2521_v58  ;;  %v2185_v62 = vpack.c.bf16 %v2153_v19, %v2153_v19  ;;  %v1610_v22 = vand.u32 2147450879, %v5366_v55  ;;  %vm5376_vm11 = vcmp.lt.f32.partialorder %v3304_v29, 0.0 }
 0x230   : > { %v5370_v11 = vunpack.c.l.bf16 %v1594_v41  ;;  %v3368_v54 = vunpack.c.l.bf16 %v3272_v37  ;;  %v5374_v32 = vadd.f32 %v5346_v34, %v1463_v30  ;;  %v2953_v46 = vunpack.c.l.bf16 %v2921_v43  ;;  %vm3464_vm12 = vmpackc.low %vm5376_vm11, %vm5376_vm11  ;;  %v1429_v41 = vpop.f32.mrf.mxu3 }
 0x231   : > { %v2585_v28 = vunpack.c.l.bf16 %v2553_v60  ;;  %v2217_v18 = vunpack.c.l.bf16 %v2185_v62  ;;  %v5381_v2 = vunpack.c.l.bf16 %v1610_v22  ;;  %v3560_v56 = vmul.f32 0.5, %v5143_v9  ;;  %v1340_v22 = vpop.f32.mrf.mxu1 }
 0x232   : > { %v1658_v13 = vmul.f32 0.328125, %v5370_v11  ;;  %v3400_v20 = vsub.f32 0.0, %v3368_v54  ;;  %v1531_v8 = vmul.f32 0.70710677, %v5374_v32  ;;  %v4390_v31 = vpop.eup %4389  ;;  %v3003_v52 = vmul.f32 1.442695, %v2953_v46 }
 0x233   : > { %v2617_v1 = vadd.f32 0.25390625, %v2585_v28  ;;  %v2249_v24 = vadd.f32 1.421875, %v2217_v18  ;;  %v1674_v33 = vmul.f32 0.328125, %v5381_v2  ;;  %v3033_v59 = vpack.c.bf16 %v4390_v31, %v4390_v31 }
 0x234   : > { %v1690_v36 = vpack.c.bf16 %v1658_v13, %v1658_v13  ;;  %v3432_v35 = vpack.c.bf16 %v3400_v20, %v3400_v20  ;;  %v5385_v42 = vpack.c.bf16 %v1531_v8, %v1531_v8  ;;  %4391 = vpow2.f32 %v3003_v52 }
 0x235   : > { %v2649_v47 = vpack.c.bf16 %v2617_v1, %v2617_v1  ;;  %v2281_v14 = vpack.c.bf16 %v2249_v24, %v2249_v24  ;;  %v1706_v12 = vpack.c.bf16 %v1674_v33, %v1674_v33  ;;  %v3097_v60 = vunpack.c.l.bf16 %v3033_v59 }
 0x236   : > { %v1722_v63 = vunpack.c.l.bf16 %v1690_v36  ;;  %v3496_v17 = vsel %vm3464_vm12, %v3432_v35, %v3272_v37  ;;  %v1595_v7 = vand.u32 2147450879, %v5385_v42  ;;  %v1430_v28 = vadd.f32 %v1429_v41, %v1340_v22 }
 0x237   : > { %v2681_v25 = vunpack.c.l.bf16 %v2649_v47  ;;  %v2313_v40 = vunpack.c.l.bf16 %v2281_v14  ;;  %v3528_v26 = vunpack.c.l.bf16 %v3496_v17  ;;  %v1738_v23 = vunpack.c.l.bf16 %v1706_v12  ;;  %v6302_v47 = vld [vmem:[#allocation6_spill] sm:$0xff] }
 0x238   : > { %v1754_v53 = vadd.f32 1.0, %v1722_v63  ;;  %v5393_v4 = vunpack.c.l.bf16 %v1595_v7  ;;  %v931_v20 = vadd.f32 %v4803_v16, %v4976_v50  ;;  %v3289_v1 = vunpack.c.l.bf16 %v5204_v10  ;;  %v6303_v63 = vld [vmem:[#allocation32_spill] sm:$0xff]  ;;  %v6304_v16 = vld [vmem:[#allocation9_spill] sm:$0xff] }
 0x239   : > { %v2713_v61 = vmul.f32 %v2681_v25, %v5254_v51  ;;  %v2345_v44 = vmul.f32 %v2313_v40, %v5328_v21  ;;  %v3592_v15 = vadd.f32 1.0, %v3528_v26  ;;  %v1770_v39 = vadd.f32 1.0, %v1738_v23  ;;  %v630_v23 = vpop.f32.mrf.mxu0 }
 0x23a   : > { %v1786_v0 = vpack.c.bf16 %v1754_v53, %v1754_v53  ;;  %v1659_v29 = vmul.f32 0.328125, %v5393_v4  ;;  %v2778_v31 = vsub.f32 0.0, %v5370_v11  ;;  %v5404_v46 = vadd.f32 %v4817_v27, %v4987_v6  ;;  %v4392_v35 = vpop.eup %4391  ;;  %v6307_v27 = vld [vmem:[#allocation48_spill] sm:$0xff] }
 0x23b   : > { %v2745_v58 = vpack.c.bf16 %v2713_v61, %v2713_v61  ;;  %v2377_v19 = vpack.c.bf16 %v2345_v44, %v2345_v44  ;;  %v3624_v37 = vmul.f32 %v3592_v15, %v3560_v56  ;;  %v1802_v51 = vpack.c.bf16 %v1770_v39, %v1770_v39 }
 0x23c   : > { %v1818_v62 = vunpack.c.l.bf16 %v1786_v0  ;;  %v1691_v54 = vpack.c.bf16 %v1659_v29, %v1659_v29  ;;  %v1479_v33 = vadd.f32 %v1430_v28, %v931_v20  ;;  %v5408_v14 = vadd.f32 %v6302_v47, %v4995_v3 }
 0x23d   : > { %v3065_v30 = vunpack.c.l.bf16 %v2745_v58  ;;  %v2409_v43 = vunpack.c.l.bf16 %v2377_v19  ;;  %3656 = vst [vmem:[%s5280_s21 + $0x88] sm:$0xff] %v3624_v37  ;;  %v1834_v9 = vunpack.c.l.bf16 %v1802_v51  ;;  %v5412_v50 = vadd.f32 %v6304_v16, %v6303_v63  ;;  %v6308_v37 = vld [vmem:[#allocation2_spill] sm:$0xff] }
 0x23e   : > { %4393 = vrcp.f32 %v1818_v62  ;;  %v1723_v13 = vunpack.c.l.bf16 %v1691_v54  ;;  %vm5414_vm13 = vcmp.lt.f32.partialorder %v3289_v1, 0.0  ;;  %v5419_v6 = vmul.f32 0.5, %v6307_v27  ;;  %v892_v1 = vpop.f32.mrf.mxu2 }
 0x23f   : > { %v3129_v18 = vmul.f32 %v3097_v60, %v3065_v30  ;;  %v2441_v45 = vadd.f32 -0.28515625, %v2409_v43  ;;  %4395 = vrcp.f32 %v1834_v9  ;;  %v5422_v7 = vadd.f32 %v5346_v34, %v1479_v33  ;;  %vm3449_vm14 = vmpackc.low %vm5414_vm13, %vm5414_vm13 }
 0x240   : > { %v1755_v36 = vadd.f32 1.0, %v1723_v13  ;;  %v2810_v53 = vpack.c.bf16 %v2778_v31, %v2778_v31  ;;  %v3305_v61 = vunpack.c.l.bf16 %v5237_v5  ;;  %v2794_v44 = vsub.f32 0.0, %v5381_v2 }
 0x241   : > { %v3161_v24 = vpack.c.bf16 %v3129_v18, %v3129_v18  ;;  %v2473_v8 = vpack.c.bf16 %v2441_v45, %v2441_v45  ;;  %v1547_v56 = vmul.f32 0.70710677, %v5422_v7  ;;  %v3049_v58 = vpack.c.bf16 %v4392_v35, %v4392_v35 }
 0x242   : > { %v1787_v40 = vpack.c.bf16 %v1755_v36, %v1755_v36  ;;  %v631_v60 = vadd.f32 %v630_v23, %v6308_v37  ;;  %v2842_v43 = vunpack.c.l.bf16 %v2810_v53  ;;  %v5435_v22 = vmul.f32 0.5, %v5223_v49  ;;  %v6309_v36 = vld [vmem:[#allocation3_spill] sm:$0xff]  ;;  %v6310_v37 = vld [vmem:[#allocation30_spill] sm:$0xff] }
 0x243   : > { %v3193_v10 = vunpack.c.l.bf16 %v3161_v24  ;;  %v2505_v12 = vunpack.c.l.bf16 %v2473_v8  ;;  %v5430_v41 = vpack.c.bf16 %v1547_v56, %v1547_v56  ;;  %v2826_v9 = vpack.c.bf16 %v2794_v44, %v2794_v44 }
 0x244   : > { %v4394_v17 = vpop.eup %4393  ;;  %v1819_v52 = vunpack.c.l.bf16 %v1787_v40  ;;  %v5441_v20 = vmul.f32 0.5, %v5349_v48  ;;  %v3113_v24 = vunpack.c.l.bf16 %v3049_v58  ;;  %v804_v49 = vadd.f32 %v6309_v36, %v631_v60 }
 0x245   : > { %v3225_v3 = vsub.f32 1.0, %v3193_v10  ;;  %v2537_v26 = vmul.f32 %v2505_v12, %v5328_v21  ;;  %v1882_v59 = vpack.c.bf16 %v4394_v17, %v4394_v17  ;;  %v4396_v15 = vpop.eup %4395  ;;  %v1611_v28 = vand.u32 2147450879, %v5430_v41 }
 0x246   : > { %v1898_v29 = vpack.c.bf16 %v4396_v15, %v4396_v15  ;;  %4397 = vrcp.f32 %v1819_v52  ;;  %v2874_v63 = vmul.f32 %v2842_v43, %v5370_v11  ;;  %v2858_v10 = vunpack.c.l.bf16 %v2826_v9  ;;  %v1431_v11 = vpop.f32.mrf.mxu3 }
 0x247   : > { %v3257_v0 = vpack.c.bf16 %v3225_v3, %v3225_v3  ;;  %v2569_v39 = vpack.c.bf16 %v2537_v26, %v2537_v26  ;;  %v5428_v19 = vunpack.c.l.bf16 %v1882_v59  ;;  %v5444_v31 = vunpack.c.l.bf16 %v1611_v28 }
 0x248   : > { %v5437_v54 = vunpack.c.l.bf16 %v1898_v29  ;;  %v893_v17 = vadd.f32 %v892_v1, %v804_v49  ;;  %v2779_v23 = vsub.f32 0.0, %v5393_v4  ;;  %v2906_v56 = vpack.c.bf16 %v2874_v63, %v2874_v63 }
 0x249   : > { %v3353_v62 = vunpack.c.l.bf16 %v3257_v0  ;;  %v2601_v51 = vunpack.c.l.bf16 %v2569_v39  ;;  %v1946_v30 = vmul.f32 1.0625, %v5428_v19  ;;  %v1675_v12 = vmul.f32 0.328125, %v5444_v31 }
 0x24a   : > { %v1962_v8 = vmul.f32 1.0625, %v5437_v54  ;;  %v1464_v60 = vadd.f32 %v6310_v37, %v893_v17  ;;  %v2890_v1 = vmul.f32 %v2858_v10, %v5381_v2  ;;  %v2938_v36 = vunpack.c.l.bf16 %v2906_v56 }
 0x24b   : > { %v3385_v18 = vsub.f32 0.0, %v3353_v62  ;;  %v2633_v45 = vadd.f32 0.25390625, %v2601_v51  ;;  %v1978_v13 = vpack.c.bf16 %v1946_v30, %v1946_v30  ;;  %v1707_v44 = vpack.c.bf16 %v1675_v12, %v1675_v12 }
 0x24c   : > { %v4398_v16 = vpop.eup %4397  ;;  %v1994_v48 = vpack.c.bf16 %v1962_v8, %v1962_v8  ;;  %vm5473_vm15 = vcmp.lt.f32.partialorder %v3305_v61, 0.0 }
 0x24d   : > { %v3417_v33 = vpack.c.bf16 %v3385_v18, %v3385_v18  ;;  %v2665_v35 = vpack.c.bf16 %v2633_v45, %v2633_v45  ;;  %v2010_v47 = vunpack.c.l.bf16 %v1978_v13  ;;  %v1883_v26 = vpack.c.bf16 %v4398_v16, %v4398_v16  ;;  %vm3465_vm0 = vmpackc.low %vm5473_vm15, %vm5473_vm15 }
 0x24e   : > { %v2026_v53 = vunpack.c.l.bf16 %v1994_v48  ;;  %v1739_v29 = vunpack.c.l.bf16 %v1707_v44 }
 0x24f   : > { %v3481_v27 = vsel %vm3449_vm14, %v3417_v33, %v3257_v0  ;;  %v2697_v40 = vunpack.c.l.bf16 %v2665_v35  ;;  %v2042_v3 = vadd.f32 -1.453125, %v2010_v47  ;;  %v5454_v15 = vunpack.c.l.bf16 %v1883_v26  ;;  %v1342_v0 = vpop.f32.mrf.mxu1 }
 0x250   : > { %v3513_v59 = vunpack.c.l.bf16 %v3481_v27  ;;  %v2058_v58 = vadd.f32 -1.453125, %v2026_v53  ;;  %v1432_v43 = vadd.f32 %v1431_v11, %v1342_v0  ;;  %v1771_v18 = vadd.f32 1.0, %v1739_v29 }
 0x251   : > { %v2729_v52 = vmul.f32 %v2697_v40, %v5328_v21  ;;  %v2074_v25 = vpack.c.bf16 %v2042_v3, %v2042_v3  ;;  %v1947_v30 = vmul.f32 1.0625, %v5454_v15  ;;  %v2811_v21 = vpack.c.bf16 %v2779_v23, %v2779_v23 }
 0x252   : > { %v3577_v39 = vadd.f32 1.0, %v3513_v59  ;;  %v2090_v28 = vpack.c.bf16 %v2058_v58, %v2058_v58  ;;  %v1803_v33 = vpack.c.bf16 %v1771_v18, %v1771_v18  ;;  %v5463_v35 = vadd.f32 %v5346_v34, %v1464_v60 }
 0x253   : > { %v2761_v62 = vpack.c.bf16 %v2729_v52, %v2729_v52  ;;  %v2106_v51 = vunpack.c.l.bf16 %v2074_v25  ;;  %v1979_v8 = vpack.c.bf16 %v1947_v30, %v1947_v30  ;;  %v2843_v12 = vunpack.c.l.bf16 %v2811_v21 }
 0x254   : > { %v3609_v9 = vmul.f32 %v3577_v39, %v5419_v6  ;;  %v2122_v49 = vunpack.c.l.bf16 %v2090_v28  ;;  %v1480_v6 = vadd.f32 %v1432_v43, %v5404_v46  ;;  %v1835_v17 = vunpack.c.l.bf16 %v1803_v33 }
 0x255   : > { %v3081_v45 = vunpack.c.l.bf16 %v2761_v62  ;;  %v2138_v13 = vmul.f32 %v2106_v51, %v5428_v19  ;;  %v2011_v16 = vunpack.c.l.bf16 %v1979_v8  ;;  %v1532_v27 = vmul.f32 0.70710677, %v5463_v35 }
 0x256   : > { %3641 = vst [vmem:[%s5280_s21 + $0x10] sm:$0xff] %v3609_v9  ;;  %v2154_v48 = vmul.f32 %v2122_v49, %v5437_v54  ;;  %v2922_v40 = vpack.c.bf16 %v2890_v1, %v2890_v1  ;;  %4399 = vrcp.f32 %v1835_v17  ;;  %v2795_v59 = vsub.f32 0.0, %v5444_v31 }
 0x257   : > { %v3145_v47 = vmul.f32 %v3113_v24, %v3081_v45  ;;  %v2170_v63 = vpack.c.bf16 %v2138_v13, %v2138_v13  ;;  %v2043_v3 = vadd.f32 -1.453125, %v2011_v16  ;;  %v5469_v53 = vpack.c.bf16 %v1532_v27, %v1532_v27 }
 0x258   : > { %v2186_v26 = vpack.c.bf16 %v2154_v48, %v2154_v48  ;;  %v5478_v11 = vadd.f32 %v5346_v34, %v1480_v6  ;;  %v5481_v25 = vmul.f32 0.5, %v5355_v57  ;;  %v2875_v56 = vmul.f32 %v2843_v12, %v5393_v4 }
 0x259   : > { %v3177_v2 = vpack.c.bf16 %v3145_v47, %v3145_v47  ;;  %v2202_v10 = vunpack.c.l.bf16 %v2170_v63  ;;  %v2075_v44 = vpack.c.bf16 %v2043_v3, %v2043_v3  ;;  %v1596_v39 = vand.u32 2147450879, %v5469_v53 }
 0x25a   : > { %v2218_v52 = vunpack.c.l.bf16 %v2186_v26  ;;  %v1548_v61 = vmul.f32 0.70710677, %v5478_v11  ;;  %v2973_v0 = vmul.f32 1.442695, %v2938_v36  ;;  %v2827_v60 = vpack.c.bf16 %v2795_v59, %v2795_v59 }
 0x25b   : > { %v3209_v24 = vunpack.c.l.bf16 %v3177_v2  ;;  %v2234_v23 = vadd.f32 1.421875, %v2202_v10  ;;  %v2107_v5 = vunpack.c.l.bf16 %v2075_v44  ;;  %v5486_v62 = vunpack.c.l.bf16 %v1596_v39 }
 0x25c   : > { %v2250_v37 = vadd.f32 1.421875, %v2218_v52  ;;  %v2954_v43 = vunpack.c.l.bf16 %v2922_v40  ;;  %v4400_v9 = vpop.eup %4399  ;;  %v2907_v4 = vpack.c.bf16 %v2875_v56, %v2875_v56  ;;  %v5490_v18 = vpack.c.bf16 %v1548_v61, %v1548_v61 }
 0x25d   : > { %v3241_v58 = vsub.f32 1.0, %v3209_v24  ;;  %v2266_v29 = vpack.c.bf16 %v2234_v23, %v2234_v23  ;;  %v2139_v57 = vmul.f32 %v2107_v5, %v5454_v15  ;;  %v1660_v21 = vmul.f32 0.328125, %v5486_v62 }
 0x25e   : > { %v2282_v28 = vpack.c.bf16 %v2250_v37, %v2250_v37  ;;  %v1899_v8 = vpack.c.bf16 %v4400_v9, %v4400_v9  ;;  %4401 = vpow2.f32 %v2973_v0  ;;  %v2859_v49 = vunpack.c.l.bf16 %v2827_v60 }
 0x25f   : > { %v3273_v51 = vpack.c.bf16 %v3241_v58, %v3241_v58  ;;  %v2298_v30 = vunpack.c.l.bf16 %v2266_v29  ;;  %v2171_v1 = vpack.c.bf16 %v2139_v57, %v2139_v57  ;;  %v1692_v33 = vpack.c.bf16 %v1660_v21, %v1660_v21  ;;  %v633_v57 = vpop.f32.mrf.mxu0 }
 0x260   : > { %v2314_v36 = vunpack.c.l.bf16 %v2282_v28  ;;  %v5493_v6 = vunpack.c.l.bf16 %v1899_v8  ;;  %v2939_v12 = vunpack.c.l.bf16 %v2907_v4  ;;  %v1612_v27 = vand.u32 2147450879, %v5490_v18  ;;  %v6313_v8 = vld [vmem:[#allocation4_spill] sm:$0xff] }
 0x261   : > { %v3369_v45 = vunpack.c.l.bf16 %v3273_v51  ;;  %v2330_v13 = vmul.f32 %v2298_v30, %v5428_v19  ;;  %v2203_v16 = vunpack.c.l.bf16 %v2171_v1  ;;  %v1724_v17 = vunpack.c.l.bf16 %v1692_v33 }
 0x262   : > { %v2346_v48 = vmul.f32 %v2314_v36, %v5437_v54  ;;  %v1963_v3 = vmul.f32 1.0625, %v5493_v6  ;;  %v3005_v59 = vmul.f32 1.442695, %v2954_v43  ;;  %v2891_v24 = vmul.f32 %v2859_v49, %v5444_v31 }
 0x263   : > { %v3401_v47 = vsub.f32 0.0, %v3369_v45  ;;  %v2362_v63 = vpack.c.bf16 %v2330_v13, %v2330_v13  ;;  %v2235_v40 = vadd.f32 1.421875, %v2203_v16  ;;  %v1756_v23 = vadd.f32 1.0, %v1724_v17 }
 0x264   : > { %v2378_v26 = vpack.c.bf16 %v2346_v48, %v2346_v48  ;;  %v1995_v39 = vpack.c.bf16 %v1963_v3, %v1963_v3  ;;  %v5502_v58 = vpop.eup %4401  ;;  %v2975_v61 = vmul.f32 1.442695, %v2939_v12  ;;  %v5504_v30 = vunpack.c.l.bf16 %v1612_v27 }
 0x265   : > { %v3433_v2 = vpack.c.bf16 %v3401_v47, %v3401_v47  ;;  %v2394_v10 = vunpack.c.l.bf16 %v2362_v63  ;;  %v2267_v56 = vpack.c.bf16 %v2235_v40, %v2235_v40  ;;  %v1788_v0 = vpack.c.bf16 %v1756_v23, %v1756_v23 }
 0x266   : > { %v2410_v5 = vunpack.c.l.bf16 %v2378_v26  ;;  %v2027_v46 = vunpack.c.l.bf16 %v1995_v39  ;;  %v2923_v9 = vpack.c.bf16 %v2891_v24, %v2891_v24  ;;  %v1676_v45 = vmul.f32 0.328125, %v5504_v30  ;;  %v6314_v26 = vld [vmem:[#allocation5_spill] sm:$0xff] }
 0x267   : > { %v3497_v44 = vsel %vm3465_vm0, %v3433_v2, %v3273_v51  ;;  %v2426_v52 = vadd.f32 -0.28515625, %v2394_v10  ;;  %v2299_v60 = vunpack.c.l.bf16 %v2267_v56  ;;  %v1820_v51 = vunpack.c.l.bf16 %v1788_v0 }
 0x268   : > { %v3529_v29 = vunpack.c.l.bf16 %v3497_v44  ;;  %v2442_v31 = vadd.f32 -0.28515625, %v2410_v5  ;;  %v2059_v21 = vadd.f32 -1.453125, %v2027_v46  ;;  %v634_v36 = vadd.f32 %v633_v57, %v6313_v8 }
 0x269   : > { %v2458_v37 = vpack.c.bf16 %v2426_v52, %v2426_v52  ;;  %v2331_v4 = vmul.f32 %v2299_v60, %v5454_v15  ;;  %4403 = vrcp.f32 %v1820_v51  ;;  %v1708_v63 = vpack.c.bf16 %v1676_v45, %v1676_v45 }
 0x26a   : > { %v3593_v43 = vadd.f32 1.0, %v3529_v29  ;;  %v2474_v1 = vpack.c.bf16 %v2442_v31, %v2442_v31  ;;  %v2091_v47 = vpack.c.bf16 %v2059_v21, %v2059_v21  ;;  %v3290_v16 = vunpack.c.l.bf16 %v5358_v38 }
 0x26b   : > { %v2490_v28 = vunpack.c.l.bf16 %v2458_v37  ;;  %v2363_v33 = vpack.c.bf16 %v2331_v4, %v2331_v4  ;;  %4405 = vpow2.f32 %v3005_v59  ;;  %v2955_v12 = vunpack.c.l.bf16 %v2923_v9 }
 0x26c   : > { %v3625_v13 = vmul.f32 %v3593_v43, %v5435_v22  ;;  %v2506_v48 = vunpack.c.l.bf16 %v2474_v1  ;;  %v2123_v2 = vunpack.c.l.bf16 %v2091_v47  ;;  %v1740_v10 = vunpack.c.l.bf16 %v1708_v63  ;;  %v895_v22 = vpop.f32.mrf.mxu2 }
 0x26d   : > { %v2522_v49 = vmul.f32 %v2490_v28, %v5428_v19  ;;  %v2395_v27 = vunpack.c.l.bf16 %v2363_v33  ;;  %4407 = vpow2.f32 %v2975_v61  ;;  %v2780_v3 = vsub.f32 0.0, %v5486_v62 }
 0x26e   : > { %3657 = vst [vmem:[%s5280_s21 + $0x90] sm:$0xff] %v3625_v13  ;;  %v2538_v40 = vmul.f32 %v2506_v48, %v5437_v54  ;;  %v807_v24 = vadd.f32 %v6314_v26, %v634_v36  ;;  %v2155_v52 = vmul.f32 %v2123_v2, %v5493_v6  ;;  %v1772_v56 = vadd.f32 1.0, %v1740_v10  ;;  %v6315_v36 = vld [vmem:[#allocation31_spill] sm:$0xff] }
 0x26f   : > { %v2554_v17 = vpack.c.bf16 %v2522_v49, %v2522_v49  ;;  %v2427_v44 = vadd.f32 -0.28515625, %v2395_v27  ;;  %v4404_v39 = vpop.eup %4403  ;;  %v3306_v29 = vunpack.c.l.bf16 %v5366_v55  ;;  %v3007_v5 = vmul.f32 1.442695, %v2955_v12 }
 0x270   : > { %v2570_v59 = vpack.c.bf16 %v2538_v40, %v2538_v40  ;;  %v896_v0 = vadd.f32 %v895_v22, %v807_v24  ;;  %v2187_v46 = vpack.c.bf16 %v2155_v52, %v2155_v52  ;;  %v1884_v57 = vpack.c.bf16 %v4404_v39, %v4404_v39 }
 0x271   : > { %v2586_v23 = vunpack.c.l.bf16 %v2554_v17  ;;  %v2459_v60 = vpack.c.bf16 %v2427_v44, %v2427_v44  ;;  %v4406_v61 = vpop.eup %4405  ;;  %v3291_v31 = vunpack.c.l.bf16 %v5385_v42  ;;  %v2812_v9 = vpack.c.bf16 %v2780_v3, %v2780_v3 }
 0x272   : > { %v2602_v43 = vunpack.c.l.bf16 %v2570_v59  ;;  %v1804_v51 = vpack.c.bf16 %v1772_v56, %v1772_v56  ;;  %v2219_v21 = vunpack.c.l.bf16 %v2187_v46  ;;  %v5519_v45 = vunpack.c.l.bf16 %v1884_v57 }
 0x273   : > { %v2618_v37 = vadd.f32 0.25390625, %v2586_v23  ;;  %v2491_v4 = vunpack.c.l.bf16 %v2459_v60  ;;  %v4408_v13 = vpop.eup %4407  ;;  %4409 = vpow2.f32 %v3007_v5  ;;  %v1465_v49 = vadd.f32 %v6315_v36, %v896_v0 }
 0x274   : > { %v2634_v1 = vadd.f32 0.25390625, %v2602_v43  ;;  %v1836_v8 = vunpack.c.l.bf16 %v1804_v51  ;;  %v2251_v63 = vadd.f32 1.421875, %v2219_v21  ;;  %v1948_v48 = vmul.f32 1.0625, %v5519_v45 }
 0x275   : > { %v2650_v28 = vpack.c.bf16 %v2618_v37, %v2618_v37  ;;  %v2523_v47 = vmul.f32 %v2491_v4, %v5454_v15  ;;  %v3034_v12 = vpack.c.bf16 %v5502_v58, %v5502_v58  ;;  %v2844_v27 = vunpack.c.l.bf16 %v2812_v9 }
 0x276   : > { %v2666_v17 = vpack.c.bf16 %v2634_v1, %v2634_v1  ;;  %4411 = vrcp.f32 %v1836_v8  ;;  %v2283_v22 = vpack.c.bf16 %v2251_v63, %v2251_v63  ;;  %v1980_v40 = vpack.c.bf16 %v1948_v48, %v1948_v48 }
 0x277   : > { %v2682_v33 = vunpack.c.l.bf16 %v2650_v28  ;;  %v2555_v10 = vpack.c.bf16 %v2523_v47, %v2523_v47  ;;  %v3050_v26 = vpack.c.bf16 %v4406_v61, %v4406_v61  ;;  %v3035_v24 = vpack.c.bf16 %v4408_v13, %v4408_v13 }
 0x278   : > { %v2698_v3 = vunpack.c.l.bf16 %v2666_v17  ;;  %v5528_v23 = vadd.f32 %v5346_v34, %v1465_v49  ;;  %v2315_v56 = vunpack.c.l.bf16 %v2283_v22  ;;  %v2012_v39 = vunpack.c.l.bf16 %v1980_v40 }
 0x279   : > { %v2714_v2 = vmul.f32 %v2682_v33, %v5428_v19  ;;  %v2587_v52 = vunpack.c.l.bf16 %v2555_v10  ;;  %v5530_v59 = vpop.eup %4409  ;;  %v3098_v58 = vunpack.c.l.bf16 %v3034_v12  ;;  %v2876_v19 = vmul.f32 %v2844_v27, %v5486_v62 }
 0x27a   : > { %v2730_v5 = vmul.f32 %v2698_v3, %v5437_v54  ;;  %v1533_v0 = vmul.f32 0.70710677, %v5528_v23  ;;  %v2347_v46 = vmul.f32 %v2315_v56, %v5493_v6  ;;  %v2044_v57 = vadd.f32 -1.453125, %v2012_v39 }
 0x27b   : > { %v2746_v44 = vpack.c.bf16 %v2714_v2, %v2714_v2  ;;  %v2619_v60 = vadd.f32 0.25390625, %v2587_v52  ;;  %v3114_v9 = vunpack.c.l.bf16 %v3050_v26  ;;  %v3099_v51 = vunpack.c.l.bf16 %v3035_v24  ;;  %v1434_v26 = vpop.f32.mrf.mxu3 }
 0x27c   : > { %v4412_v61 = vpop.eup %4411  ;;  %v2762_v43 = vpack.c.bf16 %v2730_v5, %v2730_v5  ;;  %v5536_v28 = vpack.c.bf16 %v1533_v0, %v1533_v0  ;;  %v2379_v13 = vpack.c.bf16 %v2347_v46, %v2347_v46  ;;  %v2076_v1 = vpack.c.bf16 %v2044_v57, %v2044_v57 }
 0x27d   : > { %v3066_v37 = vunpack.c.l.bf16 %v2746_v44  ;;  %v2651_v21 = vpack.c.bf16 %v2619_v60, %v2619_v60  ;;  %v2908_v8 = vpack.c.bf16 %v2876_v19, %v2876_v19  ;;  %v1900_v62 = vpack.c.bf16 %v4412_v61, %v4412_v61 }
 0x27e   : > { %v3082_v54 = vunpack.c.l.bf16 %v2762_v43  ;;  %v1597_v36 = vand.u32 2147450879, %v5536_v28  ;;  %v2411_v47 = vunpack.c.l.bf16 %v2379_v13  ;;  %v2108_v63 = vunpack.c.l.bf16 %v2076_v1 }
 0x27f   : > { %v3130_v4 = vmul.f32 %v3098_v58, %v3066_v37  ;;  %v2683_v33 = vunpack.c.l.bf16 %v2651_v21  ;;  %v3051_v12 = vpack.c.bf16 %v5530_v59, %v5530_v59  ;;  %v5541_v17 = vunpack.c.l.bf16 %v1900_v62 }
 0x280   : > { %v3146_v48 = vmul.f32 %v3114_v9, %v3082_v54  ;;  %v5543_v27 = vunpack.c.l.bf16 %v1597_v36  ;;  %vm5547_vm1 = vcmp.lt.f32.partialorder %v3290_v16, 0.0  ;;  %v2443_v40 = vadd.f32 -0.28515625, %v2411_v47  ;;  %v1345_v16 = vpop.f32.mrf.mxu1 }
 0x281   : > { %v3162_v49 = vpack.c.bf16 %v3130_v4, %v3130_v4  ;;  %v2715_v22 = vmul.f32 %v2683_v33, %v5454_v15  ;;  %v2140_v3 = vmul.f32 %v2108_v63, %v5519_v45  ;;  %v2940_v44 = vunpack.c.l.bf16 %v2908_v8  ;;  %vm3450_vm4 = vmpackc.low %vm5547_vm1, %vm5547_vm1 }
 0x282   : > { %v3178_v24 = vpack.c.bf16 %v3146_v48, %v3146_v48  ;;  %v1964_v52 = vmul.f32 1.0625, %v5541_v17  ;;  %v1661_v56 = vmul.f32 0.328125, %v5543_v27  ;;  %v2475_v5 = vpack.c.bf16 %v2443_v40, %v2443_v40 }
 0x283   : > { %v3194_v2 = vunpack.c.l.bf16 %v3162_v49  ;;  %v2747_v58 = vpack.c.bf16 %v2715_v22, %v2715_v22  ;;  %v2172_v38 = vpack.c.bf16 %v2140_v3, %v2140_v3  ;;  %vm5557_vm2 = vcmp.lt.f32.partialorder %v3306_v29, 0.0 }
 0x284   : > { %v3210_v19 = vunpack.c.l.bf16 %v3178_v24  ;;  %v1996_v0 = vpack.c.bf16 %v1964_v52, %v1964_v52  ;;  %v1693_v37 = vpack.c.bf16 %v1661_v56, %v1661_v56  ;;  %v1435_v60 = vadd.f32 %v1434_v26, %v1345_v16  ;;  %vm3466_vm5 = vmpackc.low %vm5557_vm2, %vm5557_vm2 }
 0x285   : > { %v3226_v39 = vsub.f32 1.0, %v3194_v2  ;;  %v3067_v57 = vunpack.c.l.bf16 %v2747_v58  ;;  %v2507_v61 = vunpack.c.l.bf16 %v2475_v5  ;;  %v2204_v43 = vunpack.c.l.bf16 %v2172_v38 }
 0x286   : > { %v3242_v9 = vsub.f32 1.0, %v3210_v19  ;;  %v2028_v4 = vunpack.c.l.bf16 %v1996_v0  ;;  %v2796_v21 = vsub.f32 0.0, %v5504_v30  ;;  %v1725_v13 = vunpack.c.l.bf16 %v1693_v37 }
 0x287   : > { %v3258_v46 = vpack.c.bf16 %v3226_v39, %v3226_v39  ;;  %v3131_v54 = vmul.f32 %v3099_v51, %v3067_v57  ;;  %v2539_v55 = vmul.f32 %v2507_v61, %v5493_v6  ;;  %v2236_v29 = vadd.f32 1.421875, %v2204_v43 }
 0x288   : > { %v3274_v8 = vpack.c.bf16 %v3242_v9, %v3242_v9  ;;  %v2060_v62 = vadd.f32 -1.453125, %v2028_v4  ;;  %v1757_v36 = vadd.f32 1.0, %v1725_v13  ;;  %v1481_v49 = vadd.f32 %v1435_v60, %v5408_v14 }
 0x289   : > { %v3354_v1 = vunpack.c.l.bf16 %v3258_v46  ;;  %v3163_v47 = vpack.c.bf16 %v3131_v54, %v3131_v54  ;;  %v2571_v63 = vpack.c.bf16 %v2539_v55, %v2539_v55  ;;  %v2268_v48 = vpack.c.bf16 %v2236_v29, %v2236_v29 }
 0x28a   : > { %v3370_v2 = vunpack.c.l.bf16 %v3274_v8  ;;  %v2092_v22 = vpack.c.bf16 %v2060_v62, %v2060_v62  ;;  %v2828_v40 = vpack.c.bf16 %v2796_v21, %v2796_v21  ;;  %v1789_v3 = vpack.c.bf16 %v1757_v36, %v1757_v36 }
 0x28b   : > { %v3386_v33 = vsub.f32 0.0, %v3354_v1  ;;  %v3195_v24 = vunpack.c.l.bf16 %v3163_v47  ;;  %vm5566_vm3 = vcmp.lt.f32.partialorder %v3291_v31, 0.0  ;;  %v2603_v52 = vunpack.c.l.bf16 %v2571_v63  ;;  %v635_v63 = vpop.f32.mrf.mxu0 }
 0x28c   : > { %v2300_v56 = vunpack.c.l.bf16 %v2268_v48  ;;  %v3402_v14 = vsub.f32 0.0, %v3370_v2  ;;  %v2124_v39 = vunpack.c.l.bf16 %v2092_v22  ;;  %v1821_v58 = vunpack.c.l.bf16 %v1789_v3  ;;  %vm3451_vm6 = vmpackc.low %vm5566_vm3, %vm5566_vm3 }
 0x28d   : > { %v3418_v26 = vpack.c.bf16 %v3386_v33, %v3386_v33  ;;  %v5574_v5 = vadd.f32 %v5346_v34, %v1481_v49  ;;  %v3227_v16 = vsub.f32 1.0, %v3195_v24  ;;  %v2635_v19 = vadd.f32 0.25390625, %v2603_v52 }
 0x28e   : > { %v2332_v42 = vmul.f32 %v2300_v56, %v5519_v45  ;;  %v3434_v0 = vpack.c.bf16 %v3402_v14, %v3402_v14  ;;  %v2156_v37 = vmul.f32 %v2124_v39, %v5541_v17  ;;  %4413 = vrcp.f32 %v1821_v58  ;;  %v6322_v56 = vld [vmem:[#allocation7_spill] sm:$0xff] }
 0x28f   : > { %v3482_v38 = vsel %vm3450_vm4, %v3418_v26, %v3258_v46  ;;  %v3259_v10 = vpack.c.bf16 %v3227_v16, %v3227_v16  ;;  %v2667_v60 = vpack.c.bf16 %v2635_v19, %v2635_v19  ;;  %v2977_v61 = vmul.f32 1.442695, %v2940_v44 }
 0x290   : > { %v3514_v31 = vunpack.c.l.bf16 %v3482_v38  ;;  %v2364_v57 = vpack.c.bf16 %v2332_v42, %v2332_v42  ;;  %v3498_v43 = vsel %vm3466_vm5, %v3434_v0, %v3274_v8  ;;  %v2188_v46 = vpack.c.bf16 %v2156_v37, %v2156_v37 }
 0x291   : > { %v1549_v9 = vmul.f32 0.70710677, %v5574_v5  ;;  %v3530_v4 = vunpack.c.l.bf16 %v3498_v43  ;;  %v3355_v21 = vunpack.c.l.bf16 %v3259_v10  ;;  %v2699_v13 = vunpack.c.l.bf16 %v2667_v60 }
 0x292   : > { %v3578_v34 = vadd.f32 1.0, %v3514_v31  ;;  %v2396_v1 = vunpack.c.l.bf16 %v2364_v57  ;;  %v2220_v55 = vunpack.c.l.bf16 %v2188_v46  ;;  %v2860_v15 = vunpack.c.l.bf16 %v2828_v40  ;;  %v897_v46 = vpop.f32.mrf.mxu2 }
 0x293   : > { %v5583_v29 = vpack.c.bf16 %v1549_v9, %v1549_v9  ;;  %v3594_v62 = vadd.f32 1.0, %v3530_v4  ;;  %v3387_v36 = vsub.f32 0.0, %v3355_v21  ;;  %v2731_v44 = vmul.f32 %v2699_v13, %v5493_v6 }
 0x294   : > { %v3610_v54 = vmul.f32 %v3578_v34, %v5441_v20  ;;  %v2428_v49 = vadd.f32 -0.28515625, %v2396_v1  ;;  %v4414_v8 = vpop.eup %4413  ;;  %v3115_v33 = vunpack.c.l.bf16 %v3051_v12  ;;  %4415 = vpow2.f32 %v2977_v61  ;;  %v6323_v34 = vld [vmem:[#allocation8_spill] sm:$0xff] }
 0x295   : > { %v2252_v47 = vadd.f32 1.421875, %v2220_v55  ;;  %v1613_v20 = vand.u32 2147450879, %v5583_v29  ;;  %v3626_v48 = vmul.f32 %v3594_v62, %v5481_v25  ;;  %v3419_v2 = vpack.c.bf16 %v3387_v36, %v3387_v36 }
 0x296   : > { %3642 = vst [vmem:[%s5280_s21 + $0x18] sm:$0xff] %v3610_v54  ;;  %v2763_v22 = vpack.c.bf16 %v2731_v44, %v2731_v44  ;;  %v2460_v40 = vpack.c.bf16 %v2428_v49, %v2428_v49  ;;  %v2892_v3 = vmul.f32 %v2860_v15, %v5504_v30  ;;  %v1885_v26 = vpack.c.bf16 %v4414_v8, %v4414_v8  ;;  %v1436_v49 = vpop.f32.mrf.mxu3 }
 0x297   : > { %v2284_v6 = vpack.c.bf16 %v2252_v47, %v2252_v47  ;;  %v5596_v59 = vunpack.c.l.bf16 %v1613_v20  ;;  %3658 = vst [vmem:[%s5280_s21 + $0x98] sm:$0xff] %v3626_v48  ;;  %v3483_v12 = vsel %vm3451_vm6, %v3419_v2, %v3259_v10  ;;  %v636_v14 = vadd.f32 %v635_v63, %v6322_v56 }
 0x298   : > { %v3083_v24 = vunpack.c.l.bf16 %v2763_v22  ;;  %v2492_v52 = vunpack.c.l.bf16 %v2460_v40  ;;  %v3515_v25 = vunpack.c.l.bf16 %v3483_v12  ;;  %v5600_v58 = vunpack.c.l.bf16 %v1885_v26  ;;  %v1347_v22 = vpop.f32.mrf.mxu1  ;;  %v6324_v40 = vld [vmem:[#allocation33_spill] sm:$0xff] }
 0x299   : > { %v2316_v39 = vunpack.c.l.bf16 %v2284_v6  ;;  %v1677_v51 = vmul.f32 0.328125, %v5596_v59  ;;  %v3547_v38 = vmul.f32 0.5, %v5374_v32  ;;  %v2781_v19 = vsub.f32 0.0, %v5543_v27 }
 0x29a   : > { %v3147_v16 = vmul.f32 %v3115_v33, %v3083_v24  ;;  %v2524_v30 = vmul.f32 %v2492_v52, %v5519_v45  ;;  %v4416_v42 = vpop.eup %4415  ;;  %v3579_v31 = vadd.f32 1.0, %v3515_v25  ;;  %v1949_v37 = vmul.f32 1.0625, %v5600_v58 }
 0x29b   : > { %v2348_v0 = vmul.f32 %v2316_v39, %v5541_v17  ;;  %v1709_v10 = vpack.c.bf16 %v1677_v51, %v1677_v51  ;;  %v2924_v61 = vpack.c.bf16 %v2892_v3, %v2892_v3  ;;  %v809_v43 = vadd.f32 %v6323_v34, %v636_v14  ;;  %v5615_v14 = vld [vmem:[%s6234_s2] ss:$0 sm:$0xff] }
 0x29c   : > { %v3179_v60 = vpack.c.bf16 %v3147_v16, %v3147_v16  ;;  %v2556_v57 = vpack.c.bf16 %v2524_v30, %v2524_v30  ;;  %v3611_v32 = vmul.f32 %v3579_v31, %v3547_v38  ;;  %v1981_v4 = vpack.c.bf16 %v1949_v37, %v1949_v37 }
 0x29d   : > { %v2380_v9 = vpack.c.bf16 %v2348_v0, %v2348_v0  ;;  %v1741_v21 = vunpack.c.l.bf16 %v1709_v10  ;;  %v3307_v1 = vunpack.c.l.bf16 %v5430_v41  ;;  %v2813_v55 = vpack.c.bf16 %v2781_v19, %v2781_v19 }
 0x29e   : > { %v3211_v13 = vunpack.c.l.bf16 %v3179_v60  ;;  %v2588_v54 = vunpack.c.l.bf16 %v2556_v57  ;;  %3643 = vst [vmem:[%s5280_s21 + $0x20] sm:$0xff] %v3611_v32  ;;  %v2013_v62 = vunpack.c.l.bf16 %v1981_v4  ;;  %v898_v44 = vadd.f32 %v897_v46, %v809_v43 }
 0x29f   : > { %v2412_v15 = vunpack.c.l.bf16 %v2380_v9  ;;  %v1773_v36 = vadd.f32 1.0, %v1741_v21  ;;  %v3036_v47 = vpack.c.bf16 %v4416_v42, %v4416_v42  ;;  %v2956_v20 = vunpack.c.l.bf16 %v2924_v61 }
 0x2a0   : > { %v3243_v8 = vsub.f32 1.0, %v3211_v13  ;;  %v2620_v33 = vadd.f32 0.25390625, %v2588_v54  ;;  %v2045_v48 = vadd.f32 -1.453125, %v2013_v62  ;;  %v1466_v6 = vadd.f32 %v6324_v40, %v898_v44 }
 0x2a1   : > { %v2444_v63 = vadd.f32 -0.28515625, %v2412_v15  ;;  %v1805_v2 = vpack.c.bf16 %v1773_v36, %v1773_v36  ;;  %v2845_v26 = vunpack.c.l.bf16 %v2813_v55  ;;  %v1437_v12 = vadd.f32 %v1436_v49, %v1347_v22 }
 0x2a2   : > { %v3275_v3 = vpack.c.bf16 %v3243_v8, %v3243_v8  ;;  %v2652_v41 = vpack.c.bf16 %v2620_v33, %v2620_v33  ;;  %v2077_v52 = vpack.c.bf16 %v2045_v48, %v2045_v48  ;;  %v5618_v25 = vadd.f32 %v5615_v14, %v1466_v6  ;;  %v6327_v48 = vld [vmem:[#allocation34_spill] sm:$0xff] }
 0x2a3   : > { %v2476_v24 = vpack.c.bf16 %v2444_v63, %v2444_v63  ;;  %v1837_v56 = vunpack.c.l.bf16 %v1805_v2  ;;  %v3009_v38 = vmul.f32 1.442695, %v2956_v20  ;;  %v1482_v16 = vadd.f32 %v1437_v12, %v5412_v50  ;;  %v6328_v2 = vld [vmem:[#allocation12_spill] sm:$0xff] }
 0x2a4   : > { %v3371_v39 = vunpack.c.l.bf16 %v3275_v3  ;;  %v2684_v51 = vunpack.c.l.bf16 %v2652_v41  ;;  %v2109_v19 = vunpack.c.l.bf16 %v2077_v52  ;;  %v1534_v42 = vmul.f32 0.70710677, %v5618_v25 }
 0x2a5   : > { %v2508_v30 = vunpack.c.l.bf16 %v2476_v24  ;;  %4417 = vrcp.f32 %v1837_v56  ;;  %vm5622_vm7 = vcmp.lt.f32.partialorder %v3307_v1, 0.0  ;;  %v2877_v10 = vmul.f32 %v2845_v26, %v5543_v27 }
 0x2a6   : > { %v3403_v0 = vsub.f32 0.0, %v3371_v39  ;;  %v2716_v37 = vmul.f32 %v2684_v51, %v5519_v45  ;;  %v2141_v57 = vmul.f32 %v2109_v19, %v5600_v58  ;;  %v5630_v61 = vpack.c.bf16 %v1534_v42, %v1534_v42  ;;  %vm3467_vm8 = vmpackc.low %vm5622_vm7, %vm5622_vm7 }
 0x2a7   : > { %v2540_v60 = vmul.f32 %v2508_v30, %v5541_v17  ;;  %v5633_v50 = vadd.f32 %v5615_v14, %v1482_v16  ;;  %v3100_v46 = vunpack.c.l.bf16 %v3036_v47  ;;  %4419 = vpow2.f32 %v3009_v38  ;;  %v6329_v38 = vld [vmem:[#allocation36_spill] sm:$0xff]  ;;  %v6330_v16 = vld [vmem:[#allocation15_spill] sm:$0xff] }
 0x2a8   : > { %v3435_v34 = vpack.c.bf16 %v3403_v0, %v3403_v0  ;;  %v2748_v43 = vpack.c.bf16 %v2716_v37, %v2716_v37  ;;  %v2173_v45 = vpack.c.bf16 %v2141_v57, %v2141_v57  ;;  %v1598_v27 = vand.u32 2147450879, %v5630_v61 }
 0x2a9   : > { %v2572_v32 = vpack.c.bf16 %v2540_v60, %v2540_v60  ;;  %v2909_v21 = vpack.c.bf16 %v2877_v10, %v2877_v10  ;;  %v1550_v13 = vmul.f32 0.70710677, %v5633_v50  ;;  %v3563_v36 = vmul.f32 0.5, %v5422_v7 }
 0x2aa   : > { %v3499_v9 = vsel %vm3467_vm8, %v3435_v34, %v3275_v3  ;;  %v3068_v4 = vunpack.c.l.bf16 %v2748_v43  ;;  %v2205_v15 = vunpack.c.l.bf16 %v2173_v45  ;;  %v5640_v62 = vunpack.c.l.bf16 %v1598_v27 }
 0x2ab   : > { %v4418_v1 = vpop.eup %4417  ;;  %v3531_v54 = vunpack.c.l.bf16 %v3499_v9  ;;  %v2604_v55 = vunpack.c.l.bf16 %v2572_v32  ;;  %v5643_v8 = vpack.c.bf16 %v1550_v13, %v1550_v13  ;;  %v5648_v22 = vadd.f32 %v6328_v2, %v6327_v48 }
 0x2ac   : > { %v3132_v44 = vmul.f32 %v3100_v46, %v3068_v4  ;;  %v1901_v49 = vpack.c.bf16 %v4418_v1, %v4418_v1  ;;  %v2237_v20 = vadd.f32 1.421875, %v2205_v15  ;;  %v1662_v63 = vmul.f32 0.328125, %v5640_v62 }
 0x2ad   : > { %v3595_v33 = vadd.f32 1.0, %v3531_v54  ;;  %v2636_v47 = vadd.f32 0.25390625, %v2604_v55  ;;  %v1614_v3 = vand.u32 2147450879, %v5643_v8  ;;  %v4420_v7 = vpop.eup %4419  ;;  %v2941_v24 = vunpack.c.l.bf16 %v2909_v21 }
 0x2ae   : > { %v3164_v40 = vpack.c.bf16 %v3132_v44, %v3132_v44  ;;  %v5650_v6 = vunpack.c.l.bf16 %v1901_v49  ;;  %v2269_v12 = vpack.c.bf16 %v2237_v20, %v2237_v20  ;;  %v3292_v56 = vunpack.c.l.bf16 %v5469_v53  ;;  %v638_v49 = vpop.f32.mrf.mxu0 }
 0x2af   : > { %v3627_v41 = vmul.f32 %v3595_v33, %v3563_v36  ;;  %v2668_v26 = vpack.c.bf16 %v2636_v47, %v2636_v47  ;;  %v1694_v51 = vpack.c.bf16 %v1662_v63, %v1662_v63  ;;  %v5657_v30 = vadd.f32 %v6330_v16, %v6329_v38 }
 0x2b0   : > { %v3196_v52 = vunpack.c.l.bf16 %v3164_v40  ;;  %v1965_v39 = vmul.f32 1.0625, %v5650_v6  ;;  %v2301_v42 = vunpack.c.l.bf16 %v2269_v12  ;;  %v5660_v31 = vunpack.c.l.bf16 %v1614_v3 }
 0x2b1   : > { %3659 = vst [vmem:[%s5280_s21 + $0xa0] sm:$0xff] %v3627_v41  ;;  %v2700_v19 = vunpack.c.l.bf16 %v2668_v26  ;;  %v3052_v37 = vpack.c.bf16 %v4420_v7, %v4420_v7  ;;  %v1726_v60 = vunpack.c.l.bf16 %v1694_v51  ;;  %v2979_v34 = vmul.f32 1.442695, %v2941_v24  ;;  %v6333_v26 = vld [vmem:[#allocation10_spill] sm:$0xff] }
 0x2b2   : > { %v3228_v0 = vsub.f32 1.0, %v3196_v52  ;;  %v1997_v10 = vpack.c.bf16 %v1965_v39, %v1965_v39  ;;  %v2333_v53 = vmul.f32 %v2301_v42, %v5600_v58  ;;  %v1678_v43 = vmul.f32 0.328125, %v5660_v31  ;;  %v6334_v24 = vld [vmem:[#allocation38_spill] sm:$0xff] }
 0x2b3   : > { %v2732_v57 = vmul.f32 %v2700_v19, %v5541_v17  ;;  %vm5665_vm9 = vcmp.lt.f32.partialorder %v3292_v56, 0.0  ;;  %v1758_v27 = vadd.f32 1.0, %v1726_v60  ;;  %v2797_v21 = vsub.f32 0.0, %v5596_v59  ;;  %v6335_v52 = vld [vmem:[#allocation18_spill] sm:$0xff] }
 0x2b4   : > { %v3260_v46 = vpack.c.bf16 %v3228_v0, %v3228_v0  ;;  %v2029_v45 = vunpack.c.l.bf16 %v1997_v10  ;;  %v2365_v4 = vpack.c.bf16 %v2333_v53, %v2333_v53  ;;  %v1710_v13 = vpack.c.bf16 %v1678_v43, %v1678_v43  ;;  %vm3452_vm10 = vmpackc.low %vm5665_vm9, %vm5665_vm9  ;;  %v1439_v43 = vpop.f32.mrf.mxu3 }
 0x2b5   : > { %v2764_v9 = vpack.c.bf16 %v2732_v57, %v2732_v57  ;;  %v3116_v54 = vunpack.c.l.bf16 %v3052_v37  ;;  %v1790_v55 = vpack.c.bf16 %v1758_v27, %v1758_v27  ;;  %4421 = vpow2.f32 %v2979_v34  ;;  %v900_v34 = vpop.f32.mrf.mxu2 }
 0x2b6   : > { %v3356_v1 = vunpack.c.l.bf16 %v3260_v46  ;;  %v2061_v17 = vadd.f32 -1.453125, %v2029_v45  ;;  %v2397_v36 = vunpack.c.l.bf16 %v2365_v4  ;;  %v1742_v44 = vunpack.c.l.bf16 %v1710_v13  ;;  %v6338_v45 = vld [vmem:[#allocation11_spill] sm:$0xff] }
 0x2b7   : > { %v3084_v15 = vunpack.c.l.bf16 %v2764_v9  ;;  %v3308_v47 = vunpack.c.l.bf16 %v5490_v18  ;;  %v1822_v63 = vunpack.c.l.bf16 %v1790_v55  ;;  %v2829_v40 = vpack.c.bf16 %v2797_v21, %v2797_v21  ;;  %v1350_v21 = vpop.f32.mrf.mxu1 }
 0x2b8   : > { %v3388_v33 = vsub.f32 0.0, %v3356_v1  ;;  %v2093_v20 = vpack.c.bf16 %v2061_v17, %v2061_v17  ;;  %v2429_v2 = vadd.f32 -0.28515625, %v2397_v36  ;;  %v1774_v3 = vadd.f32 1.0, %v1742_v44 }
 0x2b9   : > { %v3148_v48 = vmul.f32 %v3116_v54, %v3084_v15  ;;  %4423 = vrcp.f32 %v1822_v63  ;;  %v639_v12 = vadd.f32 %v638_v49, %v6333_v26  ;;  %v5674_v56 = vadd.f32 %v6335_v52, %v6334_v24 }
 0x2ba   : > { %v3420_v7 = vpack.c.bf16 %v3388_v33, %v3388_v33  ;;  %v2125_v41 = vunpack.c.l.bf16 %v2093_v20  ;;  %v2461_v39 = vpack.c.bf16 %v2429_v2, %v2429_v2  ;;  %v1806_v51 = vpack.c.bf16 %v1774_v3, %v1774_v3  ;;  %v6339_v20 = vld [vmem:[#allocation35_spill] sm:$0xff] }
 0x2bb   : > { %v3180_v18 = vpack.c.bf16 %v3148_v48, %v3148_v48  ;;  %v3548_v16 = vmul.f32 0.5, %v5463_v35  ;;  %v5681_v19 = vmul.f32 0.5, %v5478_v11  ;;  %v4422_v0 = vpop.eup %4421  ;;  %vm5684_vm11 = vcmp.lt.f32.partialorder %v3308_v47, 0.0 }
 0x2bc   : > { %v3484_v38 = vsel %vm3452_vm10, %v3420_v7, %v3260_v46  ;;  %v2157_v42 = vmul.f32 %v2125_v41, %v5650_v6  ;;  %v2493_v57 = vunpack.c.l.bf16 %v2461_v39  ;;  %v1838_v53 = vunpack.c.l.bf16 %v1806_v51  ;;  %vm3468_vm12 = vmpackc.low %vm5684_vm11, %vm5684_vm11 }
 0x2bd   : > { %v3516_v37 = vunpack.c.l.bf16 %v3484_v38  ;;  %v3212_v10 = vunpack.c.l.bf16 %v3180_v18  ;;  %v2861_v46 = vunpack.c.l.bf16 %v2829_v40  ;;  %v2782_v35 = vsub.f32 0.0, %v5640_v62 }
 0x2be   : > { %v2189_v32 = vpack.c.bf16 %v2157_v42, %v2157_v42  ;;  %v812_v11 = vadd.f32 %v6338_v45, %v639_v12  ;;  %v2525_v4 = vmul.f32 %v2493_v57, %v5600_v58  ;;  %4425 = vrcp.f32 %v1838_v53 }
 0x2bf   : > { %v3580_v27 = vadd.f32 1.0, %v3516_v37  ;;  %v3244_v9 = vsub.f32 1.0, %v3212_v10  ;;  %v4424_v13 = vpop.eup %4423  ;;  %v3037_v1 = vpack.c.bf16 %v4422_v0, %v4422_v0  ;;  %v1440_v55 = vadd.f32 %v1439_v43, %v1350_v21 }
 0x2c0   : > { %v2221_v54 = vunpack.c.l.bf16 %v2189_v32  ;;  %v901_v17 = vadd.f32 %v900_v34, %v812_v11  ;;  %v2557_v44 = vpack.c.bf16 %v2525_v4, %v2525_v4  ;;  %v1886_v49 = vpack.c.bf16 %v4424_v13, %v4424_v13 }
 0x2c1   : > { %v3612_v15 = vmul.f32 %v3580_v27, %v3548_v16  ;;  %v3276_v36 = vpack.c.bf16 %v3244_v9, %v3244_v9  ;;  %v2893_v47 = vmul.f32 %v2861_v46, %v5596_v59  ;;  %v1483_v48 = vadd.f32 %v1440_v55, %v5648_v22 }
 0x2c2   : > { %v2253_v33 = vadd.f32 1.421875, %v2221_v54  ;;  %v1467_v63 = vadd.f32 %v6339_v20, %v901_v17  ;;  %v2589_v40 = vunpack.c.l.bf16 %v2557_v44  ;;  %v5695_v3 = vunpack.c.l.bf16 %v1886_v49 }
 0x2c3   : > { %3644 = vst [vmem:[%s5280_s21 + $0x28] sm:$0xff] %v3612_v15  ;;  %v3372_v2 = vunpack.c.l.bf16 %v3276_v36  ;;  %v2814_v7 = vpack.c.bf16 %v2782_v35, %v2782_v35  ;;  %v3101_v41 = vunpack.c.l.bf16 %v3037_v1  ;;  %v2798_v12 = vsub.f32 0.0, %v5660_v31 }
 0x2c4   : > { %v2285_v26 = vpack.c.bf16 %v2253_v33, %v2253_v33  ;;  %v5699_v24 = vadd.f32 %v5615_v14, %v1467_v63  ;;  %v4426_v52 = vpop.eup %4425  ;;  %v2621_v59 = vadd.f32 0.25390625, %v2589_v40  ;;  %v1950_v39 = vmul.f32 1.0625, %v5695_v3 }
 0x2c5   : > { %v3404_v18 = vsub.f32 0.0, %v3372_v2  ;;  %v5703_v22 = vadd.f32 %v5615_v14, %v1483_v48  ;;  %v2925_v38 = vpack.c.bf16 %v2893_v47, %v2893_v47  ;;  %v1902_v16 = vpack.c.bf16 %v4426_v52, %v4426_v52 }
 0x2c6   : > { %v2317_v51 = vunpack.c.l.bf16 %v2285_v26  ;;  %v1535_v42 = vmul.f32 0.70710677, %v5699_v24  ;;  %v2653_v37 = vpack.c.bf16 %v2621_v59, %v2621_v59  ;;  %v1982_v10 = vpack.c.bf16 %v1950_v39, %v1950_v39 }
 0x2c7   : > { %v3436_v0 = vpack.c.bf16 %v3404_v18, %v3404_v18  ;;  %v2846_v57 = vunpack.c.l.bf16 %v2814_v7  ;;  %v5710_v34 = vunpack.c.l.bf16 %v1902_v16  ;;  %v2830_v43 = vpack.c.bf16 %v2798_v12, %v2798_v12 }
 0x2c8   : > { %v2349_v53 = vmul.f32 %v2317_v51, %v5650_v6  ;;  %v5712_v32 = vpack.c.bf16 %v1535_v42, %v1535_v42  ;;  %v2685_v35 = vunpack.c.l.bf16 %v2653_v37  ;;  %v2014_v45 = vunpack.c.l.bf16 %v1982_v10 }
 0x2c9   : > { %v3500_v46 = vsel %vm3468_vm12, %v3436_v0, %v3276_v36  ;;  %v1551_v11 = vmul.f32 0.70710677, %v5703_v22  ;;  %v1966_v4 = vmul.f32 1.0625, %v5710_v34  ;;  %v2957_v13 = vunpack.c.l.bf16 %v2925_v38 }
 0x2ca   : > { %v3532_v27 = vunpack.c.l.bf16 %v3500_v46  ;;  %v2381_v9 = vpack.c.bf16 %v2349_v53, %v2349_v53  ;;  %v1599_v60 = vand.u32 2147450879, %v5712_v32  ;;  %v2717_v21 = vmul.f32 %v2685_v35, %v5600_v58 }
 0x2cb   : > { %v2046_v1 = vadd.f32 -1.453125, %v2014_v45  ;;  %v2878_v54 = vmul.f32 %v2846_v57, %v5640_v62  ;;  %v1998_v15 = vpack.c.bf16 %v1966_v4, %v1966_v4  ;;  %v2862_v33 = vunpack.c.l.bf16 %v2830_v43 }
 0x2cc   : > { %v3596_v17 = vadd.f32 1.0, %v3532_v27  ;;  %v2413_v55 = vunpack.c.l.bf16 %v2381_v9  ;;  %v5719_v36 = vunpack.c.l.bf16 %v1599_v60  ;;  %v2749_v44 = vpack.c.bf16 %v2717_v21, %v2717_v21  ;;  %v640_v27 = vpop.f32.mrf.mxu0 }
 0x2cd   : > { %v2078_v49 = vpack.c.bf16 %v2046_v1, %v2046_v1  ;;  %v5721_v47 = vpack.c.bf16 %v1551_v11, %v1551_v11  ;;  %v2030_v48 = vunpack.c.l.bf16 %v1998_v15  ;;  %v2910_v62 = vpack.c.bf16 %v2878_v54, %v2878_v54 }
 0x2ce   : > { %v3628_v20 = vmul.f32 %v3596_v17, %v5681_v19  ;;  %v2445_v63 = vadd.f32 -0.28515625, %v2413_v55  ;;  %v1663_v58 = vmul.f32 0.328125, %v5719_v36  ;;  %v3069_v2 = vunpack.c.l.bf16 %v2749_v44  ;;  %v6340_v44 = vld [vmem:[#allocation13_spill] sm:$0xff] }
 0x2cf   : > { %v2110_v40 = vunpack.c.l.bf16 %v2078_v49  ;;  %v1615_v7 = vand.u32 2147450879, %v5721_v47  ;;  %v3011_v12 = vmul.f32 1.442695, %v2957_v13  ;;  %v2062_v52 = vadd.f32 -1.453125, %v2030_v48 }
 0x2d0   : > { %3660 = vst [vmem:[%s5280_s21 + $0xa8] sm:$0xff] %v3628_v20  ;;  %v2477_v26 = vpack.c.bf16 %v2445_v63, %v2445_v63  ;;  %v1695_v18 = vpack.c.bf16 %v1663_v58, %v1663_v58  ;;  %v3133_v59 = vmul.f32 %v3101_v41, %v3069_v2  ;;  %v5728_v39 = vmul.f32 0.5, %v5528_v23 }
 0x2d1   : > { %v2142_v19 = vmul.f32 %v2110_v40, %v5695_v3  ;;  %v5731_v51 = vunpack.c.l.bf16 %v1615_v7  ;;  %v2094_v16 = vpack.c.bf16 %v2062_v52, %v2062_v52  ;;  %v2894_v42 = vmul.f32 %v2862_v33, %v5660_v31 }
 0x2d2   : > { %v2509_v38 = vunpack.c.l.bf16 %v2477_v26  ;;  %v1727_v0 = vunpack.c.l.bf16 %v1695_v18  ;;  %v3165_v37 = vpack.c.bf16 %v3133_v59, %v3133_v59  ;;  %v2942_v57 = vunpack.c.l.bf16 %v2910_v62 }
 0x2d3   : > { %v2174_v10 = vpack.c.bf16 %v2142_v19, %v2142_v19  ;;  %v1679_v53 = vmul.f32 0.328125, %v5731_v51  ;;  %4427 = vpow2.f32 %v3011_v12  ;;  %v2126_v41 = vunpack.c.l.bf16 %v2094_v16  ;;  %v902_v12 = vpop.f32.mrf.mxu2  ;;  %v6343_v19 = vld [vmem:[#allocation14_spill] sm:$0xff]  ;;  %v1441_v16 = vpop.f32.mrf.mxu3 }
 0x2d4   : > { %v2541_v43 = vmul.f32 %v2509_v38, %v5650_v6  ;;  %v1759_v23 = vadd.f32 1.0, %v1727_v0  ;;  %v3197_v46 = vunpack.c.l.bf16 %v3165_v37  ;;  %v3293_v35 = vunpack.c.l.bf16 %v5536_v28 }
 0x2d5   : > { %v2206_v45 = vunpack.c.l.bf16 %v2174_v10  ;;  %v1711_v11 = vpack.c.bf16 %v1679_v53, %v1679_v53  ;;  %v2158_v31 = vmul.f32 %v2126_v41, %v5710_v34  ;;  %v2926_v4 = vpack.c.bf16 %v2894_v42, %v2894_v42  ;;  %v1352_v41 = vpop.f32.mrf.mxu1 }
 0x2d6   : > { %v2573_v9 = vpack.c.bf16 %v2541_v43, %v2541_v43  ;;  %v1791_v60 = vpack.c.bf16 %v1759_v23, %v1759_v23  ;;  %v3229_v21 = vsub.f32 1.0, %v3197_v46  ;;  %v2981_v1 = vmul.f32 1.442695, %v2942_v57 }
 0x2d7   : > { %v2238_v13 = vadd.f32 1.421875, %v2206_v45  ;;  %v1743_v54 = vunpack.c.l.bf16 %v1711_v11  ;;  %v2190_v55 = vpack.c.bf16 %v2158_v31, %v2158_v31  ;;  %v641_v49 = vadd.f32 %v640_v27, %v6340_v44 }
 0x2d8   : > { %v2605_v17 = vunpack.c.l.bf16 %v2573_v9  ;;  %v1823_v15 = vunpack.c.l.bf16 %v1791_v60  ;;  %v3261_v33 = vpack.c.bf16 %v3229_v21, %v3229_v21  ;;  %vm5739_vm13 = vcmp.lt.f32.partialorder %v3293_v35, 0.0 }
 0x2d9   : > { %v2270_v20 = vpack.c.bf16 %v2238_v13, %v2238_v13  ;;  %v1775_v63 = vadd.f32 1.0, %v1743_v54  ;;  %v4428_v48 = vpop.eup %4427  ;;  %v2222_v2 = vunpack.c.l.bf16 %v2190_v55  ;;  %v2958_v40 = vunpack.c.l.bf16 %v2926_v4  ;;  %vm3453_vm14 = vmpackc.low %vm5739_vm13, %vm5739_vm13  ;;  %v6344_v4 = vld [vmem:[#allocation37_spill] sm:$0xff] }
 0x2da   : > { %v2637_v58 = vadd.f32 0.25390625, %v2605_v17  ;;  %4429 = vrcp.f32 %v1823_v15  ;;  %v3357_v62 = vunpack.c.l.bf16 %v3261_v33  ;;  %v3309_v18 = vunpack.c.l.bf16 %v5583_v29 }
 0x2db   : > { %v2302_v7 = vunpack.c.l.bf16 %v2270_v20  ;;  %4431 = vpow2.f32 %v2981_v1  ;;  %v1807_v26 = vpack.c.bf16 %v1775_v63, %v1775_v63  ;;  %v2254_v59 = vadd.f32 1.421875, %v2222_v2 }
 0x2dc   : > { %v2669_v52 = vpack.c.bf16 %v2637_v58, %v2637_v58  ;;  %v814_v38 = vadd.f32 %v6343_v19, %v641_v49  ;;  %v3389_v42 = vsub.f32 0.0, %v3357_v62  ;;  %v3053_v0 = vpack.c.bf16 %v4428_v48, %v4428_v48 }
 0x2dd   : > { %v2334_v37 = vmul.f32 %v2302_v7, %v5695_v3  ;;  %v1839_v10 = vunpack.c.l.bf16 %v1807_v26  ;;  %v2286_v53 = vpack.c.bf16 %v2254_v59, %v2254_v59  ;;  %v3013_v43 = vmul.f32 1.442695, %v2958_v40 }
 0x2de   : > { %v2701_v57 = vunpack.c.l.bf16 %v2669_v52  ;;  %v903_v23 = vadd.f32 %v902_v12, %v814_v38  ;;  %v3421_v46 = vpack.c.bf16 %v3389_v42, %v3389_v42  ;;  %v1442_v45 = vadd.f32 %v1441_v16, %v1352_v41 }
 0x2df   : > { %v2366_v35 = vpack.c.bf16 %v2334_v37, %v2334_v37  ;;  %4433 = vrcp.f32 %v1839_v10  ;;  %v5751_v9 = vmul.f32 0.5, %v5574_v5  ;;  %v2318_v31 = vunpack.c.l.bf16 %v2286_v53 }
 0x2e0   : > { %v4430_v11 = vpop.eup %4429  ;;  %v2733_v27 = vmul.f32 %v2701_v57, %v5650_v6  ;;  %v1468_v60 = vadd.f32 %v6344_v4, %v903_v23  ;;  %v3485_v13 = vsel %vm3453_vm14, %v3421_v46, %v3261_v33  ;;  %v1484_v17 = vadd.f32 %v1442_v45, %v5657_v30 }
 0x2e1   : > { %v4432_v21 = vpop.eup %4431  ;;  %v2398_v1 = vunpack.c.l.bf16 %v2366_v35  ;;  %v1887_v54 = vpack.c.bf16 %v4430_v11, %v4430_v11  ;;  %v3517_v55 = vunpack.c.l.bf16 %v3485_v13  ;;  %v2350_v44 = vmul.f32 %v2318_v31, %v5710_v34 }
 0x2e2   : > { %v2765_v15 = vpack.c.bf16 %v2733_v27, %v2733_v27  ;;  %4435 = vpow2.f32 %v3013_v43  ;;  %v3117_v49 = vunpack.c.l.bf16 %v3053_v0  ;;  %v5759_v5 = vadd.f32 %v5615_v14, %v1468_v60 }
 0x2e3   : > { %v2430_v28 = vadd.f32 -0.28515625, %v2398_v1  ;;  %v5756_v6 = vunpack.c.l.bf16 %v1887_v54  ;;  %v3581_v20 = vadd.f32 1.0, %v3517_v55  ;;  %v3038_v48 = vpack.c.bf16 %v4432_v21, %v4432_v21 }
 0x2e4   : > { %v3085_v63 = vunpack.c.l.bf16 %v2765_v15  ;;  %v2382_v33 = vpack.c.bf16 %v2350_v44, %v2350_v44  ;;  %v1536_v40 = vmul.f32 0.70710677, %v5759_v5  ;;  %v5764_v62 = vadd.f32 %v5615_v14, %v1484_v17 }
 0x2e5   : > { %v4434_v58 = vpop.eup %4433  ;;  %v2462_v2 = vpack.c.bf16 %v2430_v28, %v2430_v28  ;;  %v1951_v30 = vmul.f32 1.0625, %v5756_v6  ;;  %v3613_v7 = vmul.f32 %v3581_v20, %v5728_v39  ;;  %v2783_v52 = vsub.f32 0.0, %v5719_v36 }
 0x2e6   : > { %v3149_v26 = vmul.f32 %v3117_v49, %v3085_v63  ;;  %v2414_v12 = vunpack.c.l.bf16 %v2382_v33  ;;  %v1903_v38 = vpack.c.bf16 %v4434_v58, %v4434_v58  ;;  %v5768_v16 = vpack.c.bf16 %v1536_v40, %v1536_v40 }
 0x2e7   : > { %v2494_v59 = vunpack.c.l.bf16 %v2462_v2  ;;  %v1983_v19 = vpack.c.bf16 %v1951_v30, %v1951_v30  ;;  %3645 = vst [vmem:[%s5280_s21 + $0x30] sm:$0xff] %v3613_v7  ;;  %v5773_v37 = vunpack.c.l.bf16 %v3038_v48  ;;  %v5776_v10 = vmul.f32 0.5, %v5618_v25 }
 0x2e8   : > { %v5770_v42 = vpop.eup %4435  ;;  %v3181_v0 = vpack.c.bf16 %v3149_v26, %v3149_v26  ;;  %v2446_v57 = vadd.f32 -0.28515625, %v2414_v12  ;;  %v5779_v43 = vunpack.c.l.bf16 %v1903_v38  ;;  %v1552_v41 = vmul.f32 0.70710677, %v5764_v62 }
 0x2e9   : > { %v2526_v39 = vmul.f32 %v2494_v59, %v5695_v3  ;;  %v2015_v53 = vunpack.c.l.bf16 %v1983_v19  ;;  %vm5784_vm15 = vcmp.lt.f32.partialorder %v3309_v18, 0.0  ;;  %v2815_v45 = vpack.c.bf16 %v2783_v52, %v2783_v52 }
 0x2ea   : > { %v3213_v23 = vunpack.c.l.bf16 %v3181_v0  ;;  %v2478_v35 = vpack.c.bf16 %v2446_v57, %v2446_v57  ;;  %v1600_v25 = vand.u32 2147450879, %v5768_v16  ;;  %v3054_v27 = vpack.c.bf16 %v5770_v42, %v5770_v42  ;;  %vm3469_vm0 = vmpackc.low %vm5784_vm15, %vm5784_vm15 }
 0x2eb   : > { %v2558_v11 = vpack.c.bf16 %v2526_v39, %v2526_v39  ;;  %v2047_v31 = vadd.f32 -1.453125, %v2015_v53  ;;  %v1967_v4 = vmul.f32 1.0625, %v5779_v43  ;;  %v2799_v13 = vsub.f32 0.0, %v5731_v51 }
 0x2ec   : > { %v3245_v60 = vsub.f32 1.0, %v3213_v23  ;;  %v2510_v21 = vunpack.c.l.bf16 %v2478_v35  ;;  %v5793_v29 = vunpack.c.l.bf16 %v1600_v25  ;;  %v5795_v17 = vpack.c.bf16 %v1552_v41, %v1552_v41 }
 0x2ed   : > { %v2590_v18 = vunpack.c.l.bf16 %v2558_v11  ;;  %v2079_v1 = vpack.c.bf16 %v2047_v31, %v2047_v31  ;;  %v1999_v54 = vpack.c.bf16 %v1967_v4, %v1967_v4  ;;  %v2847_v44 = vunpack.c.l.bf16 %v2815_v45 }
 0x2ee   : > { %v3277_v55 = vpack.c.bf16 %v3245_v60, %v3245_v60  ;;  %v2542_v15 = vmul.f32 %v2510_v21, %v5710_v34  ;;  %v1664_v49 = vmul.f32 0.328125, %v5793_v29  ;;  %v1616_v48 = vand.u32 2147450879, %v5795_v17 }
 0x2ef   : > { %v2622_v28 = vadd.f32 0.25390625, %v2590_v18  ;;  %v2111_v20 = vunpack.c.l.bf16 %v2079_v1  ;;  %v2031_v63 = vunpack.c.l.bf16 %v1999_v54  ;;  %v2831_v2 = vpack.c.bf16 %v2799_v13, %v2799_v13 }
 0x2f0   : > { %v3373_v33 = vunpack.c.l.bf16 %v3277_v55  ;;  %v2574_v58 = vpack.c.bf16 %v2542_v15, %v2542_v15  ;;  %v1696_v30 = vpack.c.bf16 %v1664_v49, %v1664_v49  ;;  %v5801_v12 = vunpack.c.l.bf16 %v1616_v48 }
 0x2f1   : > { %v2654_v40 = vpack.c.bf16 %v2622_v28, %v2622_v28  ;;  %v2143_v7 = vmul.f32 %v2111_v20, %v5756_v6  ;;  %v2063_v26 = vadd.f32 -1.453125, %v2031_v63  ;;  %v2879_v19 = vmul.f32 %v2847_v44, %v5719_v36 }
 0x2f2   : > { %v3405_v52 = vsub.f32 0.0, %v3373_v33  ;;  %v2606_v59 = vunpack.c.l.bf16 %v2574_v58  ;;  %v1728_v38 = vunpack.c.l.bf16 %v1696_v30  ;;  %v1680_v53 = vmul.f32 0.328125, %v5801_v12 }
 0x2f3   : > { %v2686_v0 = vunpack.c.l.bf16 %v2654_v40  ;;  %v2175_v57 = vpack.c.bf16 %v2143_v7, %v2143_v7  ;;  %v2095_v39 = vpack.c.bf16 %v2063_v26, %v2063_v26  ;;  %v2863_v35 = vunpack.c.l.bf16 %v2831_v2  ;;  %v643_v26 = vpop.f32.mrf.mxu0 }
 0x2f4   : > { %v3437_v41 = vpack.c.bf16 %v3405_v52, %v3405_v52  ;;  %v2638_v23 = vadd.f32 0.25390625, %v2606_v59  ;;  %v1760_v45 = vadd.f32 1.0, %v1728_v38  ;;  %v1712_v4 = vpack.c.bf16 %v1680_v53, %v1680_v53  ;;  %v6347_v53 = vld [vmem:[#allocation16_spill] sm:$0xff] }
 0x2f5   : > { %v2718_v25 = vmul.f32 %v2686_v0, %v5695_v3  ;;  %v2207_v11 = vunpack.c.l.bf16 %v2175_v57  ;;  %v2127_v31 = vunpack.c.l.bf16 %v2095_v39  ;;  %v2911_v21 = vpack.c.bf16 %v2879_v19, %v2879_v19 }
 0x2f6   : > { %v3501_v36 = vsel %vm3469_vm0, %v3437_v41, %v3277_v55  ;;  %v2670_v60 = vpack.c.bf16 %v2638_v23, %v2638_v23  ;;  %v1792_v13 = vpack.c.bf16 %v1760_v45, %v1760_v45  ;;  %v2895_v49 = vmul.f32 %v2863_v35, %v5731_v51 }
 0x2f7   : > { %v3533_v18 = vunpack.c.l.bf16 %v3501_v36  ;;  %v2750_v1 = vpack.c.bf16 %v2718_v25, %v2718_v25  ;;  %v2239_v54 = vadd.f32 1.421875, %v2207_v11  ;;  %v2159_v15 = vmul.f32 %v2127_v31, %v5779_v43  ;;  %v905_v25 = vpop.f32.mrf.mxu2 }
 0x2f8   : > { %v2702_v44 = vunpack.c.l.bf16 %v2670_v60  ;;  %v1824_v46 = vunpack.c.l.bf16 %v1792_v13  ;;  %v1744_v28 = vunpack.c.l.bf16 %v1712_v4  ;;  %v2943_v33 = vunpack.c.l.bf16 %v2911_v21  ;;  %v6348_v4 = vld [vmem:[#allocation17_spill] sm:$0xff] }
 0x2f9   : > { %v3597_v20 = vadd.f32 1.0, %v3533_v18  ;;  %v3070_v63 = vunpack.c.l.bf16 %v2750_v1  ;;  %v2271_v3 = vpack.c.bf16 %v2239_v54, %v2239_v54  ;;  %v2191_v48 = vpack.c.bf16 %v2159_v15, %v2159_v15 }
 0x2fa   : > { %v2734_v55 = vmul.f32 %v2702_v44, %v5710_v34  ;;  %4437 = vrcp.f32 %v1824_v46  ;;  %v1776_v58 = vadd.f32 1.0, %v1744_v28  ;;  %v3294_v51 = vunpack.c.l.bf16 %v5630_v61 }
 0x2fb   : > { %v3629_v2 = vmul.f32 %v3597_v20, %v5751_v9  ;;  %v3134_v30 = vmul.f32 %v5773_v37, %v3070_v63  ;;  %v2303_v40 = vunpack.c.l.bf16 %v2271_v3  ;;  %v2223_v7 = vunpack.c.l.bf16 %v2191_v48  ;;  %v6351_v63 = vld [vmem:[#allocation39_spill] sm:$0xff] }
 0x2fc   : > { %v2766_v52 = vpack.c.bf16 %v2734_v55, %v2734_v55  ;;  %v2927_v59 = vpack.c.bf16 %v2895_v49, %v2895_v49  ;;  %v1808_v19 = vpack.c.bf16 %v1776_v58, %v1776_v58  ;;  %v5817_v0 = vmul.f32 0.5, %v5633_v50 }
 0x2fd   : > { %3661 = vst [vmem:[%s5280_s21 + $0xb0] sm:$0xff] %v3629_v2  ;;  %v3166_v38 = vpack.c.bf16 %v3134_v30, %v3134_v30  ;;  %v2335_v34 = vmul.f32 %v2303_v40, %v5756_v6  ;;  %v2255_v57 = vadd.f32 1.421875, %v2223_v7  ;;  %v3118_v9 = vunpack.c.l.bf16 %v3054_v27 }
 0x2fe   : > { %v3086_v39 = vunpack.c.l.bf16 %v2766_v52  ;;  %v1840_v37 = vunpack.c.l.bf16 %v1808_v19  ;;  %v644_v41 = vadd.f32 %v643_v26, %v6347_v53  ;;  %v2983_v35 = vmul.f32 1.442695, %v2943_v33 }
 0x2ff   : > { %v3198_v61 = vunpack.c.l.bf16 %v3166_v38  ;;  %v2367_v23 = vpack.c.bf16 %v2335_v34, %v2335_v34  ;;  %v2287_v45 = vpack.c.bf16 %v2255_v57, %v2255_v57  ;;  %v2959_v50 = vunpack.c.l.bf16 %v2927_v59 }
 0x300   : > { %v4438_v11 = vpop.eup %4437  ;;  %v3150_v31 = vmul.f32 %v3118_v9, %v3086_v39  ;;  %4439 = vrcp.f32 %v1840_v37  ;;  %v817_v36 = vadd.f32 %v6348_v4, %v644_v41  ;;  %vm5825_vm1 = vcmp.lt.f32.partialorder %v3294_v51, 0.0 }
 0x301   : > { %v3230_v60 = vsub.f32 1.0, %v3198_v61  ;;  %v2399_v21 = vunpack.c.l.bf16 %v2367_v23  ;;  %v2319_v13 = vunpack.c.l.bf16 %v2287_v45  ;;  %v1888_v18 = vpack.c.bf16 %v4438_v11, %v4438_v11  ;;  %vm3454_vm3 = vmpackc.low %vm5825_vm1, %vm5825_vm1 }
 0x302   : > { %v3182_v27 = vpack.c.bf16 %v3150_v31, %v3150_v31  ;;  %v3310_v1 = vunpack.c.l.bf16 %v5643_v8  ;;  %v906_v54 = vadd.f32 %v905_v25, %v817_v36  ;;  %4441 = vpow2.f32 %v2983_v35  ;;  %v1355_v8 = vpop.f32.mrf.mxu1 }
 0x303   : > { %v3262_v15 = vpack.c.bf16 %v3230_v60, %v3230_v60  ;;  %v2431_v44 = vadd.f32 -0.28515625, %v2399_v21  ;;  %v2351_v49 = vmul.f32 %v2319_v13, %v5779_v43  ;;  %v5831_v46 = vunpack.c.l.bf16 %v1888_v18 }
 0x304   : > { %v3214_v28 = vunpack.c.l.bf16 %v3182_v27  ;;  %v3015_v20 = vmul.f32 1.442695, %v2959_v50  ;;  %v1469_v3 = vadd.f32 %v6351_v63, %v906_v54  ;;  %vm5835_vm2 = vcmp.lt.f32.partialorder %v3310_v1, 0.0 }
 0x305   : > { %v3358_v48 = vunpack.c.l.bf16 %v3262_v15  ;;  %v2463_v55 = vpack.c.bf16 %v2431_v44, %v2431_v44  ;;  %v2383_v33 = vpack.c.bf16 %v2351_v49, %v2351_v49  ;;  %v1952_v58 = vmul.f32 1.0625, %v5831_v46  ;;  %vm3470_vm4 = vmpackc.low %vm5835_vm2, %vm5835_vm2 }
 0x306   : > { %v4440_v2 = vpop.eup %4439  ;;  %v3246_v30 = vsub.f32 1.0, %v3214_v28  ;;  %v5840_v40 = vmul.f32 0.5, %v5699_v24  ;;  %v5843_v7 = vadd.f32 %v5615_v14, %v1469_v3  ;;  %4443 = vpow2.f32 %v3015_v20  ;;  %v1444_v20 = vpop.f32.mrf.mxu3 }
 0x307   : > { %v3390_v26 = vsub.f32 0.0, %v3358_v48  ;;  %v2495_v51 = vunpack.c.l.bf16 %v2463_v55  ;;  %v2415_v52 = vunpack.c.l.bf16 %v2383_v33  ;;  %v1984_v59 = vpack.c.bf16 %v1952_v58, %v1952_v58 }
 0x308   : > { %v3278_v19 = vpack.c.bf16 %v3246_v30, %v3246_v30  ;;  %v1904_v38 = vpack.c.bf16 %v4440_v2, %v4440_v2  ;;  %v1537_v34 = vmul.f32 0.70710677, %v5843_v7  ;;  %v4442_v53 = vpop.eup %4441  ;;  %v2784_v24 = vsub.f32 0.0, %v5793_v29 }
 0x309   : > { %v3422_v57 = vpack.c.bf16 %v3390_v26, %v3390_v26  ;;  %v2527_v39 = vmul.f32 %v2495_v51, %v5756_v6  ;;  %v2447_v9 = vadd.f32 -0.28515625, %v2415_v52  ;;  %v2016_v37 = vunpack.c.l.bf16 %v1984_v59 }
 0x30a   : > { %v3374_v14 = vunpack.c.l.bf16 %v3278_v19  ;;  %v5851_v41 = vunpack.c.l.bf16 %v1904_v38  ;;  %v5853_v61 = vpack.c.bf16 %v1537_v34, %v1537_v34  ;;  %v3039_v60 = vpack.c.bf16 %v4442_v53, %v4442_v53 }
 0x30b   : > { %v3486_v23 = vsel %vm3454_vm3, %v3422_v57, %v3262_v15  ;;  %v2559_v35 = vpack.c.bf16 %v2527_v39, %v2527_v39  ;;  %v2479_v45 = vpack.c.bf16 %v2447_v9, %v2447_v9  ;;  %v2048_v25 = vadd.f32 -1.453125, %v2016_v37 }
 0x30c   : > { %v3518_v11 = vunpack.c.l.bf16 %v3486_v23  ;;  %v3406_v31 = vsub.f32 0.0, %v3374_v14  ;;  %v1968_v50 = vmul.f32 1.0625, %v5851_v41  ;;  %v1601_v4 = vand.u32 2147450879, %v5853_v61  ;;  %v5857_v18 = vpop.eup %4443 }
 0x30d   : > { %v2591_v36 = vunpack.c.l.bf16 %v2559_v35  ;;  %v2511_v21 = vunpack.c.l.bf16 %v2479_v45  ;;  %v2080_v13 = vpack.c.bf16 %v2048_v25, %v2048_v25  ;;  %v2816_v28 = vpack.c.bf16 %v2784_v24, %v2784_v24  ;;  %v645_v35 = vpop.f32.mrf.mxu0 }
 0x30e   : > { %v3582_v42 = vadd.f32 1.0, %v3518_v11  ;;  %v3438_v27 = vpack.c.bf16 %v3406_v31, %v3406_v31  ;;  %v2000_v1 = vpack.c.bf16 %v1968_v50, %v1968_v50  ;;  %v5859_v54 = vunpack.c.l.bf16 %v1601_v4 }
 0x30f   : > { %v2623_v15 = vadd.f32 0.25390625, %v2591_v36  ;;  %v2543_v44 = vmul.f32 %v2511_v21, %v5779_v43  ;;  %v2112_v49 = vunpack.c.l.bf16 %v2080_v13  ;;  %v2800_v51 = vsub.f32 0.0, %v5801_v12 }
 0x310   : > { %v3614_v63 = vmul.f32 %v3582_v42, %v5776_v10  ;;  %v3502_v3 = vsel %vm3470_vm4, %v3438_v27, %v3278_v19  ;;  %v2032_v48 = vunpack.c.l.bf16 %v2000_v1  ;;  %v1665_v55 = vmul.f32 0.328125, %v5859_v54 }
 0x311   : > { %v3534_v33 = vunpack.c.l.bf16 %v3502_v3  ;;  %v2655_v58 = vpack.c.bf16 %v2623_v15, %v2623_v15  ;;  %v2575_v2 = vpack.c.bf16 %v2543_v44, %v2543_v44  ;;  %v2144_v30 = vmul.f32 %v2112_v49, %v5831_v46  ;;  %v5882_v15 = vld [vmem:[%s6234_s2] ss:$0 sm:$0xff] }
 0x312   : > { %3646 = vst [vmem:[%s5280_s21 + $0x38] sm:$0xff] %v3614_v63  ;;  %v2064_v26 = vadd.f32 -1.453125, %v2032_v48  ;;  %v1697_v52 = vpack.c.bf16 %v1665_v55, %v1665_v55  ;;  %v1445_v59 = vadd.f32 %v1444_v20, %v1355_v8  ;;  %v3103_v57 = vunpack.c.l.bf16 %v3039_v60  ;;  %v907_v55 = vpop.f32.mrf.mxu2 }
 0x313   : > { %v3598_v38 = vadd.f32 1.0, %v3534_v33  ;;  %v2687_v34 = vunpack.c.l.bf16 %v2655_v58  ;;  %v2607_v10 = vunpack.c.l.bf16 %v2575_v2  ;;  %v2176_v19 = vpack.c.bf16 %v2144_v30, %v2144_v30  ;;  %v6355_v2 = vld [vmem:[#allocation20_spill] sm:$0xff] }
 0x314   : > { %v3295_v39 = vunpack.c.l.bf16 %v5712_v32  ;;  %v2096_v9 = vpack.c.bf16 %v2064_v26, %v2064_v26  ;;  %v1729_v37 = vunpack.c.l.bf16 %v1697_v52  ;;  %v2848_v45 = vunpack.c.l.bf16 %v2816_v28 }
 0x315   : > { %v3630_v53 = vmul.f32 %v3598_v38, %v5817_v0  ;;  %v2719_v14 = vmul.f32 %v2687_v34, %v5756_v6  ;;  %v2639_v24 = vadd.f32 0.25390625, %v2607_v10  ;;  %v2208_v23 = vunpack.c.l.bf16 %v2176_v19  ;;  %v6354_v6 = vld [vmem:[#allocation19_spill] sm:$0xff] }
 0x316   : > { %v2128_v25 = vunpack.c.l.bf16 %v2096_v9  ;;  %v2832_v11 = vpack.c.bf16 %v2800_v51, %v2800_v51  ;;  %v1761_v31 = vadd.f32 1.0, %v1729_v37  ;;  %v1485_v60 = vadd.f32 %v1445_v59, %v5674_v56 }
 0x317   : > { %3662 = vst [vmem:[%s5280_s21 + $0xb8] sm:$0xff] %v3630_v53  ;;  %v2751_v50 = vpack.c.bf16 %v2719_v14, %v2719_v14  ;;  %v2671_v4 = vpack.c.bf16 %v2639_v24, %v2639_v24  ;;  %v2240_v36 = vadd.f32 1.421875, %v2208_v23  ;;  %v3055_v32 = vpack.c.bf16 %v5857_v18, %v5857_v18  ;;  %v6358_v14 = vld [vmem:[#allocation41_spill] sm:$0xff] }
 0x318   : > { %v2160_v0 = vmul.f32 %v2128_v25, %v5851_v41  ;;  %v1793_v21 = vpack.c.bf16 %v1761_v31, %v1761_v31  ;;  %v646_v13 = vadd.f32 %v645_v35, %v6354_v6  ;;  %v5885_v44 = vadd.f32 %v5882_v15, %v1485_v60 }
 0x319   : > { %v3071_v42 = vunpack.c.l.bf16 %v2751_v50  ;;  %v2703_v27 = vunpack.c.l.bf16 %v2671_v4  ;;  %v2272_v1 = vpack.c.bf16 %v2240_v36, %v2240_v36  ;;  %v2880_v56 = vmul.f32 %v2848_v45, %v5793_v29 }
 0x31a   : > { %v2192_v49 = vpack.c.bf16 %v2160_v0, %v2160_v0  ;;  %v2864_v18 = vunpack.c.l.bf16 %v2832_v11  ;;  %v1825_v28 = vunpack.c.l.bf16 %v1793_v21  ;;  %v1553_v48 = vmul.f32 0.70710677, %v5885_v44 }
 0x31b   : > { %v3135_v20 = vmul.f32 %v3103_v57, %v3071_v42  ;;  %v2735_v63 = vmul.f32 %v2703_v27, %v5779_v43  ;;  %v2304_v3 = vunpack.c.l.bf16 %v2272_v1  ;;  %v3119_v33 = vunpack.c.l.bf16 %v3055_v32 }
 0x31c   : > { %v2224_v58 = vunpack.c.l.bf16 %v2192_v49  ;;  %4445 = vrcp.f32 %v1825_v28  ;;  %v819_v30 = vadd.f32 %v6355_v2, %v646_v13  ;;  %v5892_v29 = vpack.c.bf16 %v1553_v48, %v1553_v48 }
 0x31d   : > { %v3167_v8 = vpack.c.bf16 %v3135_v20, %v3135_v20  ;;  %v2767_v26 = vpack.c.bf16 %v2735_v63, %v2735_v63  ;;  %v2336_v51 = vmul.f32 %v2304_v3, %v5831_v46  ;;  %v2912_v52 = vpack.c.bf16 %v2880_v56, %v2880_v56 }
 0x31e   : > { %v2256_v59 = vadd.f32 1.421875, %v2224_v58  ;;  %v2896_v38 = vmul.f32 %v2864_v18, %v5801_v12  ;;  %v908_v43 = vadd.f32 %v907_v55, %v819_v30  ;;  %v1617_v57 = vand.u32 2147450879, %v5892_v29 }
 0x31f   : > { %v3199_v34 = vunpack.c.l.bf16 %v3167_v8  ;;  %v3087_v10 = vunpack.c.l.bf16 %v2767_v26  ;;  %v2368_v19 = vpack.c.bf16 %v2336_v51, %v2336_v51  ;;  %vm5896_vm5 = vcmp.lt.f32.partialorder %v3295_v39, 0.0 }
 0x320   : > { %v3311_v37 = vunpack.c.l.bf16 %v5721_v47  ;;  %v2288_v53 = vpack.c.bf16 %v2256_v59, %v2256_v59  ;;  %v1470_v24 = vadd.f32 %v6358_v14, %v908_v43  ;;  %v5902_v25 = vunpack.c.l.bf16 %v1617_v57  ;;  %vm3455_vm7 = vmpackc.low %vm5896_vm5, %vm5896_vm5 }
 0x321   : > { %v3231_v23 = vsub.f32 1.0, %v3199_v34  ;;  %v3151_v35 = vmul.f32 %v3119_v33, %v3087_v10  ;;  %v2400_v45 = vunpack.c.l.bf16 %v2368_v19  ;;  %v2944_v11 = vunpack.c.l.bf16 %v2912_v52 }
 0x322   : > { %v4446_v12 = vpop.eup %4445  ;;  %v2320_v31 = vunpack.c.l.bf16 %v2288_v53  ;;  %v2928_v50 = vpack.c.bf16 %v2896_v38, %v2896_v38  ;;  %v5905_v4 = vadd.f32 %v5882_v15, %v1470_v24  ;;  %v2785_v0 = vsub.f32 0.0, %v5859_v54 }
 0x323   : > { %v3263_v39 = vpack.c.bf16 %v3231_v23, %v3231_v23  ;;  %v3183_v36 = vpack.c.bf16 %v3151_v35, %v3151_v35  ;;  %v2432_v60 = vadd.f32 -0.28515625, %v2400_v45  ;;  %v1889_v32 = vpack.c.bf16 %v4446_v12, %v4446_v12 }
 0x324   : > { %v2352_v47 = vmul.f32 %v2320_v31, %v5851_v41  ;;  %v1681_v21 = vmul.f32 0.328125, %v5902_v25  ;;  %v1538_v6 = vmul.f32 0.70710677, %v5905_v4  ;;  %vm5911_vm6 = vcmp.lt.f32.partialorder %v3311_v37, 0.0  ;;  %v1446_v37 = vpop.f32.mrf.mxu3 }
 0x325   : > { %v3359_v13 = vunpack.c.l.bf16 %v3263_v39  ;;  %v3215_v42 = vunpack.c.l.bf16 %v3183_v36  ;;  %v2464_v1 = vpack.c.bf16 %v2432_v60, %v2432_v60  ;;  %v5915_v56 = vunpack.c.l.bf16 %v1889_v32  ;;  %vm3471_vm8 = vmpackc.low %vm5911_vm6, %vm5911_vm6 }
 0x326   : > { %v2985_v49 = vmul.f32 1.442695, %v2944_v11  ;;  %v2384_v18 = vpack.c.bf16 %v2352_v47, %v2352_v47  ;;  %v2960_v28 = vunpack.c.l.bf16 %v2928_v50  ;;  %v1713_v20 = vpack.c.bf16 %v1681_v21, %v1681_v21  ;;  %v1357_v11 = vpop.f32.mrf.mxu1 }
 0x327   : > { %v3391_v63 = vsub.f32 0.0, %v3359_v13  ;;  %v3247_v3 = vsub.f32 1.0, %v3215_v42  ;;  %v2496_v48 = vunpack.c.l.bf16 %v2464_v1  ;;  %v1953_v55 = vmul.f32 1.0625, %v5915_v56  ;;  %v6362_v13 = vld [vmem:[#allocation21_spill] sm:$0xff] }
 0x328   : > { %v2416_v33 = vunpack.c.l.bf16 %v2384_v18  ;;  %v2817_v58 = vpack.c.bf16 %v2785_v0, %v2785_v0  ;;  %v1745_v2 = vunpack.c.l.bf16 %v1713_v20  ;;  %v5918_v30 = vpack.c.bf16 %v1538_v6, %v1538_v6  ;;  %v6361_v6 = vld [vmem:[#allocation40_spill] sm:$0xff] }
 0x329   : > { %v3423_v8 = vpack.c.bf16 %v3391_v63, %v3391_v63  ;;  %v3279_v26 = vpack.c.bf16 %v3247_v3, %v3247_v3  ;;  %v2528_v51 = vmul.f32 %v2496_v48, %v5831_v46  ;;  %v1985_v52 = vpack.c.bf16 %v1953_v55, %v1953_v55 }
 0x32a   : > { %4447 = vpow2.f32 %v2985_v49  ;;  %v2448_v59 = vadd.f32 -0.28515625, %v2416_v33  ;;  %v3017_v38 = vmul.f32 1.442695, %v2960_v28  ;;  %v1777_v43 = vadd.f32 1.0, %v1745_v2 }
 0x32b   : > { %v3487_v34 = vsel %vm3455_vm7, %v3423_v8, %v3263_v39  ;;  %v3375_v10 = vunpack.c.l.bf16 %v3279_v26  ;;  %v2560_v19 = vpack.c.bf16 %v2528_v51, %v2528_v51  ;;  %v2017_v57 = vunpack.c.l.bf16 %v1985_v52 }
 0x32c   : > { %v3519_v53 = vunpack.c.l.bf16 %v3487_v34  ;;  %v2480_v14 = vpack.c.bf16 %v2448_v59, %v2448_v59  ;;  %v2849_v24 = vunpack.c.l.bf16 %v2817_v58  ;;  %v1809_v23 = vpack.c.bf16 %v1777_v43, %v1777_v43 }
 0x32d   : > { %v3407_v35 = vsub.f32 0.0, %v3375_v10  ;;  %v2592_v45 = vunpack.c.l.bf16 %v2560_v19  ;;  %v2049_v12 = vadd.f32 -1.453125, %v2017_v57  ;;  %v1602_v9 = vand.u32 2147450879, %v5918_v30 }
 0x32e   : > { %v3583_v31 = vadd.f32 1.0, %v3519_v53  ;;  %v2512_v50 = vunpack.c.l.bf16 %v2480_v14  ;;  %v1841_v36 = vunpack.c.l.bf16 %v1809_v23  ;;  %v1447_v60 = vadd.f32 %v1446_v37, %v1357_v11 }
 0x32f   : > { %v3439_v39 = vpack.c.bf16 %v3407_v35, %v3407_v35  ;;  %v2624_v32 = vadd.f32 0.25390625, %v2592_v45  ;;  %v2081_v47 = vpack.c.bf16 %v2049_v12, %v2049_v12  ;;  %v5925_v0 = vunpack.c.l.bf16 %v1602_v9 }
 0x330   : > { %v4448_v21 = vpop.eup %4447  ;;  %v948_v42 = vadd.f32 %v6362_v13, %v6361_v6  ;;  %v3615_v1 = vmul.f32 %v3583_v31, %v5840_v40  ;;  %v2544_v49 = vmul.f32 %v2512_v50, %v5851_v41  ;;  %4449 = vrcp.f32 %v1841_v36 }
 0x331   : > { %v3503_v18 = vsel %vm3471_vm8, %v3439_v39, %v3279_v26  ;;  %v2656_v28 = vpack.c.bf16 %v2624_v32, %v2624_v32  ;;  %v2113_v20 = vunpack.c.l.bf16 %v2081_v47  ;;  %v1666_v63 = vmul.f32 0.328125, %v5925_v0 }
 0x332   : > { %3647 = vst [vmem:[%s5280_s21 + $0x40] sm:$0xff] %v3615_v1  ;;  %v3535_v3 = vunpack.c.l.bf16 %v3503_v18  ;;  %v2576_v48 = vpack.c.bf16 %v2544_v49, %v2544_v49  ;;  %v2881_v55 = vmul.f32 %v2849_v24, %v5859_v54  ;;  %v1486_v33 = vadd.f32 %v1447_v60, %v948_v42  ;;  %v6364_v24 = vld [vmem:[#allocation24_spill] sm:$0xff] }
 0x333   : > { %v2688_v58 = vunpack.c.l.bf16 %v2656_v28  ;;  %4451 = vpow2.f32 %v3017_v38  ;;  %v2145_v40 = vmul.f32 %v2113_v20, %v5915_v56  ;;  %v1698_v27 = vpack.c.bf16 %v1666_v63, %v1666_v63 }
 0x334   : > { %v3567_v2 = vmul.f32 0.5, %v5703_v22  ;;  %v3599_v8 = vadd.f32 1.0, %v3535_v3  ;;  %v2608_v26 = vunpack.c.l.bf16 %v2576_v48  ;;  %v3040_v52 = vpack.c.bf16 %v4448_v21, %v4448_v21  ;;  %v6363_v22 = vld [vmem:[#allocation42_spill] sm:$0xff] }
 0x335   : > { %v2720_v51 = vmul.f32 %v2688_v58, %v5831_v46  ;;  %v2177_v59 = vpack.c.bf16 %v2145_v40, %v2145_v40  ;;  %v1730_v43 = vunpack.c.l.bf16 %v1698_v27  ;;  %v2913_v54 = vpack.c.bf16 %v2881_v55, %v2881_v55  ;;  %v648_v40 = vpop.f32.mrf.mxu0 }
 0x336   : > { %v4450_v34 = vpop.eup %4449  ;;  %v3631_v10 = vmul.f32 %v3599_v8, %v3567_v2  ;;  %v2640_v19 = vadd.f32 0.25390625, %v2608_v26  ;;  %v5941_v57 = vadd.f32 %v5882_v15, %v1486_v33  ;;  %v5945_v23 = vadd.f32 %v6364_v24, %v6363_v22 }
 0x337   : > { %v2752_v38 = vpack.c.bf16 %v2720_v51, %v2720_v51  ;;  %v2209_v37 = vunpack.c.l.bf16 %v2177_v59  ;;  %v1905_v53 = vpack.c.bf16 %v4450_v34, %v4450_v34  ;;  %v1762_v14 = vadd.f32 1.0, %v1730_v43 }
 0x338   : > { %3663 = vst [vmem:[%s5280_s21 + $0xc0] sm:$0xff] %v3631_v10  ;;  %v2672_v46 = vpack.c.bf16 %v2640_v19, %v2640_v19  ;;  %v1554_v35 = vmul.f32 0.70710677, %v5941_v57  ;;  %v3104_v11 = vunpack.c.l.bf16 %v3040_v52  ;;  %v5952_v50 = vmul.f32 0.5, %v5759_v5  ;;  %v6367_v10 = vld [vmem:[#allocation22_spill] sm:$0xff] }
 0x339   : > { %v4452_v45 = vpop.eup %4451  ;;  %v3072_v12 = vunpack.c.l.bf16 %v2752_v38  ;;  %v2241_v9 = vadd.f32 1.421875, %v2209_v37  ;;  %v5949_v31 = vunpack.c.l.bf16 %v1905_v53  ;;  %v1794_v60 = vpack.c.bf16 %v1762_v14, %v1762_v14  ;;  %v1449_v53 = vpop.f32.mrf.mxu3 }
 0x33a   : > { %v2704_v36 = vunpack.c.l.bf16 %v2672_v46  ;;  %v5954_v39 = vpack.c.bf16 %v1554_v35, %v1554_v35  ;;  %v2945_v21 = vunpack.c.l.bf16 %v2913_v54  ;;  %v3056_v42 = vpack.c.bf16 %v4452_v45, %v4452_v45 }
 0x33b   : > { %v3136_v32 = vmul.f32 %v3104_v11, %v3072_v12  ;;  %v2273_v47 = vpack.c.bf16 %v2241_v9, %v2241_v9  ;;  %v1969_v6 = vmul.f32 1.0625, %v5949_v31  ;;  %v1826_v1 = vunpack.c.l.bf16 %v1794_v60 }
 0x33c   : > { %v2736_v13 = vmul.f32 %v2704_v36, %v5851_v41  ;;  %v1618_v49 = vand.u32 2147450879, %v5954_v39  ;;  %v3296_v28 = vunpack.c.l.bf16 %v5768_v16  ;;  %v5961_v3 = vmul.f32 0.5, %v5764_v62  ;;  %v1360_v36 = vpop.f32.mrf.mxu1 }
 0x33d   : > { %v3168_v18 = vpack.c.bf16 %v3136_v32, %v3136_v32  ;;  %v2305_v5 = vunpack.c.l.bf16 %v2273_v47  ;;  %v2001_v20 = vpack.c.bf16 %v1969_v6, %v1969_v6  ;;  %4453 = vrcp.f32 %v1826_v1 }
 0x33e   : > { %v2768_v63 = vpack.c.bf16 %v2736_v13, %v2736_v13  ;;  %v5963_v48 = vunpack.c.l.bf16 %v1618_v49  ;;  %v2987_v41 = vmul.f32 1.442695, %v2945_v21  ;;  %v3120_v2 = vunpack.c.l.bf16 %v3056_v42  ;;  %v6370_v21 = vld [vmem:[#allocation23_spill] sm:$0xff] }
 0x33f   : > { %v3200_v55 = vunpack.c.l.bf16 %v3168_v18  ;;  %v2337_v33 = vmul.f32 %v2305_v5, %v5915_v56  ;;  %v2033_v58 = vunpack.c.l.bf16 %v2001_v20  ;;  %v2801_v8 = vsub.f32 0.0, %v5902_v25 }
 0x340   : > { %v3088_v27 = vunpack.c.l.bf16 %v2768_v63  ;;  %v1682_v16 = vmul.f32 0.328125, %v5963_v48  ;;  %vm5968_vm9 = vcmp.lt.f32.partialorder %v3296_v28, 0.0  ;;  %v3312_v43 = vunpack.c.l.bf16 %v5795_v17  ;;  %v910_v17 = vpop.f32.mrf.mxu2 }
 0x341   : > { %v3232_v26 = vsub.f32 1.0, %v3200_v55  ;;  %v2369_v62 = vpack.c.bf16 %v2337_v33, %v2337_v33  ;;  %v2065_v52 = vadd.f32 -1.453125, %v2033_v58  ;;  %v649_v19 = vadd.f32 %v648_v40, %v6367_v10  ;;  %vm3456_vm11 = vmpackc.low %vm5968_vm9, %vm5968_vm9 }
 0x342   : > { %v3152_v59 = vmul.f32 %v3120_v2, %v3088_v27  ;;  %v1714_v34 = vpack.c.bf16 %v1682_v16, %v1682_v16  ;;  %4455 = vpow2.f32 %v2987_v41  ;;  %v2833_v24 = vpack.c.bf16 %v2801_v8, %v2801_v8 }
 0x343   : > { %v3264_v54 = vpack.c.bf16 %v3232_v26, %v3232_v26  ;;  %v2401_v38 = vunpack.c.l.bf16 %v2369_v62  ;;  %v2097_v37 = vpack.c.bf16 %v2065_v52, %v2065_v52  ;;  %v4454_v14 = vpop.eup %4453  ;;  %v2786_v46 = vsub.f32 0.0, %v5925_v0 }
 0x344   : > { %v3184_v22 = vpack.c.bf16 %v3152_v59, %v3152_v59  ;;  %v1746_v35 = vunpack.c.l.bf16 %v1714_v34  ;;  %v1890_v9 = vpack.c.bf16 %v4454_v14, %v4454_v14  ;;  %vm5975_vm10 = vcmp.lt.f32.partialorder %v3312_v43, 0.0 }
 0x345   : > { %v3360_v45 = vunpack.c.l.bf16 %v3264_v54  ;;  %v2433_v12 = vadd.f32 -0.28515625, %v2401_v38  ;;  %v2129_v11 = vunpack.c.l.bf16 %v2097_v37  ;;  %v822_v6 = vadd.f32 %v6370_v21, %v649_v19  ;;  %v6371_v37 = vld [vmem:[#allocation43_spill] sm:$0xff]  ;;  %vm3472_vm12 = vmpackc.low %vm5975_vm10, %vm5975_vm10 }
 0x346   : > { %v3216_v60 = vunpack.c.l.bf16 %v3184_v22  ;;  %v1778_v47 = vadd.f32 1.0, %v1746_v35  ;;  %v1450_v13 = vadd.f32 %v1449_v53, %v1360_v36  ;;  %v5981_v18 = vunpack.c.l.bf16 %v1890_v9 }
 0x347   : > { %v3392_v42 = vsub.f32 0.0, %v3360_v45  ;;  %v2465_v1 = vpack.c.bf16 %v2433_v12, %v2433_v12  ;;  %v2161_v49 = vmul.f32 %v2129_v11, %v5949_v31  ;;  %v2865_v5 = vunpack.c.l.bf16 %v2833_v24 }
 0x348   : > { %v3248_v28 = vsub.f32 1.0, %v3216_v60  ;;  %v1810_v20 = vpack.c.bf16 %v1778_v47, %v1778_v47  ;;  %v911_v63 = vadd.f32 %v910_v17, %v822_v6  ;;  %v5983_v55 = vpop.eup %4455  ;;  %v1954_v40 = vmul.f32 1.0625, %v5981_v18 }
 0x349   : > { %v3424_v33 = vpack.c.bf16 %v3392_v42, %v3392_v42  ;;  %v2497_v41 = vunpack.c.l.bf16 %v2465_v1  ;;  %v2193_v58 = vpack.c.bf16 %v2161_v49, %v2161_v49  ;;  %v2818_v2 = vpack.c.bf16 %v2786_v46, %v2786_v46 }
 0x34a   : > { %v3280_v27 = vpack.c.bf16 %v3248_v28, %v3248_v28  ;;  %v1842_v8 = vunpack.c.l.bf16 %v1810_v20  ;;  %v1487_v16 = vadd.f32 %v1450_v13, %v5945_v23  ;;  %v1986_v59 = vpack.c.bf16 %v1954_v40, %v1954_v40 }
 0x34b   : > { %v3488_v26 = vsel %vm3456_vm11, %v3424_v33, %v3264_v54  ;;  %v2529_v62 = vmul.f32 %v2497_v41, %v5915_v56  ;;  %v2225_v52 = vunpack.c.l.bf16 %v2193_v58  ;;  %v2897_v10 = vmul.f32 %v2865_v5, %v5902_v25 }
 0x34c   : > { %v3520_v43 = vunpack.c.l.bf16 %v3488_v26  ;;  %v3376_v34 = vunpack.c.l.bf16 %v3280_v27  ;;  %4457 = vrcp.f32 %v1842_v8  ;;  %v2018_v51 = vunpack.c.l.bf16 %v1986_v59 }
 0x34d   : > { %v2561_v19 = vpack.c.bf16 %v2529_v62, %v2529_v62  ;;  %v2257_v38 = vadd.f32 1.421875, %v2225_v52  ;;  %v1471_v53 = vadd.f32 %v6371_v37, %v911_v63  ;;  %v2850_v24 = vunpack.c.l.bf16 %v2818_v2 }
 0x34e   : > { %v3584_v14 = vadd.f32 1.0, %v3520_v43  ;;  %v3408_v22 = vsub.f32 0.0, %v3376_v34  ;;  %v5994_v23 = vadd.f32 %v5882_v15, %v1487_v16  ;;  %v2050_v35 = vadd.f32 -1.453125, %v2018_v51 }
 0x34f   : > { %v2593_v54 = vunpack.c.l.bf16 %v2561_v19  ;;  %v2289_v46 = vpack.c.bf16 %v2257_v38, %v2257_v38  ;;  %v5997_v45 = vadd.f32 %v5882_v15, %v1471_v53  ;;  %v2929_v11 = vpack.c.bf16 %v2897_v10, %v2897_v10 }
 0x350   : > { %v3616_v25 = vmul.f32 %v3584_v14, %v5952_v50  ;;  %v3440_v12 = vpack.c.bf16 %v3408_v22, %v3408_v22  ;;  %v1555_v9 = vmul.f32 0.70710677, %v5994_v23  ;;  %v2082_v60 = vpack.c.bf16 %v2050_v35, %v2050_v35 }
 0x351   : > { %v2625_v36 = vadd.f32 0.25390625, %v2593_v54  ;;  %v2321_v17 = vunpack.c.l.bf16 %v2289_v46  ;;  %v1539_v47 = vmul.f32 0.70710677, %v5997_v45  ;;  %v3041_v13 = vpack.c.bf16 %v5983_v55, %v5983_v55 }
 0x352   : > { %v4458_v21 = vpop.eup %4457  ;;  %3648 = vst [vmem:[%s5280_s21 + $0x48] sm:$0xff] %v3616_v25  ;;  %v3504_v6 = vsel %vm3472_vm12, %v3440_v12, %v3280_v27  ;;  %v2882_v50 = vmul.f32 %v2850_v24, %v5925_v0  ;;  %v6009_v42 = vpack.c.bf16 %v1555_v9, %v1555_v9  ;;  %v2114_v28 = vunpack.c.l.bf16 %v2082_v60 }
 0x353   : > { %v3536_v1 = vunpack.c.l.bf16 %v3504_v6  ;;  %v2657_v49 = vpack.c.bf16 %v2625_v36, %v2625_v36  ;;  %v2353_v32 = vmul.f32 %v2321_v17, %v5949_v31  ;;  %v2961_v5 = vunpack.c.l.bf16 %v2929_v11 }
 0x354   : > { %v1906_v20 = vpack.c.bf16 %v4458_v21, %v4458_v21  ;;  %v6012_v63 = vpack.c.bf16 %v1539_v47, %v1539_v47  ;;  %v1619_v33 = vand.u32 2147450879, %v6009_v42  ;;  %v2146_v55 = vmul.f32 %v2114_v28, %v5981_v18 }
 0x355   : > { %v3600_v41 = vadd.f32 1.0, %v3536_v1  ;;  %v2689_v58 = vunpack.c.l.bf16 %v2657_v49  ;;  %v2385_v40 = vpack.c.bf16 %v2353_v32, %v2353_v32  ;;  %v2914_v0 = vpack.c.bf16 %v2882_v50, %v2882_v50  ;;  %v6372_v49 = vld [vmem:[#allocation44_spill] sm:$0xff]  ;;  %v6373_v32 = vld [vmem:[#allocation27_spill] sm:$0xff] }
 0x356   : > { %v6016_v27 = vunpack.c.l.bf16 %v1906_v20  ;;  %v2802_v2 = vsub.f32 0.0, %v5963_v48  ;;  %v1603_v8 = vand.u32 2147450879, %v6012_v63  ;;  %v2178_v52 = vpack.c.bf16 %v2146_v55, %v2146_v55  ;;  %v650_v55 = vpop.f32.mrf.mxu0 }
 0x357   : > { %v3632_v16 = vmul.f32 %v3600_v41, %v5961_v3  ;;  %v2721_v26 = vmul.f32 %v2689_v58, %v5915_v56  ;;  %v2417_v62 = vunpack.c.l.bf16 %v2385_v40  ;;  %v3105_v59 = vunpack.c.l.bf16 %v3041_v13 }
 0x358   : > { %v3019_v43 = vmul.f32 1.442695, %v2961_v5  ;;  %v1970_v34 = vmul.f32 1.0625, %v6016_v27  ;;  %v6023_v10 = vunpack.c.l.bf16 %v1603_v8  ;;  %v2210_v51 = vunpack.c.l.bf16 %v2178_v52 }
 0x359   : > { %3664 = vst [vmem:[%s5280_s21 + $0xc8] sm:$0xff] %v3632_v16  ;;  %v2753_v19 = vpack.c.bf16 %v2721_v26, %v2721_v26  ;;  %v2449_v38 = vadd.f32 -0.28515625, %v2417_v62  ;;  %v6026_v37 = vunpack.c.l.bf16 %v1619_v33  ;;  %v2946_v53 = vunpack.c.l.bf16 %v2914_v0 }
 0x35a   : > { %v2002_v14 = vpack.c.bf16 %v1970_v34, %v1970_v34  ;;  %v2834_v22 = vpack.c.bf16 %v2802_v2, %v2802_v2  ;;  %v1667_v3 = vmul.f32 0.328125, %v6023_v10  ;;  %v2242_v54 = vadd.f32 1.421875, %v2210_v51 }
 0x35b   : > { %v3073_v56 = vunpack.c.l.bf16 %v2753_v19  ;;  %v2481_v24 = vpack.c.bf16 %v2449_v38, %v2449_v38  ;;  %v1683_v46 = vmul.f32 0.328125, %v6026_v37  ;;  %4459 = vpow2.f32 %v3019_v43  ;;  %v6374_v38 = vld [vmem:[#allocation25_spill] sm:$0xff] }
 0x35c   : > { %v2034_v35 = vunpack.c.l.bf16 %v2002_v14  ;;  %v1699_v25 = vpack.c.bf16 %v1667_v3, %v1667_v3  ;;  %v2274_v9 = vpack.c.bf16 %v2242_v54, %v2242_v54  ;;  %v2989_v17 = vmul.f32 1.442695, %v2946_v53 }
 0x35d   : > { %v3137_v12 = vmul.f32 %v3105_v59, %v3073_v56  ;;  %v2513_v11 = vunpack.c.l.bf16 %v2481_v24  ;;  %v1715_v36 = vpack.c.bf16 %v1683_v46, %v1683_v46  ;;  %v2866_v47 = vunpack.c.l.bf16 %v2834_v22 }
 0x35e   : > { %v2066_v60 = vadd.f32 -1.453125, %v2034_v35  ;;  %v1731_v21 = vunpack.c.l.bf16 %v1699_v25  ;;  %v2306_v50 = vunpack.c.l.bf16 %v2274_v9  ;;  %v6033_v28 = vadd.f32 %v6373_v32, %v6372_v49  ;;  %v912_v25 = vpop.f32.mrf.mxu2 }
 0x35f   : > { %v3169_v6 = vpack.c.bf16 %v3137_v12, %v3137_v12  ;;  %v2545_v13 = vmul.f32 %v2513_v11, %v5949_v31  ;;  %v1747_v1 = vunpack.c.l.bf16 %v1715_v36  ;;  %4461 = vpow2.f32 %v2989_v17  ;;  %v6377_v36 = vld [vmem:[#allocation26_spill] sm:$0xff] }
 0x360   : > { %v2098_v5 = vpack.c.bf16 %v2066_v60, %v2066_v60  ;;  %v1763_v20 = vadd.f32 1.0, %v1731_v21  ;;  %v2338_v58 = vmul.f32 %v2306_v50, %v5981_v18  ;;  %v2898_v8 = vmul.f32 %v2866_v47, %v5963_v48 }
 0x361   : > { %v3201_v33 = vunpack.c.l.bf16 %v3169_v6  ;;  %v2577_v41 = vpack.c.bf16 %v2545_v13, %v2545_v13  ;;  %v1779_v40 = vadd.f32 1.0, %v1747_v1  ;;  %v4460_v0 = vpop.eup %4459  ;;  %v3297_v43 = vunpack.c.l.bf16 %v5853_v61  ;;  %v1451_v13 = vpop.f32.mrf.mxu3 }
 0x362   : > { %v2130_v2 = vunpack.c.l.bf16 %v2098_v5  ;;  %v1795_v16 = vpack.c.bf16 %v1763_v20, %v1763_v20  ;;  %v2370_v52 = vpack.c.bf16 %v2338_v58, %v2338_v58  ;;  %v651_v51 = vadd.f32 %v650_v55, %v6374_v38  ;;  %v6378_v55 = vld [vmem:[#allocation45_spill] sm:$0xff] }
 0x363   : > { %v3233_v26 = vsub.f32 1.0, %v3201_v33  ;;  %v2609_v62 = vunpack.c.l.bf16 %v2577_v41  ;;  %v1811_v59 = vpack.c.bf16 %v1779_v40, %v1779_v40  ;;  %v3057_v56 = vpack.c.bf16 %v4460_v0, %v4460_v0  ;;  %v1362_v41 = vpop.f32.mrf.mxu1 }
 0x364   : > { %v2162_v34 = vmul.f32 %v2130_v2, %v6016_v27  ;;  %v1827_v19 = vunpack.c.l.bf16 %v1795_v16  ;;  %v2402_v22 = vunpack.c.l.bf16 %v2370_v52  ;;  %v2930_v54 = vpack.c.bf16 %v2898_v8, %v2898_v8 }
 0x365   : > { %v3265_v53 = vpack.c.bf16 %v3233_v26, %v3233_v26  ;;  %v2641_v14 = vadd.f32 0.25390625, %v2609_v62  ;;  %v1843_v3 = vunpack.c.l.bf16 %v1811_v59  ;;  %v4462_v12 = vpop.eup %4461  ;;  %vm6040_vm13 = vcmp.lt.f32.partialorder %v3297_v43, 0.0 }
 0x366   : > { %v2194_v24 = vpack.c.bf16 %v2162_v34, %v2162_v34  ;;  %4463 = vrcp.f32 %v1827_v19  ;;  %v2434_v35 = vadd.f32 -0.28515625, %v2402_v22  ;;  %v3553_v11 = vmul.f32 0.5, %v5843_v7  ;;  %vm3457_vm14 = vmpackc.low %vm6040_vm13, %vm6040_vm13 }
 0x367   : > { %v3361_v48 = vunpack.c.l.bf16 %v3265_v53  ;;  %v2673_v46 = vpack.c.bf16 %v2641_v14, %v2641_v14  ;;  %4465 = vrcp.f32 %v1843_v3  ;;  %v824_v17 = vadd.f32 %v6377_v36, %v651_v51 }
 0x368   : > { %v2226_v9 = vunpack.c.l.bf16 %v2194_v24  ;;  %v6047_v21 = vmul.f32 0.5, %v5885_v44  ;;  %v2466_v6 = vpack.c.bf16 %v2434_v35, %v2434_v35  ;;  %v3121_v50 = vunpack.c.l.bf16 %v3057_v56 }
 0x369   : > { %v3393_v60 = vsub.f32 0.0, %v3361_v48  ;;  %v2705_v47 = vunpack.c.l.bf16 %v2673_v46  ;;  %v3313_v1 = vunpack.c.l.bf16 %v5892_v29  ;;  %v913_v32 = vadd.f32 %v912_v25, %v824_v17 }
 0x36a   : > { %v2258_v49 = vadd.f32 1.421875, %v2226_v9  ;;  %v2498_v33 = vunpack.c.l.bf16 %v2466_v6  ;;  %v2962_v7 = vunpack.c.l.bf16 %v2930_v54  ;;  %v3042_v44 = vpack.c.bf16 %v4462_v12, %v4462_v12 }
 0x36b   : > { %v3425_v5 = vpack.c.bf16 %v3393_v60, %v3393_v60  ;;  %v2737_v20 = vmul.f32 %v2705_v47, %v5949_v31  ;;  %v1472_v0 = vadd.f32 %v6378_v55, %v913_v32  ;;  %v1452_v2 = vadd.f32 %v1451_v13, %v1362_v41 }
 0x36c   : > { %v4464_v58 = vpop.eup %4463  ;;  %v2290_v40 = vpack.c.bf16 %v2258_v49, %v2258_v49  ;;  %v2530_v26 = vmul.f32 %v2498_v33, %v5981_v18  ;;  %v3021_v38 = vmul.f32 1.442695, %v2962_v7  ;;  %v3298_v54 = vunpack.c.l.bf16 %v5918_v30 }
 0x36d   : > { %v4466_v8 = vpop.eup %4465  ;;  %v3489_v29 = vsel %vm3457_vm14, %v3425_v5, %v3265_v53  ;;  %v2769_v16 = vpack.c.bf16 %v2737_v20, %v2737_v20  ;;  %v1891_v62 = vpack.c.bf16 %v4464_v58, %v4464_v58  ;;  %v6057_v43 = vadd.f32 %v5882_v15, %v1472_v0 }
 0x36e   : > { %v3521_v31 = vunpack.c.l.bf16 %v3489_v29  ;;  %v2322_v52 = vunpack.c.l.bf16 %v2290_v40  ;;  %v1907_v59 = vpack.c.bf16 %v4466_v8, %v4466_v8  ;;  %v2562_v19 = vpack.c.bf16 %v2530_v26, %v2530_v26 }
 0x36f   : > { %v3089_v34 = vunpack.c.l.bf16 %v2769_v16  ;;  %v6059_v51 = vunpack.c.l.bf16 %v1891_v62  ;;  %v1540_v3 = vmul.f32 0.70710677, %v6057_v43  ;;  %v1488_v12 = vadd.f32 %v1452_v2, %v6033_v28 }
 0x370   : > { %v3585_v14 = vadd.f32 1.0, %v3521_v31  ;;  %v2354_v22 = vmul.f32 %v2322_v52, %v6016_v27  ;;  %v6062_v53 = vunpack.c.l.bf16 %v1907_v59  ;;  %v2594_v24 = vunpack.c.l.bf16 %v2562_v19 }
 0x371   : > { %v3153_v56 = vmul.f32 %v3121_v50, %v3089_v34  ;;  %v1955_v48 = vmul.f32 1.0625, %v6059_v51  ;;  %v6069_v17 = vpack.c.bf16 %v1540_v3, %v1540_v3  ;;  %v3106_v60 = vunpack.c.l.bf16 %v3042_v44 }
 0x372   : > { %v3617_v46 = vmul.f32 %v3585_v14, %v3553_v11  ;;  %v2386_v35 = vpack.c.bf16 %v2354_v22, %v2354_v22  ;;  %v1971_v25 = vmul.f32 1.0625, %v6062_v53  ;;  %v2626_v9 = vadd.f32 0.25390625, %v2594_v24 }
 0x373   : > { %v3185_v61 = vpack.c.bf16 %v3153_v56, %v3153_v56  ;;  %v1987_v36 = vpack.c.bf16 %v1955_v48, %v1955_v48  ;;  %4467 = vpow2.f32 %v3021_v38  ;;  %vm6072_vm15 = vcmp.lt.f32.partialorder %v3313_v1, 0.0 }
 0x374   : > { %3649 = vst [vmem:[%s5280_s21 + $0x50] sm:$0xff] %v3617_v46  ;;  %v2418_v47 = vunpack.c.l.bf16 %v2386_v35  ;;  %v2003_v6 = vpack.c.bf16 %v1971_v25, %v1971_v25  ;;  %v2658_v11 = vpack.c.bf16 %v2626_v9, %v2626_v9  ;;  %v1604_v32 = vand.u32 2147450879, %v6069_v17  ;;  %vm3473_vm0 = vmpackc.low %vm6072_vm15, %vm6072_vm15 }
 0x375   : > { %v3217_v13 = vunpack.c.l.bf16 %v3185_v61  ;;  %v2019_v49 = vunpack.c.l.bf16 %v1987_v36  ;;  %v2787_v5 = vsub.f32 0.0, %v6023_v10  ;;  %v6079_v33 = vadd.f32 %v5882_v15, %v1488_v12 }
 0x376   : > { %v2450_v28 = vadd.f32 -0.28515625, %v2418_v47  ;;  %v2035_v20 = vunpack.c.l.bf16 %v2003_v6  ;;  %v2690_v41 = vunpack.c.l.bf16 %v2658_v11  ;;  %v6081_v44 = vunpack.c.l.bf16 %v1604_v32 }
 0x377   : > { %v3249_v7 = vsub.f32 1.0, %v3217_v13  ;;  %v2051_v58 = vadd.f32 -1.453125, %v2019_v49  ;;  %v2803_v55 = vsub.f32 0.0, %v6026_v37  ;;  %v1556_v0 = vmul.f32 0.70710677, %v6079_v33 }
 0x378   : > { %v2482_v1 = vpack.c.bf16 %v2450_v28, %v2450_v28  ;;  %v2067_v40 = vadd.f32 -1.453125, %v2035_v20  ;;  %v2722_v8 = vmul.f32 %v2690_v41, %v5981_v18  ;;  %v1668_v16 = vmul.f32 0.328125, %v6081_v44 }
 0x379   : > { %v3281_v2 = vpack.c.bf16 %v3249_v7, %v3249_v7  ;;  %v2083_v29 = vpack.c.bf16 %v2051_v58, %v2051_v58  ;;  %v6087_v26 = vpop.eup %4467  ;;  %v2819_v31 = vpack.c.bf16 %v2787_v5, %v2787_v5  ;;  %v6089_v59 = vpack.c.bf16 %v1556_v0, %v1556_v0 }
 0x37a   : > { %v2514_v62 = vunpack.c.l.bf16 %v2482_v1  ;;  %v2099_v52 = vpack.c.bf16 %v2067_v40, %v2067_v40  ;;  %v2754_v19 = vpack.c.bf16 %v2722_v8, %v2722_v8  ;;  %v1700_v14 = vpack.c.bf16 %v1668_v16, %v1668_v16 }
 0x37b   : > { %v3377_v34 = vunpack.c.l.bf16 %v3281_v2  ;;  %v2115_v38 = vunpack.c.l.bf16 %v2083_v29  ;;  %v2835_v56 = vpack.c.bf16 %v2803_v55, %v2803_v55  ;;  %v1620_v18 = vand.u32 2147450879, %v6089_v59 }
 0x37c   : > { %v2546_v22 = vmul.f32 %v2514_v62, %v6016_v27  ;;  %v2131_v3 = vunpack.c.l.bf16 %v2099_v52  ;;  %v3074_v48 = vunpack.c.l.bf16 %v2754_v19  ;;  %v1732_v35 = vunpack.c.l.bf16 %v1700_v14  ;;  %v1454_v19 = vpop.f32.mrf.mxu3 }
 0x37d   : > { %v3409_v24 = vsub.f32 0.0, %v3377_v34  ;;  %v2147_v46 = vmul.f32 %v2115_v38, %v6059_v51  ;;  %v2851_v12 = vunpack.c.l.bf16 %v2819_v31  ;;  %v6095_v9 = vunpack.c.l.bf16 %v1620_v18 }
 0x37e   : > { %v2578_v25 = vpack.c.bf16 %v2546_v22, %v2546_v22  ;;  %v2163_v61 = vmul.f32 %v2131_v3, %v6062_v53  ;;  %v3138_v47 = vmul.f32 %v3106_v60, %v3074_v48  ;;  %v1764_v13 = vadd.f32 1.0, %v1732_v35  ;;  %v1365_v48 = vpop.f32.mrf.mxu1 }
 0x37f   : > { %v3441_v36 = vpack.c.bf16 %v3409_v24, %v3409_v24  ;;  %v2179_v6 = vpack.c.bf16 %v2147_v46, %v2147_v46  ;;  %v2867_v32 = vunpack.c.l.bf16 %v2835_v56  ;;  %v1684_v28 = vmul.f32 0.328125, %v6095_v9  ;;  %v6381_v46 = vld [vmem:[#allocation46_spill] sm:$0xff] }
 0x380   : > { %v2610_v11 = vunpack.c.l.bf16 %v2578_v25  ;;  %v2195_v49 = vpack.c.bf16 %v2163_v61, %v2163_v61  ;;  %v3170_v20 = vpack.c.bf16 %v3138_v47, %v3138_v47  ;;  %v1796_v41 = vpack.c.bf16 %v1764_v13, %v1764_v13 }
 0x381   : > { %v3505_v5 = vsel %vm3473_vm0, %v3441_v36, %v3281_v2  ;;  %v2211_v7 = vunpack.c.l.bf16 %v2179_v6  ;;  %v2883_v40 = vmul.f32 %v2851_v12, %v6023_v10  ;;  %v1716_v50 = vpack.c.bf16 %v1684_v28, %v1684_v28 }
 0x382   : > { %v3537_v58 = vunpack.c.l.bf16 %v3505_v5  ;;  %v2642_v1 = vadd.f32 0.25390625, %v2610_v11  ;;  %v2227_v60 = vunpack.c.l.bf16 %v2195_v49  ;;  %v3202_v55 = vunpack.c.l.bf16 %v3170_v20 }
 0x383   : > { %v2243_v0 = vadd.f32 1.421875, %v2211_v7  ;;  %v1828_v8 = vunpack.c.l.bf16 %v1796_v41  ;;  %v2899_v31 = vmul.f32 %v2867_v32, %v6026_v37  ;;  %v1748_v34 = vunpack.c.l.bf16 %v1716_v50  ;;  %v6382_v37 = vld [vmem:[#allocation28_spill] sm:$0xff] }
 0x384   : > { %v3601_v29 = vadd.f32 1.0, %v3537_v58  ;;  %v2674_v16 = vpack.c.bf16 %v2642_v1, %v2642_v1  ;;  %v2259_v62 = vadd.f32 1.421875, %v2227_v60  ;;  %v3234_v52 = vsub.f32 1.0, %v3202_v55 }
 0x385   : > { %v2275_v2 = vpack.c.bf16 %v2243_v0, %v2243_v0  ;;  %4469 = vrcp.f32 %v1828_v8  ;;  %v3058_v10 = vpack.c.bf16 %v6087_v26, %v6087_v26  ;;  %v2915_v18 = vpack.c.bf16 %v2883_v40, %v2883_v40 }
 0x386   : > { %v3633_v38 = vmul.f32 %v3601_v29, %v6047_v21  ;;  %v2706_v14 = vunpack.c.l.bf16 %v2674_v16  ;;  %v2291_v22 = vpack.c.bf16 %v2259_v62, %v2259_v62  ;;  %v3266_v3 = vpack.c.bf16 %v3234_v52, %v3234_v52 }
 0x387   : > { %v2307_v56 = vunpack.c.l.bf16 %v2275_v2  ;;  %v1780_v24 = vadd.f32 1.0, %v1748_v34  ;;  %v956_v35 = vadd.f32 %v6382_v37, %v6381_v46  ;;  %v1455_v61 = vadd.f32 %v1454_v19, %v1365_v48 }
 0x388   : > { %3665 = vst [vmem:[%s5280_s21 + $0xd0] sm:$0xff] %v3633_v38  ;;  %v2738_v25 = vmul.f32 %v2706_v14, %v6016_v27  ;;  %v2323_v12 = vunpack.c.l.bf16 %v2291_v22  ;;  %v3362_v36 = vunpack.c.l.bf16 %v3266_v3  ;;  %v2931_v47 = vpack.c.bf16 %v2899_v31, %v2899_v31 }
 0x389   : > { %v2339_v21 = vmul.f32 %v2307_v56, %v6059_v51  ;;  %v1812_v6 = vpack.c.bf16 %v1780_v24, %v1780_v24  ;;  %vm6113_vm1 = vcmp.lt.f32.partialorder %v3298_v54, 0.0  ;;  %v3122_v11 = vunpack.c.l.bf16 %v3058_v10  ;;  %v6386_v24 = vld [vmem:[#allocation29_spill] sm:$0xff] }
 0x38a   : > { %v2770_v13 = vpack.c.bf16 %v2738_v25, %v2738_v25  ;;  %v2355_v49 = vmul.f32 %v2323_v12, %v6062_v53  ;;  %v3394_v28 = vsub.f32 0.0, %v3362_v36  ;;  %v2947_v5 = vunpack.c.l.bf16 %v2915_v18  ;;  %vm3458_vm2 = vmpackc.low %vm6113_vm1, %vm6113_vm1 }
 0x38b   : > { %v4470_v32 = vpop.eup %4469  ;;  %v2371_v27 = vpack.c.bf16 %v2339_v21, %v2339_v21  ;;  %v1844_v20 = vunpack.c.l.bf16 %v1812_v6  ;;  %v1489_v1 = vadd.f32 %v1455_v61, %v956_v35  ;;  %v2963_v30 = vunpack.c.l.bf16 %v2931_v47  ;;  %v1456_v47 = vpop.f32.mrf.mxu3 }
 0x38c   : > { %v3090_v7 = vunpack.c.l.bf16 %v2770_v13  ;;  %v2387_v41 = vpack.c.bf16 %v2355_v49, %v2355_v49  ;;  %v1892_v58 = vpack.c.bf16 %v4470_v32, %v4470_v32  ;;  %v3426_v40 = vpack.c.bf16 %v3394_v28, %v3394_v28 }
 0x38d   : > { %v2403_v60 = vunpack.c.l.bf16 %v2371_v27  ;;  %4471 = vrcp.f32 %v1844_v20  ;;  %v6124_v8 = vadd.f32 %v5882_v15, %v1489_v1  ;;  %v2991_v16 = vmul.f32 1.442695, %v2947_v5  ;;  %v1367_v5 = vpop.f32.mrf.mxu1 }
 0x38e   : > { %v3154_v54 = vmul.f32 %v3122_v11, %v3090_v7  ;;  %v2419_v55 = vunpack.c.l.bf16 %v2387_v41  ;;  %v6121_v0 = vunpack.c.l.bf16 %v1892_v58  ;;  %v3490_v50 = vsel %vm3458_vm2, %v3426_v40, %v3266_v3  ;;  %v6385_v3 = vld [vmem:[#allocation47_spill] sm:$0xff] }
 0x38f   : > { %v2435_v29 = vadd.f32 -0.28515625, %v2403_v60  ;;  %v3522_v62 = vunpack.c.l.bf16 %v3490_v50  ;;  %v3554_v34 = vmul.f32 0.5, %v5905_v4  ;;  %v3023_v38 = vmul.f32 1.442695, %v2963_v30 }
 0x390   : > { %v3186_v31 = vpack.c.bf16 %v3154_v54, %v3154_v54  ;;  %v2451_v52 = vadd.f32 -0.28515625, %v2419_v55  ;;  %v1956_v2 = vmul.f32 1.0625, %v6121_v0  ;;  %v1557_v14 = vmul.f32 0.70710677, %v6124_v8 }
 0x391   : > { %v2467_v19 = vpack.c.bf16 %v2435_v29, %v2435_v29  ;;  %v3586_v10 = vadd.f32 1.0, %v3522_v62  ;;  %v958_v48 = vadd.f32 %v6386_v24, %v6385_v3  ;;  %4473 = vpow2.f32 %v2991_v16 }
 0x392   : > { %v3218_v22 = vunpack.c.l.bf16 %v3186_v31  ;;  %v2483_v56 = vpack.c.bf16 %v2451_v52, %v2451_v52  ;;  %v1988_v15 = vpack.c.bf16 %v1956_v2, %v1956_v2  ;;  %v6131_v37 = vpack.c.bf16 %v1557_v14, %v1557_v14 }
 0x393   : > { %v4472_v18 = vpop.eup %4471  ;;  %v2499_v46 = vunpack.c.l.bf16 %v2467_v19  ;;  %v3618_v35 = vmul.f32 %v3586_v10, %v3554_v34  ;;  %4475 = vpow2.f32 %v3023_v38  ;;  %v3314_v26 = vunpack.c.l.bf16 %v5954_v39 }
 0x394   : > { %v3250_v25 = vsub.f32 1.0, %v3218_v22  ;;  %v2515_v4 = vunpack.c.l.bf16 %v2483_v56  ;;  %v2020_v12 = vunpack.c.l.bf16 %v1988_v15  ;;  %v1908_v36 = vpack.c.bf16 %v4472_v18, %v4472_v18 }
 0x395   : > { %v2531_v61 = vmul.f32 %v2499_v46, %v6059_v51  ;;  %v1621_v21 = vand.u32 2147450879, %v6131_v37  ;;  %3650 = vst [vmem:[%s5280_s21 + $0x58] sm:$0xff] %v3618_v35  ;;  %v2788_v32 = vsub.f32 0.0, %v6081_v44  ;;  %v1457_v58 = vadd.f32 %v1456_v47, %v1367_v5 }
 0x396   : > { %v3282_v6 = vpack.c.bf16 %v3250_v25, %v3250_v25  ;;  %v2547_v13 = vmul.f32 %v2515_v4, %v6062_v53  ;;  %v2052_v11 = vadd.f32 -1.453125, %v2020_v12  ;;  %v6139_v28 = vunpack.c.l.bf16 %v1908_v36 }
 0x397   : > { %v2563_v49 = vpack.c.bf16 %v2531_v61, %v2531_v61  ;;  %v6141_v27 = vunpack.c.l.bf16 %v1621_v21  ;;  %v4474_v1 = vpop.eup %4473  ;;  %v3570_v40 = vmul.f32 0.5, %v5941_v57  ;;  %vm6146_vm3 = vcmp.lt.f32.partialorder %v3314_v26, 0.0 }
 0x398   : > { %v3378_v20 = vunpack.c.l.bf16 %v3282_v6  ;;  %v2579_v7 = vpack.c.bf16 %v2547_v13, %v2547_v13  ;;  %v2084_v41 = vpack.c.bf16 %v2052_v11, %v2052_v11  ;;  %v1972_v39 = vmul.f32 1.0625, %v6139_v28  ;;  %vm3474_vm4 = vmpackc.low %vm6146_vm3, %vm6146_vm3 }
 0x399   : > { %v2595_v60 = vunpack.c.l.bf16 %v2563_v49  ;;  %v1685_v30 = vmul.f32 0.328125, %v6141_v27  ;;  %v4476_v16 = vpop.eup %4475  ;;  %v2820_v31 = vpack.c.bf16 %v2788_v32, %v2788_v32  ;;  %v1490_v38 = vadd.f32 %v1457_v58, %v958_v48  ;;  %v4492_v48 = vld [vmem:[%s6234_s2] ss:$0 sm:$0xff] }
 0x39a   : > { %v3410_v55 = vsub.f32 0.0, %v3378_v20  ;;  %v2611_v50 = vunpack.c.l.bf16 %v2579_v7  ;;  %v2116_v29 = vunpack.c.l.bf16 %v2084_v41  ;;  %v2004_v52 = vpack.c.bf16 %v1972_v39, %v1972_v39 }
 0x39b   : > { %v2627_v62 = vadd.f32 0.25390625, %v2595_v60  ;;  %v1717_v2 = vpack.c.bf16 %v1685_v30, %v1685_v30  ;;  %v3043_v10 = vpack.c.bf16 %v4474_v1, %v4474_v1  ;;  %v3059_v3 = vpack.c.bf16 %v4476_v16, %v4476_v16 }
 0x39c   : > { %v3442_v34 = vpack.c.bf16 %v3410_v55, %v3410_v55  ;;  %v2643_v19 = vadd.f32 0.25390625, %v2611_v50  ;;  %v2148_v57 = vmul.f32 %v2116_v29, %v6121_v0  ;;  %v2036_v22 = vunpack.c.l.bf16 %v2004_v52 }
 0x39d   : > { %v2659_v14 = vpack.c.bf16 %v2627_v62, %v2627_v62  ;;  %v1749_v56 = vunpack.c.l.bf16 %v1717_v2  ;;  %v2852_v36 = vunpack.c.l.bf16 %v2820_v31  ;;  %v6157_v21 = vadd.f32 %v4492_v48, %v1490_v38 }
 0x39e   : > { %v3506_v15 = vsel %vm3474_vm4, %v3442_v34, %v3282_v6  ;;  %v2675_v18 = vpack.c.bf16 %v2643_v19, %v2643_v19  ;;  %v2180_v24 = vpack.c.bf16 %v2148_v57, %v2148_v57  ;;  %v2068_v25 = vadd.f32 -1.453125, %v2036_v22 }
 0x39f   : > { %v3538_v46 = vunpack.c.l.bf16 %v3506_v15  ;;  %v2691_v35 = vunpack.c.l.bf16 %v2659_v14  ;;  %v1781_v4 = vadd.f32 1.0, %v1749_v56  ;;  %v2804_v32 = vsub.f32 0.0, %v6095_v9 }
 0x3a0   : > { %v2707_v12 = vunpack.c.l.bf16 %v2675_v18  ;;  %v2212_v61 = vunpack.c.l.bf16 %v2180_v24  ;;  %v2100_v26 = vpack.c.bf16 %v2068_v25, %v2068_v25  ;;  %v1558_v5 = vmul.f32 0.70710677, %v6157_v21 }
 0x3a1   : > { %v3602_v47 = vadd.f32 1.0, %v3538_v46  ;;  %v2723_v6 = vmul.f32 %v2691_v35, %v6059_v51  ;;  %v1813_v13 = vpack.c.bf16 %v1781_v4, %v1781_v4  ;;  %v3107_v51 = vunpack.c.l.bf16 %v3043_v10 }
 0x3a2   : > { %v2739_v11 = vmul.f32 %v2707_v12, %v6062_v53  ;;  %v2244_v49 = vadd.f32 1.421875, %v2212_v61  ;;  %v2132_v41 = vunpack.c.l.bf16 %v2100_v26  ;;  %v6163_v39 = vpack.c.bf16 %v1558_v5, %v1558_v5 }
 0x3a3   : > { %v3634_v20 = vmul.f32 %v3602_v47, %v3570_v40  ;;  %v2755_v7 = vpack.c.bf16 %v2723_v6, %v2723_v6  ;;  %v1845_v58 = vunpack.c.l.bf16 %v1813_v13  ;;  %v3123_v55 = vunpack.c.l.bf16 %v3059_v3 }
 0x3a4   : > { %v2771_v1 = vpack.c.bf16 %v2739_v11, %v2739_v11  ;;  %v2276_v60 = vpack.c.bf16 %v2244_v49, %v2244_v49  ;;  %v2164_v54 = vmul.f32 %v2132_v41, %v6139_v28  ;;  %v1622_v29 = vand.u32 2147450879, %v6163_v39 }
 0x3a5   : > { %3666 = vst [vmem:[%s5280_s21 + $0xd8] sm:$0xff] %v3634_v20  ;;  %v3075_v30 = vunpack.c.l.bf16 %v2755_v7  ;;  %4477 = vrcp.f32 %v1845_v58  ;;  %v2884_v40 = vmul.f32 %v2852_v36, %v6081_v44  ;;  %v2836_v31 = vpack.c.bf16 %v2804_v32, %v2804_v32 }
 0x3a6   : > { %v3091_v53 = vunpack.c.l.bf16 %v2771_v1  ;;  %v2308_v50 = vunpack.c.l.bf16 %v2276_v60  ;;  %v2196_v62 = vpack.c.bf16 %v2164_v54, %v2164_v54  ;;  %v6170_v34 = vunpack.c.l.bf16 %v1622_v29 }
 0x3a7   : > { %v3139_v16 = vmul.f32 %v3107_v51, %v3075_v30  ;;  %v2916_v15 = vpack.c.bf16 %v2884_v40, %v2884_v40  ;;  %v2868_v3 = vunpack.c.l.bf16 %v2836_v31  ;;  %v3299_v4 = vunpack.c.l.bf16 %v6012_v63 }
 0x3a8   : > { %v3155_v52 = vmul.f32 %v3123_v55, %v3091_v53  ;;  %v2340_v2 = vmul.f32 %v2308_v50, %v6121_v0  ;;  %v2228_v57 = vunpack.c.l.bf16 %v2196_v62  ;;  %v1686_v10 = vmul.f32 0.328125, %v6170_v34 }
 0x3a9   : > { %v3171_v19 = vpack.c.bf16 %v3139_v16, %v3139_v16  ;;  %v3315_v12 = vunpack.c.l.bf16 %v6009_v42  ;;  %v2948_v13 = vunpack.c.l.bf16 %v2916_v15  ;;  %v2900_v49 = vmul.f32 %v2868_v3, %v6095_v9 }
 0x3aa   : > { %v3187_v38 = vpack.c.bf16 %v3155_v52, %v3155_v52  ;;  %v2372_v14 = vpack.c.bf16 %v2340_v2, %v2340_v2  ;;  %v2260_v18 = vadd.f32 1.421875, %v2228_v57  ;;  %v1718_v35 = vpack.c.bf16 %v1686_v10, %v1686_v10 }
 0x3ab   : > { %v4478_v22 = vpop.eup %4477  ;;  %v3203_v56 = vunpack.c.l.bf16 %v3171_v19  ;;  %vm6179_vm5 = vcmp.lt.f32.partialorder %v3299_v4, 0.0  ;;  %vm6183_vm6 = vcmp.lt.f32.partialorder %v3315_v12, 0.0  ;;  %v2993_v54 = vmul.f32 1.442695, %v2948_v13 }
 0x3ac   : > { %v3219_v24 = vunpack.c.l.bf16 %v3187_v38  ;;  %v2404_v44 = vunpack.c.l.bf16 %v2372_v14  ;;  %v1909_v46 = vpack.c.bf16 %v4478_v22, %v4478_v22  ;;  %v2292_v61 = vpack.c.bf16 %v2260_v18, %v2260_v18  ;;  %vm3459_vm7 = vmpackc.low %vm6179_vm5, %vm6179_vm5 }
 0x3ad   : > { %v3235_v25 = vsub.f32 1.0, %v3203_v56  ;;  %v1750_v6 = vunpack.c.l.bf16 %v1718_v35  ;;  %v2932_v55 = vpack.c.bf16 %v2900_v49, %v2900_v49  ;;  %vm3475_vm8 = vmpackc.low %vm6183_vm6, %vm6183_vm6 }
 0x3ae   : > { %v3251_v36 = vsub.f32 1.0, %v3219_v24  ;;  %v2436_v48 = vadd.f32 -0.28515625, %v2404_v44  ;;  %v6175_v47 = vunpack.c.l.bf16 %v1909_v46  ;;  %v2324_v11 = vunpack.c.l.bf16 %v2292_v61 }
 0x3af   : > { %v3267_v26 = vpack.c.bf16 %v3235_v25, %v3235_v25  ;;  %v1782_v7 = vadd.f32 1.0, %v1750_v6  ;;  %v2964_v14 = vunpack.c.l.bf16 %v2932_v55  ;;  %v3555_v24 = vmul.f32 0.5, %v5997_v45 }
 0x3b0   : > { %v3283_v32 = vpack.c.bf16 %v3251_v36, %v3251_v36  ;;  %v2468_v5 = vpack.c.bf16 %v2436_v48, %v2436_v48  ;;  %v1973_v20 = vmul.f32 1.0625, %v6175_v47  ;;  %v2356_v58 = vmul.f32 %v2324_v11, %v6139_v28 }
 0x3b1   : > { %v3363_v42 = vunpack.c.l.bf16 %v3267_v26  ;;  %v1814_v9 = vpack.c.bf16 %v1782_v7, %v1782_v7  ;;  %v3571_v25 = vmul.f32 0.5, %v5994_v23  ;;  %v2805_v61 = vsub.f32 0.0, %v6141_v27 }
 0x3b2   : > { %v3379_v1 = vunpack.c.l.bf16 %v3283_v32  ;;  %v2500_v60 = vunpack.c.l.bf16 %v2468_v5  ;;  %v2005_v30 = vpack.c.bf16 %v1973_v20, %v1973_v20  ;;  %v2388_v53 = vpack.c.bf16 %v2356_v58, %v2356_v58 }
 0x3b3   : > { %v3395_v51 = vsub.f32 0.0, %v3363_v42  ;;  %v1846_v40 = vunpack.c.l.bf16 %v1814_v9  ;;  %v2837_v7 = vpack.c.bf16 %v2805_v61, %v2805_v61  ;;  %v3300_v61 = vunpack.c.l.bf16 %v6069_v17 }
 0x3b4   : > { %v3411_v50 = vsub.f32 0.0, %v3379_v1  ;;  %v2532_v29 = vmul.f32 %v2500_v60, %v6121_v0  ;;  %v2037_v16 = vunpack.c.l.bf16 %v2005_v30  ;;  %v2420_v31 = vunpack.c.l.bf16 %v2388_v53 }
 0x3b5   : > { %v3427_v62 = vpack.c.bf16 %v3395_v51, %v3395_v51  ;;  %4479 = vrcp.f32 %v1846_v40  ;;  %vm3332_vm9 = vcmp.lt.f32.partialorder %v3300_v61, 0.0 }
 0x3b6   : > { %v3443_v52 = vpack.c.bf16 %v3411_v50, %v3411_v50  ;;  %v2564_v2 = vpack.c.bf16 %v2532_v29, %v2532_v29  ;;  %v2069_v19 = vadd.f32 -1.453125, %v2037_v16  ;;  %4481 = vpow2.f32 %v2993_v54  ;;  %vm3460_vm10 = vmpackc.low %vm3332_vm9, %vm3332_vm9 }
 0x3b7   : > { %v3491_v57 = vsel %vm3459_vm7, %v3427_v62, %v3267_v26  ;;  %v2452_v38 = vadd.f32 -0.28515625, %v2420_v31  ;;  %v3025_v26 = vmul.f32 1.442695, %v2964_v14  ;;  %v2869_v54 = vunpack.c.l.bf16 %v2837_v7 }
 0x3b8   : > { %v3523_v10 = vunpack.c.l.bf16 %v3491_v57  ;;  %v3507_v22 = vsel %vm3475_vm8, %v3443_v52, %v3283_v32  ;;  %v2596_v56 = vunpack.c.l.bf16 %v2564_v2  ;;  %v2101_v15 = vpack.c.bf16 %v2069_v19, %v2069_v19 }
 0x3b9   : > { %v3539_v18 = vunpack.c.l.bf16 %v3507_v22  ;;  %v2484_v3 = vpack.c.bf16 %v2452_v38, %v2452_v38  ;;  %4483 = vpow2.f32 %v3025_v26  ;;  %v2901_v2 = vmul.f32 %v2869_v54, %v6141_v27 }
 0x3ba   : > { %v3587_v44 = vadd.f32 1.0, %v3523_v10  ;;  %v2628_v46 = vadd.f32 0.25390625, %v2596_v56  ;;  %v2133_v35 = vunpack.c.l.bf16 %v2101_v15 }
 0x3bb   : > { %v3603_v4 = vadd.f32 1.0, %v3539_v18  ;;  %v2516_v12 = vunpack.c.l.bf16 %v2484_v3  ;;  %v4480_v36 = vpop.eup %4479  ;;  %v2933_v3 = vpack.c.bf16 %v2901_v2, %v2901_v2 }
 0x3bc   : > { %v3619_v48 = vmul.f32 %v3587_v44, %v3555_v24  ;;  %v2660_v6 = vpack.c.bf16 %v2628_v46, %v2628_v46  ;;  %v2165_v13 = vmul.f32 %v2133_v35, %v6175_v47  ;;  %v4482_v11 = vpop.eup %4481  ;;  %v1910_v32 = vpack.c.bf16 %v4480_v36, %v4480_v36 }
 0x3bd   : > { %v3635_v49 = vmul.f32 %v3603_v4, %v3571_v25  ;;  %v2548_v45 = vmul.f32 %v2516_v12, %v6139_v28  ;;  %v3044_v41 = vpack.c.bf16 %v4482_v11, %v4482_v11  ;;  %v2806_v35 = vsub.f32 0.0, %v6170_v34 }
 0x3be   : > { %3651 = vst [vmem:[%s5280_s21 + $0x60] sm:$0xff] %v3619_v48  ;;  %v2692_v5 = vunpack.c.l.bf16 %v2660_v6  ;;  %v2197_v20 = vpack.c.bf16 %v2165_v13, %v2165_v13  ;;  %v6202_v63 = vunpack.c.l.bf16 %v1910_v32  ;;  %v2965_v48 = vunpack.c.l.bf16 %v2933_v3 }
 0x3bf   : > { %3667 = vst [vmem:[%s5280_s21 + $0xe0] sm:$0xff] %v3635_v49  ;;  %v2580_v23 = vpack.c.bf16 %v2548_v45, %v2548_v45  ;;  %v3108_v50 = vunpack.c.l.bf16 %v3044_v41  ;;  %v4484_v62 = vpop.eup %4483  ;;  %v2838_v11 = vpack.c.bf16 %v2806_v35, %v2806_v35 }
 0x3c0   : > { %v2724_v42 = vmul.f32 %v2692_v5, %v6121_v0  ;;  %v2229_v58 = vunpack.c.l.bf16 %v2197_v20  ;;  %v1974_v60 = vmul.f32 1.0625, %v6202_v63  ;;  %v3060_v10 = vpack.c.bf16 %v4484_v62, %v4484_v62 }
 0x3c1   : > { %v2612_v1 = vunpack.c.l.bf16 %v2580_v23  ;;  %v3027_v23 = vmul.f32 1.442695, %v2965_v48 }
 0x3c2   : > { %v2756_v30 = vpack.c.bf16 %v2724_v42, %v2724_v42  ;;  %v2261_v9 = vadd.f32 1.421875, %v2229_v58  ;;  %v2006_v53 = vpack.c.bf16 %v1974_v60, %v1974_v60  ;;  %v3124_v4 = vunpack.c.l.bf16 %v3060_v10 }
 0x3c3   : > { %v2644_v51 = vadd.f32 0.25390625, %v2612_v1  ;;  %v2870_v58 = vunpack.c.l.bf16 %v2838_v11  ;;  %4485 = vpow2.f32 %v3027_v23 }
 0x3c4   : > { %v3076_v55 = vunpack.c.l.bf16 %v2756_v30  ;;  %v2293_v29 = vpack.c.bf16 %v2261_v9, %v2261_v9  ;;  %v2038_v40 = vunpack.c.l.bf16 %v2006_v53  ;;  %v3316_v30 = vunpack.c.l.bf16 %v6089_v59 }
 0x3c5   : > { %v2676_v16 = vpack.c.bf16 %v2644_v51, %v2644_v51 }
 0x3c6   : > { %v3140_v31 = vmul.f32 %v3108_v50, %v3076_v55  ;;  %v2325_v52 = vunpack.c.l.bf16 %v2293_v29  ;;  %v2070_v19 = vadd.f32 -1.453125, %v2038_v40  ;;  %v2902_v50 = vmul.f32 %v2870_v58, %v6170_v34 }
 0x3c7   : > { %v2708_v0 = vunpack.c.l.bf16 %v2676_v16  ;;  %v3556_v29 = vmul.f32 0.5, %v6057_v43  ;;  %vm3348_vm11 = vcmp.lt.f32.partialorder %v3316_v30, 0.0 }
 0x3c8   : > { %v3172_v57 = vpack.c.bf16 %v3140_v31, %v3140_v31  ;;  %v2357_v38 = vmul.f32 %v2325_v52, %v6175_v47  ;;  %v2102_v22 = vpack.c.bf16 %v2070_v19, %v2070_v19  ;;  %v2934_v19 = vpack.c.bf16 %v2902_v50, %v2902_v50  ;;  %vm3476_vm12 = vmpackc.low %vm3348_vm11, %vm3348_vm11 }
 0x3c9   : > { %v2740_v14 = vmul.f32 %v2708_v0, %v6139_v28  ;;  %v3318_v50 = vunpack.c.l.bf16 %v6163_v39 }
 0x3ca   : > { %v3204_v56 = vunpack.c.l.bf16 %v3172_v57  ;;  %v2389_v15 = vpack.c.bf16 %v2357_v38, %v2357_v38  ;;  %v2134_v24 = vunpack.c.l.bf16 %v2102_v22  ;;  %v4486_v57 = vpop.eup %4485 }
 0x3cb   : > { %v2772_v18 = vpack.c.bf16 %v2740_v14, %v2740_v14  ;;  %vm3350_vm15 = vcmp.lt.f32.partialorder %v3318_v50, 0.0 }
 0x3cc   : > { %v3236_v44 = vsub.f32 1.0, %v3204_v56  ;;  %v2421_v46 = vunpack.c.l.bf16 %v2389_v15  ;;  %v2166_v27 = vmul.f32 %v2134_v24, %v6202_v63  ;;  %v3061_v15 = vpack.c.bf16 %v4486_v57, %v4486_v57  ;;  %vm3478_vm0 = vmpackc.low %vm3350_vm15, %vm3350_vm15 }
 0x3cd   : > { %v3092_v25 = vunpack.c.l.bf16 %v2772_v18  ;;  %v2966_v18 = vunpack.c.l.bf16 %v2934_v19  ;;  %v3572_v24 = vmul.f32 0.5, %v6079_v33 }
 0x3ce   : > { %v3268_v12 = vpack.c.bf16 %v3236_v44, %v3236_v44  ;;  %v2453_v36 = vadd.f32 -0.28515625, %v2421_v46  ;;  %v2198_v6 = vpack.c.bf16 %v2166_v27, %v2166_v27  ;;  %v3125_v27 = vunpack.c.l.bf16 %v3061_v15 }
 0x3cf   : > { %v3156_v28 = vmul.f32 %v3124_v4, %v3092_v25 }
 0x3d0   : > { %v3364_v26 = vunpack.c.l.bf16 %v3268_v12  ;;  %v2485_v13 = vpack.c.bf16 %v2453_v36, %v2453_v36  ;;  %v2230_v45 = vunpack.c.l.bf16 %v2198_v6 }
 0x3d1   : > { %v3188_v49 = vpack.c.bf16 %v3156_v28, %v3156_v28 }
 0x3d2   : > { %v3396_v32 = vsub.f32 0.0, %v3364_v26  ;;  %v2517_v5 = vunpack.c.l.bf16 %v2485_v13  ;;  %v2262_v7 = vadd.f32 1.421875, %v2230_v45  ;;  %v3317_v45 = vunpack.c.l.bf16 %v6131_v37 }
 0x3d3   : > { %v3220_v20 = vunpack.c.l.bf16 %v3188_v49 }
 0x3d4   : > { %v3428_v42 = vpack.c.bf16 %v3396_v32, %v3396_v32  ;;  %v2549_v41 = vmul.f32 %v2517_v5, %v6175_v47  ;;  %v2294_v1 = vpack.c.bf16 %v2262_v7, %v2262_v7  ;;  %vm3349_vm13 = vcmp.lt.f32.partialorder %v3317_v45, 0.0 }
 0x3d5   : > { %v3252_v17 = vsub.f32 1.0, %v3220_v20  ;;  %vm3477_vm14 = vmpackc.low %vm3349_vm13, %vm3349_vm13 }
 0x3d6   : > { %v3492_v60 = vsel %vm3460_vm10, %v3428_v42, %v3268_v12  ;;  %v2581_v9 = vpack.c.bf16 %v2549_v41, %v2549_v41  ;;  %v2326_v53 = vunpack.c.l.bf16 %v2294_v1  ;;  %v3029_v12 = vmul.f32 1.442695, %v2966_v18 }
 0x3d7   : > { %v3524_v51 = vunpack.c.l.bf16 %v3492_v60  ;;  %v3284_v54 = vpack.c.bf16 %v3252_v17, %v3252_v17 }
 0x3d8   : > { %v2613_v55 = vunpack.c.l.bf16 %v2581_v9  ;;  %v2358_v62 = vmul.f32 %v2326_v53, %v6202_v63  ;;  %4487 = vpow2.f32 %v3029_v12  ;;  %v3573_v9 = vmul.f32 0.5, %v6124_v8 }
 0x3d9   : > { %v3588_v16 = vadd.f32 1.0, %v3524_v51  ;;  %v3380_v40 = vunpack.c.l.bf16 %v3284_v54 }
 0x3da   : > { %v2645_v31 = vadd.f32 0.25390625, %v2613_v55  ;;  %v2390_v59 = vpack.c.bf16 %v2358_v62, %v2358_v62 }
 0x3db   : > { %v3620_v52 = vmul.f32 %v3588_v16, %v3556_v29  ;;  %v3412_v0 = vsub.f32 0.0, %v3380_v40 }
 0x3dc   : > { %v2677_v2 = vpack.c.bf16 %v2645_v31, %v2645_v31  ;;  %v2422_v14 = vunpack.c.l.bf16 %v2390_v59 }
 0x3dd   : > { %3652 = vst [vmem:[%s5280_s21 + $0x68] sm:$0xff] %v3620_v52  ;;  %v3444_v38 = vpack.c.bf16 %v3412_v0, %v3412_v0  ;;  %v3574_v52 = vmul.f32 0.5, %v6157_v21 }
 0x3de   : > { %v2709_v10 = vunpack.c.l.bf16 %v2677_v2  ;;  %v2454_v43 = vadd.f32 -0.28515625, %v2422_v14  ;;  %v4488_v33 = vpop.eup %4487 }
 0x3df   : > { %v3508_v34 = vsel %vm3476_vm12, %v3444_v38, %v3284_v54  ;;  %v3062_v23 = vpack.c.bf16 %v4488_v33, %v4488_v33 }
 0x3e0   : > { %v3540_v22 = vunpack.c.l.bf16 %v3508_v34  ;;  %v2741_v56 = vmul.f32 %v2709_v10, %v6175_v47  ;;  %v2486_v3 = vpack.c.bf16 %v2454_v43, %v2454_v43 }
 0x3e1   : > { %v3126_v17 = vunpack.c.l.bf16 %v3062_v23 }
 0x3e2   : > { %v3604_v44 = vadd.f32 1.0, %v3540_v22  ;;  %v2773_v46 = vpack.c.bf16 %v2741_v56, %v2741_v56  ;;  %v2518_v35 = vunpack.c.l.bf16 %v2486_v3 }
 0x3e4   : > { %v3636_v25 = vmul.f32 %v3604_v44, %v3572_v24  ;;  %v3093_v4 = vunpack.c.l.bf16 %v2773_v46  ;;  %v2550_v61 = vmul.f32 %v2518_v35, %v6202_v63 }
 0x3e6   : > { %3668 = vst [vmem:[%s5280_s21 + $0xe8] sm:$0xff] %v3636_v25  ;;  %v3157_v36 = vmul.f32 %v3125_v27, %v3093_v4  ;;  %v2582_v28 = vpack.c.bf16 %v2550_v61, %v2550_v61 }
 0x3e8   : > { %v3189_v48 = vpack.c.bf16 %v3157_v36, %v3157_v36  ;;  %v2614_v47 = vunpack.c.l.bf16 %v2582_v28 }
 0x3ea   : > { %v3221_v6 = vunpack.c.l.bf16 %v3189_v48  ;;  %v2646_v26 = vadd.f32 0.25390625, %v2614_v47 }
 0x3ec   : > { %v3253_v13 = vsub.f32 1.0, %v3221_v6  ;;  %v2678_v11 = vpack.c.bf16 %v2646_v26, %v2646_v26 }
 0x3ee   : > { %v3285_v49 = vpack.c.bf16 %v3253_v13, %v3253_v13  ;;  %v2710_v32 = vunpack.c.l.bf16 %v2678_v11 }
 0x3f0   : > { %v3381_v5 = vunpack.c.l.bf16 %v3285_v49  ;;  %v2742_v20 = vmul.f32 %v2710_v32, %v6202_v63 }
 0x3f2   : > { %v3413_v7 = vsub.f32 0.0, %v3381_v5  ;;  %v2774_v42 = vpack.c.bf16 %v2742_v20, %v2742_v20 }
 0x3f4   : > { %v3445_v41 = vpack.c.bf16 %v3413_v7, %v3413_v7  ;;  %v3094_v58 = vunpack.c.l.bf16 %v2774_v42 }
 0x3f6   : > { %v3509_v1 = vsel %vm3477_vm14, %v3445_v41, %v3285_v49  ;;  %v3158_v30 = vmul.f32 %v3126_v17, %v3094_v58 }
 0x3f7   : > { %v3541_v60 = vunpack.c.l.bf16 %v3509_v1 }
 0x3f8   : > { %v3190_v37 = vpack.c.bf16 %v3158_v30, %v3158_v30 }
 0x3f9   : > { %v3605_v51 = vadd.f32 1.0, %v3541_v60 }
 0x3fa   : > { %v3222_v53 = vunpack.c.l.bf16 %v3190_v37 }
 0x3fb   : > { %v3637_v54 = vmul.f32 %v3605_v51, %v3573_v9 }
 0x3fc   : > { %v3254_v63 = vsub.f32 1.0, %v3222_v53 }
 0x3fd   : > { %3669 = vst [vmem:[%s5280_s21 + $0xf0] sm:$0xff] %v3637_v54 }
 0x3fe   : > { %v3286_v55 = vpack.c.bf16 %v3254_v63, %v3254_v63 }
 0x400   : > { %v3382_v29 = vunpack.c.l.bf16 %v3286_v55 }
 0x402   : > { %v3414_v16 = vsub.f32 0.0, %v3382_v29 }
 0x404   : > { %v3446_v40 = vpack.c.bf16 %v3414_v16, %v3414_v16 }
 0x406   : > { %v3510_v62 = vsel %vm3478_vm0, %v3446_v40, %v3286_v55 }
 0x407   : > { %v3542_v31 = vunpack.c.l.bf16 %v3510_v62 }
 0x409   : > { %v3606_v8 = vadd.f32 1.0, %v3542_v31 }
 0x40b   : > { %v3638_v0 = vmul.f32 %v3606_v8, %v3574_v52 }
 0x40d   : > { %3670 = vst [vmem:[%s5280_s21 + $0xf8] sm:$0xff] %v3638_v0 }
 0x40e PF: > { %s13_s12 = sadd.s32 1, %s4499_s12  }
 0x40f   : > { %p10_p4 = scmp.ge.s32.totalorder %s13_s12, 4  }
 0x411   :  { %12 = sbr.rel (!%p10_p4) target bundleno = 1 (0x1), region = 64 }

</bundles_post_ra>
